<compile_context>
chip_gen: v7x
topology: tpu7x:2x2x1
jax: 0.10.0
libtpu: 0.0.40
codegen_flags: <defaults>
</compile_context>

<pallas_src>
import functools

import jax
import jax.numpy as jnp
from jax import lax
from jax.experimental import pallas as pl
from jax.experimental.pallas import tpu as pltpu

KSIZE = 7
PAD = (KSIZE - 1) // 2
C_CHUNK = 8  # sublane-aligned channel chunk for streaming x


def _vmem_budget_bytes():
    """3/4 of physical VMEM: ~48 MiB on v7x, ~96 MiB on v5e/v6e."""
    phys = 64 * 1024 * 1024  # conservative fallback (v7x physical)
    try:
        info = pltpu.get_tpu_info()
        phys = int(getattr(info, "vmem_capacity_bytes", phys))
    except Exception:
        pass
    return (phys * 3) // 4


def spatial_gate_kernel(x_ref, w_ref, out_ref, pad_ref, convf_ref, *, H, W):
    # x_ref:     (TB, C, H*W)          VMEM block (lane-dense streaming layout)
    # w_ref:     (99,)                 SMEM: BN-folded conv weights + bias
    # out_ref:   (TB, C, H*W)          VMEM
    # pad_ref:   (2, TB, H+6, W+6)     VMEM scratch: zero-padded pooled maps
    # convf_ref: (TB, H*W)             VMEM scratch: flat conv result
    TB, C, HW = x_ref.shape
    Hp, Wp = H + 2 * PAD, W + 2 * PAD

    # ---- ChannelPool: max & mean over C, streamed in aligned C-chunks -------
    # (x is never bound as one big live value; each chunk is consumed
    #  immediately by the reduction.)
    cmax = None
    csum = None
    for c0 in range(0, C, C_CHUNK):
        cc = min(C_CHUNK, C - c0)
        xc = x_ref[:, c0:c0 + cc, :].astype(jnp.float32)      # (TB, cc, HW)
        m = jnp.max(xc, axis=1)                               # (TB, HW)
        s = jnp.sum(xc, axis=1)                               # (TB, HW)
        cmax = m if cmax is None else jnp.maximum(cmax, m)
        csum = s if csum is None else csum + s
    cmean = csum * (1.0 / C)                                  # (TB, HW)

    # ---- re-zero only the padded border strips (interior is overwritten) ----
    # Scratch is per-core and the "parallel" batch axis may be split across
    # TensorCores, so a pl.when(first-step) init would be unsafe.
    pad_ref[:, :, 0:PAD, :] = jnp.zeros((2, TB, PAD, Wp), jnp.float32)
    pad_ref[:, :, PAD + H:Hp, :] = jnp.zeros((2, TB, PAD, Wp), jnp.float32)
    pad_ref[:, :, :, 0:PAD] = jnp.zeros((2, TB, Hp, PAD), jnp.float32)
    pad_ref[:, :, :, PAD + W:Wp] = jnp.zeros((2, TB, Hp, PAD), jnp.float32)

    # ---- scatter the flat pooled rows into the 2-D padded conv scratch ------
    # Tiny data (TB * H*W floats per map); uses only static slices so it
    # lowers everywhere (no in-register lane->sublane reshape required).
    for h in range(H):
        pad_ref[0, :, PAD + h, PAD:PAD + W] = cmax[:, h * W:(h + 1) * W]
        pad_ref[1, :, PAD + h, PAD:PAD + W] = cmean[:, h * W:(h + 1) * W]

    # ---- 2-in / 1-out 7x7 "same" conv with BatchNorm folded in --------------
    # Lane (kw) shift hoisted: one VMEM slice per (channel, kw) column, then
    # 7 sublane-offset row windows of that value.  Accumulation is split into
    # 4 independent partial sums (plus short per-column chains) to expose ILP
    # on the 4 VALU slots instead of one 98-long serial chain.
    accs = [None, None, None, None]
    col_idx = 0
    for c in range(2):
        base = c * KSIZE * KSIZE
        for kw in range(KSIZE):
            col = pad_ref[c, :, :, kw:kw + W]                 # (TB, Hp, W)
            p = col[:, 0:H, :] * w_ref[base + kw]             # kh = 0
            for kh in range(1, KSIZE):
                p = p + col[:, kh:kh + H, :] * w_ref[base + kh * KSIZE + kw]
            a = col_idx % 4
            accs[a] = p if accs[a] is None else accs[a] + p
            col_idx += 1
    conv = (accs[0] + accs[1]) + (accs[2] + accs[3])          # (TB, H, W)
    conv = conv + w_ref[2 * KSIZE * KSIZE]                    # folded BN shift

    # ---- back to the flat lane-dense layout, sigmoid, rescale x -------------
    for h in range(H):
        convf_ref[:, h * W:(h + 1) * W] = conv[:, h, :]
    scale = jax.nn.sigmoid(convf_ref[...])                    # (TB, HW)
    scale = scale[:, None, :]                                 # (TB, 1, HW)

    # Re-read x chunk-wise (lane-dense loads/stores, bounded vreg pressure).
    for c0 in range(0, C, C_CHUNK):
        cc = min(C_CHUNK, C - c0)
        xc = x_ref[:, c0:c0 + cc, :].astype(jnp.float32)
        out_ref[:, c0:c0 + cc, :] = (xc * scale).astype(out_ref.dtype)


def spatial_gate(x, conv_w, bn_gamma, bn_beta, bn_mean, bn_var, eps=1e-5):
    """x: (B, C, H, W). conv_w: (1, 2, 7, 7). BN params: shape (1,) each.

    Returns x * sigmoid(BN(Conv7x7(ChannelPool(x)))) with inference-mode BN.
    Works for f32 or bf16 x (compute is f32 either way).
    """
    B, C, H, W = x.shape
    assert conv_w.shape == (1, 2, KSIZE, KSIZE)
    HW = H * W
    Hp, Wp = H + 2 * PAD, W + 2 * PAD

    # Fold inference BatchNorm into the bias-free conv:
    #   BN(conv(p)) = a * conv(p) + b,  a = gamma / sqrt(var + eps),
    #                                   b = beta - mean * a
    a = (bn_gamma / jnp.sqrt(bn_var + eps)).astype(jnp.float32)        # (1,)
    b = (bn_beta - bn_mean * a).astype(jnp.float32)                    # (1,)
    params = jnp.concatenate(
        [(conv_w[0].astype(jnp.float32) * a).reshape(-1), b.reshape(1)]
    )                                                                  # (99,)

    # Lane-dense streaming layout (free reshape: row-major contiguous).
    x2 = x.reshape(B, C, HW)

    itemsize = x.dtype.itemsize
    budget = _vmem_budget_bytes()

    def footprint(tb):
        blk = tb * C * HW * itemsize                    # one x block == one out block
        scratch = 2 * tb * Hp * Wp * 4 + tb * HW * 4
        return 2 * (blk + blk) + scratch + (1 << 20)    # double-buffered in+out

    # Largest TB that (a) fits the VMEM budget, (b) keeps per-step x traffic
    # around a couple of MiB (plenty to amortize the ~0.35 us step overhead),
    # (c) divides B exactly (no partial blocks).
    tb = 1
    for cand in range(1, B + 1):
        if footprint(cand) <= budget and cand * C * HW * itemsize <= (2 << 20):
            tb = cand
    while B % tb:
        tb -= 1

    vmem_limit = int(min(budget, max(2 * footprint(tb), 16 * 1024 * 1024)))

    kernel = functools.partial(spatial_gate_kernel, H=H, W=W)

    out2 = pl.pallas_call(
        kernel,
        out_shape=jax.ShapeDtypeStruct((B, C, HW), x.dtype),
        grid_spec=pltpu.PrefetchScalarGridSpec(
            num_scalar_prefetch=0,
            grid=(B // tb,),
            in_specs=[
                pl.BlockSpec((tb, C, HW), lambda bi: (bi, 0, 0)),
                pl.BlockSpec(memory_space=pltpu.MemorySpace.SMEM),
            ],
            out_specs=pl.BlockSpec((tb, C, HW), lambda bi: (bi, 0, 0)),
            scratch_shapes=[
                pltpu.VMEM((2, tb, Hp, Wp), jnp.float32),
                pltpu.VMEM((tb, HW), jnp.float32),
            ],
        ),
        compiler_params=pltpu.CompilerParams(
            dimension_semantics=("parallel",),
            vmem_limit_bytes=vmem_limit,
        ),
    )(x2, params)

    return out2.reshape(B, C, H, W)


def reference(x, conv_w, bn_gamma, bn_beta, bn_mean, bn_var, eps=1e-5):
    """Pure-JAX mirror of the PyTorch SpatialGate forward (inference BN)."""
    cmax = jnp.max(x, axis=1, keepdims=True)
    cmean = jnp.mean(x, axis=1, keepdims=True)
    pooled = jnp.concatenate([cmax, cmean], axis=1)              # (B, 2, H, W)
    conv = lax.conv_general_dilated(
        pooled, conv_w,
        window_strides=(1, 1),
        padding=[(PAD, PAD), (PAD, PAD)],
        dimension_numbers=("NCHW", "OIHW", "NCHW"),
        precision=lax.Precision.HIGHEST,
    )                                                            # (B, 1, H, W)
    g = bn_gamma.reshape(1, 1, 1, 1)
    bt = bn_beta.reshape(1, 1, 1, 1)
    m = bn_mean.reshape(1, 1, 1, 1)
    v = bn_var.reshape(1, 1, 1, 1)
    bn = (conv - m) / jnp.sqrt(v + eps) * g + bt
    return x * jax.nn.sigmoid(bn)


if __name__ == "__main__":
    B, C, H, W = 2, 4, 16, 16

    key = jax.random.PRNGKey(0)
    kx, kw_, kg, kb, km, kv = jax.random.split(key, 6)

    x = jax.random.normal(kx, (B, C, H, W), dtype=jnp.float32)
    conv_w = jax.random.normal(kw_, (1, 2, KSIZE, KSIZE), dtype=jnp.float32) * 0.1
    bn_gamma = 1.0 + 0.1 * jax.random.normal(kg, (1,), dtype=jnp.float32)
    bn_beta = 0.1 * jax.random.normal(kb, (1,), dtype=jnp.float32)
    bn_mean = 0.1 * jax.random.normal(km, (1,), dtype=jnp.float32)
    bn_var = jnp.abs(jax.random.normal(kv, (1,), dtype=jnp.float32)) + 0.5

    out = spatial_gate(x, conv_w, bn_gamma, bn_beta, bn_mean, bn_var)
    out = jax.block_until_ready(out)

    ref = reference(x, conv_w, bn_gamma, bn_beta, bn_mean, bn_var)
    assert out.shape == (B, C, H, W)
    err = float(jnp.max(jnp.abs(out - ref)))
    assert jnp.allclose(out, ref, atol=1e-4, rtol=1e-4), f"mismatch vs reference: {err}"

    print("KERNEL_OK")
</pallas_src>

<mosaic_0001>
module attributes {stable_mosaic.version = 11 : i64} {
  func.func @spatial_gate_kernel(%arg0: i32, %arg1: memref<2x4x256xf32, #tpu.memory_space<vmem>>, %arg2: memref<99xf32, #tpu.memory_space<smem>>, %arg3: memref<2x4x256xf32, #tpu.memory_space<vmem>>, %arg4: memref<2x2x22x22xf32, #tpu.memory_space<vmem>>, %arg5: memref<2x256xf32, #tpu.memory_space<vmem>>) attributes {dimension_semantics = [#tpu.dimension_semantics<parallel>], iteration_bounds = array<i64: 1>, scalar_prefetch = 0 : i64, scratch_operands = 2 : i64, tpu.core_type = #tpu.core_type<tc>, window_params = [{transform_indices = @transform_0, window_bounds = array<i64: 2, 4, 256>}, {transform_indices = @transform_1, window_bounds = array<i64: 99>}, {transform_indices = @transform_2, window_bounds = array<i64: 2, 4, 256>}]} {
    %c0 = arith.constant 0 : index
    %c0_0 = arith.constant 0 : index
    %c0_1 = arith.constant 0 : index
    %0 = vector.load %arg1[%c0, %c0_0, %c0_1] : memref<2x4x256xf32, #tpu.memory_space<vmem>>, vector<2x4x256xf32>
    %cst = arith.constant dense<0xFF800000> : vector<2x256xf32>
    %1 = vector.multi_reduction <maximumf>, %0, %cst [1] : vector<2x4x256xf32> to vector<2x256xf32>
    %cst_2 = arith.constant dense<0.000000e+00> : vector<2x256xf32>
    %2 = vector.multi_reduction <add>, %0, %cst_2 [1] : vector<2x4x256xf32> to vector<2x256xf32>
    %cst_3 = arith.constant 2.500000e-01 : f32
    %3 = vector.broadcast %cst_3 : f32 to vector<2x256xf32>
    %4 = arith.mulf %2, %3 : vector<2x256xf32>
    %cst_4 = arith.constant 0.000000e+00 : f32
    %5 = vector.broadcast %cst_4 : f32 to vector<2x2x3x22xf32>
    %c0_5 = arith.constant 0 : index
    %c0_6 = arith.constant 0 : index
    %c0_7 = arith.constant 0 : index
    %c0_8 = arith.constant 0 : index
    %6 = vector.load %arg4[%c0_5, %c0_6, %c0_7, %c0_8] : memref<2x2x22x22xf32, #tpu.memory_space<vmem>>, vector<2x2x3x22xf32>
    tpu.vector_store %arg4[%c0_5, %c0_6, %c0_7, %c0_8], %5 {strides = array<i32>} : memref<2x2x22x22xf32, #tpu.memory_space<vmem>>, vector<2x2x3x22xf32>,
    %cst_9 = arith.constant 0.000000e+00 : f32
    %7 = vector.broadcast %cst_9 : f32 to vector<2x2x3x22xf32>
    %c0_10 = arith.constant 0 : index
    %c0_11 = arith.constant 0 : index
    %c19 = arith.constant 19 : index
    %c0_12 = arith.constant 0 : index
    %8 = vector.load %arg4[%c0_10, %c0_11, %c19, %c0_12] : memref<2x2x22x22xf32, #tpu.memory_space<vmem>>, vector<2x2x3x22xf32>
    tpu.vector_store %arg4[%c0_10, %c0_11, %c19, %c0_12], %7 {strides = array<i32>} : memref<2x2x22x22xf32, #tpu.memory_space<vmem>>, vector<2x2x3x22xf32>,
    %cst_13 = arith.constant 0.000000e+00 : f32
    %9 = vector.broadcast %cst_13 : f32 to vector<2x2x22x3xf32>
    %c0_14 = arith.constant 0 : index
    %c0_15 = arith.constant 0 : index
    %c0_16 = arith.constant 0 : index
    %c0_17 = arith.constant 0 : index
    %10 = vector.load %arg4[%c0_14, %c0_15, %c0_16, %c0_17] : memref<2x2x22x22xf32, #tpu.memory_space<vmem>>, vector<2x2x22x3xf32>
    tpu.vector_store %arg4[%c0_14, %c0_15, %c0_16, %c0_17], %9 {strides = array<i32>} : memref<2x2x22x22xf32, #tpu.memory_space<vmem>>, vector<2x2x22x3xf32>,
    %cst_18 = arith.constant 0.000000e+00 : f32
    %11 = vector.broadcast %cst_18 : f32 to vector<2x2x22x3xf32>
    %c0_19 = arith.constant 0 : index
    %c0_20 = arith.constant 0 : index
    %c0_21 = arith.constant 0 : index
    %c19_22 = arith.constant 19 : index
    %12 = vector.load %arg4[%c0_19, %c0_20, %c0_21, %c19_22] : memref<2x2x22x22xf32, #tpu.memory_space<vmem>>, vector<2x2x22x3xf32>
    tpu.vector_store %arg4[%c0_19, %c0_20, %c0_21, %c19_22], %11 {strides = array<i32>} : memref<2x2x22x22xf32, #tpu.memory_space<vmem>>, vector<2x2x22x3xf32>,
    %13 = vector.extract_strided_slice %1 {offsets = [0, 0], sizes = [2, 16], strides = [1, 1]} : vector<2x256xf32> to vector<2x16xf32>
    %c0_23 = arith.constant 0 : index
    %c0_24 = arith.constant 0 : index
    %c3 = arith.constant 3 : index
    %c3_25 = arith.constant 3 : index
    %14 = vector.load %arg4[%c0_23, %c0_24, %c3, %c3_25] : memref<2x2x22x22xf32, #tpu.memory_space<vmem>>, vector<1x2x1x16xf32>
    %15 = vector.shape_cast %14 : vector<1x2x1x16xf32> to vector<2x16xf32>
    %16 = vector.shape_cast %13 : vector<2x16xf32> to vector<1x2x1x16xf32>
    tpu.vector_store %arg4[%c0_23, %c0_24, %c3, %c3_25], %16 {strides = array<i32>} : memref<2x2x22x22xf32, #tpu.memory_space<vmem>>, vector<1x2x1x16xf32>,
    %17 = vector.extract_strided_slice %4 {offsets = [0, 0], sizes = [2, 16], strides = [1, 1]} : vector<2x256xf32> to vector<2x16xf32>
    %c1 = arith.constant 1 : index
    %c0_26 = arith.constant 0 : index
    %c3_27 = arith.constant 3 : index
    %c3_28 = arith.constant 3 : index
    %18 = vector.load %arg4[%c1, %c0_26, %c3_27, %c3_28] : memref<2x2x22x22xf32, #tpu.memory_space<vmem>>, vector<1x2x1x16xf32>
    %19 = vector.shape_cast %18 : vector<1x2x1x16xf32> to vector<2x16xf32>
    %20 = vector.shape_cast %17 : vector<2x16xf32> to vector<1x2x1x16xf32>
    tpu.vector_store %arg4[%c1, %c0_26, %c3_27, %c3_28], %20 {strides = array<i32>} : memref<2x2x22x22xf32, #tpu.memory_space<vmem>>, vector<1x2x1x16xf32>,
    %21 = vector.extract_strided_slice %1 {offsets = [0, 16], sizes = [2, 16], strides = [1, 1]} : vector<2x256xf32> to vector<2x16xf32>
    %c0_29 = arith.constant 0 : index
    %c0_30 = arith.constant 0 : index
    %c4 = arith.constant 4 : index
    %c3_31 = arith.constant 3 : index
    %22 = vector.load %arg4[%c0_29, %c0_30, %c4, %c3_31] : memref<2x2x22x22xf32, #tpu.memory_space<vmem>>, vector<1x2x1x16xf32>
    %23 = vector.shape_cast %22 : vector<1x2x1x16xf32> to vector<2x16xf32>
    %24 = vector.shape_cast %21 : vector<2x16xf32> to vector<1x2x1x16xf32>
    tpu.vector_store %arg4[%c0_29, %c0_30, %c4, %c3_31], %24 {strides = array<i32>} : memref<2x2x22x22xf32, #tpu.memory_space<vmem>>, vector<1x2x1x16xf32>,
    %25 = vector.extract_strided_slice %4 {offsets = [0, 16], sizes = [2, 16], strides = [1, 1]} : vector<2x256xf32> to vector<2x16xf32>
    %c1_32 = arith.constant 1 : index
    %c0_33 = arith.constant 0 : index
    %c4_34 = arith.constant 4 : index
    %c3_35 = arith.constant 3 : index
    %26 = vector.load %arg4[%c1_32, %c0_33, %c4_34, %c3_35] : memref<2x2x22x22xf32, #tpu.memory_space<vmem>>, vector<1x2x1x16xf32>
    %27 = vector.shape_cast %26 : vector<1x2x1x16xf32> to vector<2x16xf32>
    %28 = vector.shape_cast %25 : vector<2x16xf32> to vector<1x2x1x16xf32>
    tpu.vector_store %arg4[%c1_32, %c0_33, %c4_34, %c3_35], %28 {strides = array<i32>} : memref<2x2x22x22xf32, #tpu.memory_space<vmem>>, vector<1x2x1x16xf32>,
    %29 = vector.extract_strided_slice %1 {offsets = [0, 32], sizes = [2, 16], strides = [1, 1]} : vector<2x256xf32> to vector<2x16xf32>
    %c0_36 = arith.constant 0 : index
    %c0_37 = arith.constant 0 : index
    %c5 = arith.constant 5 : index
    %c3_38 = arith.constant 3 : index
    %30 = vector.load %arg4[%c0_36, %c0_37, %c5, %c3_38] : memref<2x2x22x22xf32, #tpu.memory_space<vmem>>, vector<1x2x1x16xf32>
    %31 = vector.shape_cast %30 : vector<1x2x1x16xf32> to vector<2x16xf32>
    %32 = vector.shape_cast %29 : vector<2x16xf32> to vector<1x2x1x16xf32>
    tpu.vector_store %arg4[%c0_36, %c0_37, %c5, %c3_38], %32 {strides = array<i32>} : memref<2x2x22x22xf32, #tpu.memory_space<vmem>>, vector<1x2x1x16xf32>,
    %33 = vector.extract_strided_slice %4 {offsets = [0, 32], sizes = [2, 16], strides = [1, 1]} : vector<2x256xf32> to vector<2x16xf32>
    %c1_39 = arith.constant 1 : index
    %c0_40 = arith.constant 0 : index
    %c5_41 = arith.constant 5 : index
    %c3_42 = arith.constant 3 : index
    %34 = vector.load %arg4[%c1_39, %c0_40, %c5_41, %c3_42] : memref<2x2x22x22xf32, #tpu.memory_space<vmem>>, vector<1x2x1x16xf32>
    %35 = vector.shape_cast %34 : vector<1x2x1x16xf32> to vector<2x16xf32>
    %36 = vector.shape_cast %33 : vector<2x16xf32> to vector<1x2x1x16xf32>
    tpu.vector_store %arg4[%c1_39, %c0_40, %c5_41, %c3_42], %36 {strides = array<i32>} : memref<2x2x22x22xf32, #tpu.memory_space<vmem>>, vector<1x2x1x16xf32>,
    %37 = vector.extract_strided_slice %1 {offsets = [0, 48], sizes = [2, 16], strides = [1, 1]} : vector<2x256xf32> to vector<2x16xf32>
    %c0_43 = arith.constant 0 : index
    %c0_44 = arith.constant 0 : index
    %c6 = arith.constant 6 : index
    %c3_45 = arith.constant 3 : index
    %38 = vector.load %arg4[%c0_43, %c0_44, %c6, %c3_45] : memref<2x2x22x22xf32, #tpu.memory_space<vmem>>, vector<1x2x1x16xf32>
    %39 = vector.shape_cast %38 : vector<1x2x1x16xf32> to vector<2x16xf32>
    %40 = vector.shape_cast %37 : vector<2x16xf32> to vector<1x2x1x16xf32>
    tpu.vector_store %arg4[%c0_43, %c0_44, %c6, %c3_45], %40 {strides = array<i32>} : memref<2x2x22x22xf32, #tpu.memory_space<vmem>>, vector<1x2x1x16xf32>,
    %41 = vector.extract_strided_slice %4 {offsets = [0, 48], sizes = [2, 16], strides = [1, 1]} : vector<2x256xf32> to vector<2x16xf32>
    %c1_46 = arith.constant 1 : index
    %c0_47 = arith.constant 0 : index
    %c6_48 = arith.constant 6 : index
    %c3_49 = arith.constant 3 : index
    %42 = vector.load %arg4[%c1_46, %c0_47, %c6_48, %c3_49] : memref<2x2x22x22xf32, #tpu.memory_space<vmem>>, vector<1x2x1x16xf32>
    %43 = vector.shape_cast %42 : vector<1x2x1x16xf32> to vector<2x16xf32>
    %44 = vector.shape_cast %41 : vector<2x16xf32> to vector<1x2x1x16xf32>
    tpu.vector_store %arg4[%c1_46, %c0_47, %c6_48, %c3_49], %44 {strides = array<i32>} : memref<2x2x22x22xf32, #tpu.memory_space<vmem>>, vector<1x2x1x16xf32>,
    %45 = vector.extract_strided_slice %1 {offsets = [0, 64], sizes = [2, 16], strides = [1, 1]} : vector<2x256xf32> to vector<2x16xf32>
    %c0_50 = arith.constant 0 : index
    %c0_51 = arith.constant 0 : index
    %c7 = arith.constant 7 : index
    %c3_52 = arith.constant 3 : index
    %46 = vector.load %arg4[%c0_50, %c0_51, %c7, %c3_52] : memref<2x2x22x22xf32, #tpu.memory_space<vmem>>, vector<1x2x1x16xf32>
    %47 = vector.shape_cast %46 : vector<1x2x1x16xf32> to vector<2x16xf32>
    %48 = vector.shape_cast %45 : vector<2x16xf32> to vector<1x2x1x16xf32>
    tpu.vector_store %arg4[%c0_50, %c0_51, %c7, %c3_52], %48 {strides = array<i32>} : memref<2x2x22x22xf32, #tpu.memory_space<vmem>>, vector<1x2x1x16xf32>,
    %49 = vector.extract_strided_slice %4 {offsets = [0, 64], sizes = [2, 16], strides = [1, 1]} : vector<2x256xf32> to vector<2x16xf32>
    %c1_53 = arith.constant 1 : index
    %c0_54 = arith.constant 0 : index
    %c7_55 = arith.constant 7 : index
    %c3_56 = arith.constant 3 : index
    %50 = vector.load %arg4[%c1_53, %c0_54, %c7_55, %c3_56] : memref<2x2x22x22xf32, #tpu.memory_space<vmem>>, vector<1x2x1x16xf32>
    %51 = vector.shape_cast %50 : vector<1x2x1x16xf32> to vector<2x16xf32>
    %52 = vector.shape_cast %49 : vector<2x16xf32> to vector<1x2x1x16xf32>
    tpu.vector_store %arg4[%c1_53, %c0_54, %c7_55, %c3_56], %52 {strides = array<i32>} : memref<2x2x22x22xf32, #tpu.memory_space<vmem>>, vector<1x2x1x16xf32>,
    %53 = vector.extract_strided_slice %1 {offsets = [0, 80], sizes = [2, 16], strides = [1, 1]} : vector<2x256xf32> to vector<2x16xf32>
    %c0_57 = arith.constant 0 : index
    %c0_58 = arith.constant 0 : index
    %c8 = arith.constant 8 : index
    %c3_59 = arith.constant 3 : index
    %54 = vector.load %arg4[%c0_57, %c0_58, %c8, %c3_59] : memref<2x2x22x22xf32, #tpu.memory_space<vmem>>, vector<1x2x1x16xf32>
    %55 = vector.shape_cast %54 : vector<1x2x1x16xf32> to vector<2x16xf32>
    %56 = vector.shape_cast %53 : vector<2x16xf32> to vector<1x2x1x16xf32>
    tpu.vector_store %arg4[%c0_57, %c0_58, %c8, %c3_59], %56 {strides = array<i32>} : memref<2x2x22x22xf32, #tpu.memory_space<vmem>>, vector<1x2x1x16xf32>,
    %57 = vector.extract_strided_slice %4 {offsets = [0, 80], sizes = [2, 16], strides = [1, 1]} : vector<2x256xf32> to vector<2x16xf32>
    %c1_60 = arith.constant 1 : index
    %c0_61 = arith.constant 0 : index
    %c8_62 = arith.constant 8 : index
    %c3_63 = arith.constant 3 : index
    %58 = vector.load %arg4[%c1_60, %c0_61, %c8_62, %c3_63] : memref<2x2x22x22xf32, #tpu.memory_space<vmem>>, vector<1x2x1x16xf32>
    %59 = vector.shape_cast %58 : vector<1x2x1x16xf32> to vector<2x16xf32>
    %60 = vector.shape_cast %57 : vector<2x16xf32> to vector<1x2x1x16xf32>
    tpu.vector_store %arg4[%c1_60, %c0_61, %c8_62, %c3_63], %60 {strides = array<i32>} : memref<2x2x22x22xf32, #tpu.memory_space<vmem>>, vector<1x2x1x16xf32>,
    %61 = vector.extract_strided_slice %1 {offsets = [0, 96], sizes = [2, 16], strides = [1, 1]} : vector<2x256xf32> to vector<2x16xf32>
    %c0_64 = arith.constant 0 : index
    %c0_65 = arith.constant 0 : index
    %c9 = arith.constant 9 : index
    %c3_66 = arith.constant 3 : index
    %62 = vector.load %arg4[%c0_64, %c0_65, %c9, %c3_66] : memref<2x2x22x22xf32, #tpu.memory_space<vmem>>, vector<1x2x1x16xf32>
    %63 = vector.shape_cast %62 : vector<1x2x1x16xf32> to vector<2x16xf32>
    %64 = vector.shape_cast %61 : vector<2x16xf32> to vector<1x2x1x16xf32>
    tpu.vector_store %arg4[%c0_64, %c0_65, %c9, %c3_66], %64 {strides = array<i32>} : memref<2x2x22x22xf32, #tpu.memory_space<vmem>>, vector<1x2x1x16xf32>,
    %65 = vector.extract_strided_slice %4 {offsets = [0, 96], sizes = [2, 16], strides = [1, 1]} : vector<2x256xf32> to vector<2x16xf32>
    %c1_67 = arith.constant 1 : index
    %c0_68 = arith.constant 0 : index
    %c9_69 = arith.constant 9 : index
    %c3_70 = arith.constant 3 : index
    %66 = vector.load %arg4[%c1_67, %c0_68, %c9_69, %c3_70] : memref<2x2x22x22xf32, #tpu.memory_space<vmem>>, vector<1x2x1x16xf32>
    %67 = vector.shape_cast %66 : vector<1x2x1x16xf32> to vector<2x16xf32>
    %68 = vector.shape_cast %65 : vector<2x16xf32> to vector<1x2x1x16xf32>
    tpu.vector_store %arg4[%c1_67, %c0_68, %c9_69, %c3_70], %68 {strides = array<i32>} : memref<2x2x22x22xf32, #tpu.memory_space<vmem>>, vector<1x2x1x16xf32>,
    %69 = vector.extract_strided_slice %1 {offsets = [0, 112], sizes = [2, 16], strides = [1, 1]} : vector<2x256xf32> to vector<2x16xf32>
    %c0_71 = arith.constant 0 : index
    %c0_72 = arith.constant 0 : index
    %c10 = arith.constant 10 : index
    %c3_73 = arith.constant 3 : index
    %70 = vector.load %arg4[%c0_71, %c0_72, %c10, %c3_73] : memref<2x2x22x22xf32, #tpu.memory_space<vmem>>, vector<1x2x1x16xf32>
    %71 = vector.shape_cast %70 : vector<1x2x1x16xf32> to vector<2x16xf32>
    %72 = vector.shape_cast %69 : vector<2x16xf32> to vector<1x2x1x16xf32>
    tpu.vector_store %arg4[%c0_71, %c0_72, %c10, %c3_73], %72 {strides = array<i32>} : memref<2x2x22x22xf32, #tpu.memory_space<vmem>>, vector<1x2x1x16xf32>,
    %73 = vector.extract_strided_slice %4 {offsets = [0, 112], sizes = [2, 16], strides = [1, 1]} : vector<2x256xf32> to vector<2x16xf32>
    %c1_74 = arith.constant 1 : index
    %c0_75 = arith.constant 0 : index
    %c10_76 = arith.constant 10 : index
    %c3_77 = arith.constant 3 : index
    %74 = vector.load %arg4[%c1_74, %c0_75, %c10_76, %c3_77] : memref<2x2x22x22xf32, #tpu.memory_space<vmem>>, vector<1x2x1x16xf32>
    %75 = vector.shape_cast %74 : vector<1x2x1x16xf32> to vector<2x16xf32>
    %76 = vector.shape_cast %73 : vector<2x16xf32> to vector<1x2x1x16xf32>
    tpu.vector_store %arg4[%c1_74, %c0_75, %c10_76, %c3_77], %76 {strides = array<i32>} : memref<2x2x22x22xf32, #tpu.memory_space<vmem>>, vector<1x2x1x16xf32>,
    %77 = vector.extract_strided_slice %1 {offsets = [0, 128], sizes = [2, 16], strides = [1, 1]} : vector<2x256xf32> to vector<2x16xf32>
    %c0_78 = arith.constant 0 : index
    %c0_79 = arith.constant 0 : index
    %c11 = arith.constant 11 : index
    %c3_80 = arith.constant 3 : index
    %78 = vector.load %arg4[%c0_78, %c0_79, %c11, %c3_80] : memref<2x2x22x22xf32, #tpu.memory_space<vmem>>, vector<1x2x1x16xf32>
    %79 = vector.shape_cast %78 : vector<1x2x1x16xf32> to vector<2x16xf32>
    %80 = vector.shape_cast %77 : vector<2x16xf32> to vector<1x2x1x16xf32>
    tpu.vector_store %arg4[%c0_78, %c0_79, %c11, %c3_80], %80 {strides = array<i32>} : memref<2x2x22x22xf32, #tpu.memory_space<vmem>>, vector<1x2x1x16xf32>,
    %81 = vector.extract_strided_slice %4 {offsets = [0, 128], sizes = [2, 16], strides = [1, 1]} : vector<2x256xf32> to vector<2x16xf32>
    %c1_81 = arith.constant 1 : index
    %c0_82 = arith.constant 0 : index
    %c11_83 = arith.constant 11 : index
    %c3_84 = arith.constant 3 : index
    %82 = vector.load %arg4[%c1_81, %c0_82, %c11_83, %c3_84] : memref<2x2x22x22xf32, #tpu.memory_space<vmem>>, vector<1x2x1x16xf32>
    %83 = vector.shape_cast %82 : vector<1x2x1x16xf32> to vector<2x16xf32>
    %84 = vector.shape_cast %81 : vector<2x16xf32> to vector<1x2x1x16xf32>
    tpu.vector_store %arg4[%c1_81, %c0_82, %c11_83, %c3_84], %84 {strides = array<i32>} : memref<2x2x22x22xf32, #tpu.memory_space<vmem>>, vector<1x2x1x16xf32>,
    %85 = vector.extract_strided_slice %1 {offsets = [0, 144], sizes = [2, 16], strides = [1, 1]} : vector<2x256xf32> to vector<2x16xf32>
    %c0_85 = arith.constant 0 : index
    %c0_86 = arith.constant 0 : index
    %c12 = arith.constant 12 : index
    %c3_87 = arith.constant 3 : index
    %86 = vector.load %arg4[%c0_85, %c0_86, %c12, %c3_87] : memref<2x2x22x22xf32, #tpu.memory_space<vmem>>, vector<1x2x1x16xf32>
    %87 = vector.shape_cast %86 : vector<1x2x1x16xf32> to vector<2x16xf32>
    %88 = vector.shape_cast %85 : vector<2x16xf32> to vector<1x2x1x16xf32>
    tpu.vector_store %arg4[%c0_85, %c0_86, %c12, %c3_87], %88 {strides = array<i32>} : memref<2x2x22x22xf32, #tpu.memory_space<vmem>>, vector<1x2x1x16xf32>,
    %89 = vector.extract_strided_slice %4 {offsets = [0, 144], sizes = [2, 16], strides = [1, 1]} : vector<2x256xf32> to vector<2x16xf32>
    %c1_88 = arith.constant 1 : index
    %c0_89 = arith.constant 0 : index
    %c12_90 = arith.constant 12 : index
    %c3_91 = arith.constant 3 : index
    %90 = vector.load %arg4[%c1_88, %c0_89, %c12_90, %c3_91] : memref<2x2x22x22xf32, #tpu.memory_space<vmem>>, vector<1x2x1x16xf32>
    %91 = vector.shape_cast %90 : vector<1x2x1x16xf32> to vector<2x16xf32>
    %92 = vector.shape_cast %89 : vector<2x16xf32> to vector<1x2x1x16xf32>
    tpu.vector_store %arg4[%c1_88, %c0_89, %c12_90, %c3_91], %92 {strides = array<i32>} : memref<2x2x22x22xf32, #tpu.memory_space<vmem>>, vector<1x2x1x16xf32>,
    %93 = vector.extract_strided_slice %1 {offsets = [0, 160], sizes = [2, 16], strides = [1, 1]} : vector<2x256xf32> to vector<2x16xf32>
    %c0_92 = arith.constant 0 : index
    %c0_93 = arith.constant 0 : index
    %c13 = arith.constant 13 : index
    %c3_94 = arith.constant 3 : index
    %94 = vector.load %arg4[%c0_92, %c0_93, %c13, %c3_94] : memref<2x2x22x22xf32, #tpu.memory_space<vmem>>, vector<1x2x1x16xf32>
    %95 = vector.shape_cast %94 : vector<1x2x1x16xf32> to vector<2x16xf32>
    %96 = vector.shape_cast %93 : vector<2x16xf32> to vector<1x2x1x16xf32>
    tpu.vector_store %arg4[%c0_92, %c0_93, %c13, %c3_94], %96 {strides = array<i32>} : memref<2x2x22x22xf32, #tpu.memory_space<vmem>>, vector<1x2x1x16xf32>,
    %97 = vector.extract_strided_slice %4 {offsets = [0, 160], sizes = [2, 16], strides = [1, 1]} : vector<2x256xf32> to vector<2x16xf32>
    %c1_95 = arith.constant 1 : index
    %c0_96 = arith.constant 0 : index
    %c13_97 = arith.constant 13 : index
    %c3_98 = arith.constant 3 : index
    %98 = vector.load %arg4[%c1_95, %c0_96, %c13_97, %c3_98] : memref<2x2x22x22xf32, #tpu.memory_space<vmem>>, vector<1x2x1x16xf32>
    %99 = vector.shape_cast %98 : vector<1x2x1x16xf32> to vector<2x16xf32>
    %100 = vector.shape_cast %97 : vector<2x16xf32> to vector<1x2x1x16xf32>
    tpu.vector_store %arg4[%c1_95, %c0_96, %c13_97, %c3_98], %100 {strides = array<i32>} : memref<2x2x22x22xf32, #tpu.memory_space<vmem>>, vector<1x2x1x16xf32>,
    %101 = vector.extract_strided_slice %1 {offsets = [0, 176], sizes = [2, 16], strides = [1, 1]} : vector<2x256xf32> to vector<2x16xf32>
    %c0_99 = arith.constant 0 : index
    %c0_100 = arith.constant 0 : index
    %c14 = arith.constant 14 : index
    %c3_101 = arith.constant 3 : index
    %102 = vector.load %arg4[%c0_99, %c0_100, %c14, %c3_101] : memref<2x2x22x22xf32, #tpu.memory_space<vmem>>, vector<1x2x1x16xf32>
    %103 = vector.shape_cast %102 : vector<1x2x1x16xf32> to vector<2x16xf32>
    %104 = vector.shape_cast %101 : vector<2x16xf32> to vector<1x2x1x16xf32>
    tpu.vector_store %arg4[%c0_99, %c0_100, %c14, %c3_101], %104 {strides = array<i32>} : memref<2x2x22x22xf32, #tpu.memory_space<vmem>>, vector<1x2x1x16xf32>,
    %105 = vector.extract_strided_slice %4 {offsets = [0, 176], sizes = [2, 16], strides = [1, 1]} : vector<2x256xf32> to vector<2x16xf32>
    %c1_102 = arith.constant 1 : index
    %c0_103 = arith.constant 0 : index
    %c14_104 = arith.constant 14 : index
    %c3_105 = arith.constant 3 : index
    %106 = vector.load %arg4[%c1_102, %c0_103, %c14_104, %c3_105] : memref<2x2x22x22xf32, #tpu.memory_space<vmem>>, vector<1x2x1x16xf32>
    %107 = vector.shape_cast %106 : vector<1x2x1x16xf32> to vector<2x16xf32>
    %108 = vector.shape_cast %105 : vector<2x16xf32> to vector<1x2x1x16xf32>
    tpu.vector_store %arg4[%c1_102, %c0_103, %c14_104, %c3_105], %108 {strides = array<i32>} : memref<2x2x22x22xf32, #tpu.memory_space<vmem>>, vector<1x2x1x16xf32>,
    %109 = vector.extract_strided_slice %1 {offsets = [0, 192], sizes = [2, 16], strides = [1, 1]} : vector<2x256xf32> to vector<2x16xf32>
    %c0_106 = arith.constant 0 : index
    %c0_107 = arith.constant 0 : index
    %c15 = arith.constant 15 : index
    %c3_108 = arith.constant 3 : index
    %110 = vector.load %arg4[%c0_106, %c0_107, %c15, %c3_108] : memref<2x2x22x22xf32, #tpu.memory_space<vmem>>, vector<1x2x1x16xf32>
    %111 = vector.shape_cast %110 : vector<1x2x1x16xf32> to vector<2x16xf32>
    %112 = vector.shape_cast %109 : vector<2x16xf32> to vector<1x2x1x16xf32>
    tpu.vector_store %arg4[%c0_106, %c0_107, %c15, %c3_108], %112 {strides = array<i32>} : memref<2x2x22x22xf32, #tpu.memory_space<vmem>>, vector<1x2x1x16xf32>,
    %113 = vector.extract_strided_slice %4 {offsets = [0, 192], sizes = [2, 16], strides = [1, 1]} : vector<2x256xf32> to vector<2x16xf32>
    %c1_109 = arith.constant 1 : index
    %c0_110 = arith.constant 0 : index
    %c15_111 = arith.constant 15 : index
    %c3_112 = arith.constant 3 : index
    %114 = vector.load %arg4[%c1_109, %c0_110, %c15_111, %c3_112] : memref<2x2x22x22xf32, #tpu.memory_space<vmem>>, vector<1x2x1x16xf32>
    %115 = vector.shape_cast %114 : vector<1x2x1x16xf32> to vector<2x16xf32>
    %116 = vector.shape_cast %113 : vector<2x16xf32> to vector<1x2x1x16xf32>
    tpu.vector_store %arg4[%c1_109, %c0_110, %c15_111, %c3_112], %116 {strides = array<i32>} : memref<2x2x22x22xf32, #tpu.memory_space<vmem>>, vector<1x2x1x16xf32>,
    %117 = vector.extract_strided_slice %1 {offsets = [0, 208], sizes = [2, 16], strides = [1, 1]} : vector<2x256xf32> to vector<2x16xf32>
    %c0_113 = arith.constant 0 : index
    %c0_114 = arith.constant 0 : index
    %c16 = arith.constant 16 : index
    %c3_115 = arith.constant 3 : index
    %118 = vector.load %arg4[%c0_113, %c0_114, %c16, %c3_115] : memref<2x2x22x22xf32, #tpu.memory_space<vmem>>, vector<1x2x1x16xf32>
    %119 = vector.shape_cast %118 : vector<1x2x1x16xf32> to vector<2x16xf32>
    %120 = vector.shape_cast %117 : vector<2x16xf32> to vector<1x2x1x16xf32>
    tpu.vector_store %arg4[%c0_113, %c0_114, %c16, %c3_115], %120 {strides = array<i32>} : memref<2x2x22x22xf32, #tpu.memory_space<vmem>>, vector<1x2x1x16xf32>,
    %121 = vector.extract_strided_slice %4 {offsets = [0, 208], sizes = [2, 16], strides = [1, 1]} : vector<2x256xf32> to vector<2x16xf32>
    %c1_116 = arith.constant 1 : index
    %c0_117 = arith.constant 0 : index
    %c16_118 = arith.constant 16 : index
    %c3_119 = arith.constant 3 : index
    %122 = vector.load %arg4[%c1_116, %c0_117, %c16_118, %c3_119] : memref<2x2x22x22xf32, #tpu.memory_space<vmem>>, vector<1x2x1x16xf32>
    %123 = vector.shape_cast %122 : vector<1x2x1x16xf32> to vector<2x16xf32>
    %124 = vector.shape_cast %121 : vector<2x16xf32> to vector<1x2x1x16xf32>
    tpu.vector_store %arg4[%c1_116, %c0_117, %c16_118, %c3_119], %124 {strides = array<i32>} : memref<2x2x22x22xf32, #tpu.memory_space<vmem>>, vector<1x2x1x16xf32>,
    %125 = vector.extract_strided_slice %1 {offsets = [0, 224], sizes = [2, 16], strides = [1, 1]} : vector<2x256xf32> to vector<2x16xf32>
    %c0_120 = arith.constant 0 : index
    %c0_121 = arith.constant 0 : index
    %c17 = arith.constant 17 : index
    %c3_122 = arith.constant 3 : index
    %126 = vector.load %arg4[%c0_120, %c0_121, %c17, %c3_122] : memref<2x2x22x22xf32, #tpu.memory_space<vmem>>, vector<1x2x1x16xf32>
    %127 = vector.shape_cast %126 : vector<1x2x1x16xf32> to vector<2x16xf32>
    %128 = vector.shape_cast %125 : vector<2x16xf32> to vector<1x2x1x16xf32>
    tpu.vector_store %arg4[%c0_120, %c0_121, %c17, %c3_122], %128 {strides = array<i32>} : memref<2x2x22x22xf32, #tpu.memory_space<vmem>>, vector<1x2x1x16xf32>,
    %129 = vector.extract_strided_slice %4 {offsets = [0, 224], sizes = [2, 16], strides = [1, 1]} : vector<2x256xf32> to vector<2x16xf32>
    %c1_123 = arith.constant 1 : index
    %c0_124 = arith.constant 0 : index
    %c17_125 = arith.constant 17 : index
    %c3_126 = arith.constant 3 : index
    %130 = vector.load %arg4[%c1_123, %c0_124, %c17_125, %c3_126] : memref<2x2x22x22xf32, #tpu.memory_space<vmem>>, vector<1x2x1x16xf32>
    %131 = vector.shape_cast %130 : vector<1x2x1x16xf32> to vector<2x16xf32>
    %132 = vector.shape_cast %129 : vector<2x16xf32> to vector<1x2x1x16xf32>
    tpu.vector_store %arg4[%c1_123, %c0_124, %c17_125, %c3_126], %132 {strides = array<i32>} : memref<2x2x22x22xf32, #tpu.memory_space<vmem>>, vector<1x2x1x16xf32>,
    %133 = vector.extract_strided_slice %1 {offsets = [0, 240], sizes = [2, 16], strides = [1, 1]} : vector<2x256xf32> to vector<2x16xf32>
    %c0_127 = arith.constant 0 : index
    %c0_128 = arith.constant 0 : index
    %c18 = arith.constant 18 : index
    %c3_129 = arith.constant 3 : index
    %134 = vector.load %arg4[%c0_127, %c0_128, %c18, %c3_129] : memref<2x2x22x22xf32, #tpu.memory_space<vmem>>, vector<1x2x1x16xf32>
    %135 = vector.shape_cast %134 : vector<1x2x1x16xf32> to vector<2x16xf32>
    %136 = vector.shape_cast %133 : vector<2x16xf32> to vector<1x2x1x16xf32>
    tpu.vector_store %arg4[%c0_127, %c0_128, %c18, %c3_129], %136 {strides = array<i32>} : memref<2x2x22x22xf32, #tpu.memory_space<vmem>>, vector<1x2x1x16xf32>,
    %137 = vector.extract_strided_slice %4 {offsets = [0, 240], sizes = [2, 16], strides = [1, 1]} : vector<2x256xf32> to vector<2x16xf32>
    %c1_130 = arith.constant 1 : index
    %c0_131 = arith.constant 0 : index
    %c18_132 = arith.constant 18 : index
    %c3_133 = arith.constant 3 : index
    %138 = vector.load %arg4[%c1_130, %c0_131, %c18_132, %c3_133] : memref<2x2x22x22xf32, #tpu.memory_space<vmem>>, vector<1x2x1x16xf32>
    %139 = vector.shape_cast %138 : vector<1x2x1x16xf32> to vector<2x16xf32>
    %140 = vector.shape_cast %137 : vector<2x16xf32> to vector<1x2x1x16xf32>
    tpu.vector_store %arg4[%c1_130, %c0_131, %c18_132, %c3_133], %140 {strides = array<i32>} : memref<2x2x22x22xf32, #tpu.memory_space<vmem>>, vector<1x2x1x16xf32>,
    %c0_134 = arith.constant 0 : index
    %c0_135 = arith.constant 0 : index
    %c0_136 = arith.constant 0 : index
    %c0_137 = arith.constant 0 : index
    %141 = vector.load %arg4[%c0_134, %c0_135, %c0_136, %c0_137] : memref<2x2x22x22xf32, #tpu.memory_space<vmem>>, vector<1x2x22x16xf32>
    %142 = vector.shape_cast %141 : vector<1x2x22x16xf32> to vector<2x22x16xf32>
    %143 = vector.extract_strided_slice %142 {offsets = [0, 0, 0], sizes = [2, 16, 16], strides = [1, 1, 1]} : vector<2x22x16xf32> to vector<2x16x16xf32>
    %c0_138 = arith.constant 0 : index
    %144 = memref.load %arg2[%c0_138] : memref<99xf32, #tpu.memory_space<smem>>
    %145 = vector.broadcast %144 : f32 to vector<2x16x16xf32>
    %146 = arith.mulf %143, %145 : vector<2x16x16xf32>
    %147 = vector.extract_strided_slice %142 {offsets = [0, 1, 0], sizes = [2, 16, 16], strides = [1, 1, 1]} : vector<2x22x16xf32> to vector<2x16x16xf32>
    %c7_139 = arith.constant 7 : index
    %148 = memref.load %arg2[%c7_139] : memref<99xf32, #tpu.memory_space<smem>>
    %149 = vector.broadcast %148 : f32 to vector<2x16x16xf32>
    %150 = arith.mulf %147, %149 : vector<2x16x16xf32>
    %151 = arith.addf %146, %150 : vector<2x16x16xf32>
    %152 = vector.extract_strided_slice %142 {offsets = [0, 2, 0], sizes = [2, 16, 16], strides = [1, 1, 1]} : vector<2x22x16xf32> to vector<2x16x16xf32>
    %c14_140 = arith.constant 14 : index
    %153 = memref.load %arg2[%c14_140] : memref<99xf32, #tpu.memory_space<smem>>
    %154 = vector.broadcast %153 : f32 to vector<2x16x16xf32>
    %155 = arith.mulf %152, %154 : vector<2x16x16xf32>
    %156 = arith.addf %151, %155 : vector<2x16x16xf32>
    %157 = vector.extract_strided_slice %142 {offsets = [0, 3, 0], sizes = [2, 16, 16], strides = [1, 1, 1]} : vector<2x22x16xf32> to vector<2x16x16xf32>
    %c21 = arith.constant 21 : index
    %158 = memref.load %arg2[%c21] : memref<99xf32, #tpu.memory_space<smem>>
    %159 = vector.broadcast %158 : f32 to vector<2x16x16xf32>
    %160 = arith.mulf %157, %159 : vector<2x16x16xf32>
    %161 = arith.addf %156, %160 : vector<2x16x16xf32>
    %162 = vector.extract_strided_slice %142 {offsets = [0, 4, 0], sizes = [2, 16, 16], strides = [1, 1, 1]} : vector<2x22x16xf32> to vector<2x16x16xf32>
    %c28 = arith.constant 28 : index
    %163 = memref.load %arg2[%c28] : memref<99xf32, #tpu.memory_space<smem>>
    %164 = vector.broadcast %163 : f32 to vector<2x16x16xf32>
    %165 = arith.mulf %162, %164 : vector<2x16x16xf32>
    %166 = arith.addf %161, %165 : vector<2x16x16xf32>
    %167 = vector.extract_strided_slice %142 {offsets = [0, 5, 0], sizes = [2, 16, 16], strides = [1, 1, 1]} : vector<2x22x16xf32> to vector<2x16x16xf32>
    %c35 = arith.constant 35 : index
    %168 = memref.load %arg2[%c35] : memref<99xf32, #tpu.memory_space<smem>>
    %169 = vector.broadcast %168 : f32 to vector<2x16x16xf32>
    %170 = arith.mulf %167, %169 : vector<2x16x16xf32>
    %171 = arith.addf %166, %170 : vector<2x16x16xf32>
    %172 = vector.extract_strided_slice %142 {offsets = [0, 6, 0], sizes = [2, 16, 16], strides = [1, 1, 1]} : vector<2x22x16xf32> to vector<2x16x16xf32>
    %c42 = arith.constant 42 : index
    %173 = memref.load %arg2[%c42] : memref<99xf32, #tpu.memory_space<smem>>
    %174 = vector.broadcast %173 : f32 to vector<2x16x16xf32>
    %175 = arith.mulf %172, %174 : vector<2x16x16xf32>
    %176 = arith.addf %171, %175 : vector<2x16x16xf32>
    %c0_141 = arith.constant 0 : index
    %c0_142 = arith.constant 0 : index
    %c0_143 = arith.constant 0 : index
    %c1_144 = arith.constant 1 : index
    %177 = vector.load %arg4[%c0_141, %c0_142, %c0_143, %c1_144] : memref<2x2x22x22xf32, #tpu.memory_space<vmem>>, vector<1x2x22x16xf32>
    %178 = vector.shape_cast %177 : vector<1x2x22x16xf32> to vector<2x22x16xf32>
    %179 = vector.extract_strided_slice %178 {offsets = [0, 0, 0], sizes = [2, 16, 16], strides = [1, 1, 1]} : vector<2x22x16xf32> to vector<2x16x16xf32>
    %c1_145 = arith.constant 1 : index
    %180 = memref.load %arg2[%c1_145] : memref<99xf32, #tpu.memory_space<smem>>
    %181 = vector.broadcast %180 : f32 to vector<2x16x16xf32>
    %182 = arith.mulf %179, %181 : vector<2x16x16xf32>
    %183 = vector.extract_strided_slice %178 {offsets = [0, 1, 0], sizes = [2, 16, 16], strides = [1, 1, 1]} : vector<2x22x16xf32> to vector<2x16x16xf32>
    %c8_146 = arith.constant 8 : index
    %184 = memref.load %arg2[%c8_146] : memref<99xf32, #tpu.memory_space<smem>>
    %185 = vector.broadcast %184 : f32 to vector<2x16x16xf32>
    %186 = arith.mulf %183, %185 : vector<2x16x16xf32>
    %187 = arith.addf %182, %186 : vector<2x16x16xf32>
    %188 = vector.extract_strided_slice %178 {offsets = [0, 2, 0], sizes = [2, 16, 16], strides = [1, 1, 1]} : vector<2x22x16xf32> to vector<2x16x16xf32>
    %c15_147 = arith.constant 15 : index
    %189 = memref.load %arg2[%c15_147] : memref<99xf32, #tpu.memory_space<smem>>
    %190 = vector.broadcast %189 : f32 to vector<2x16x16xf32>
    %191 = arith.mulf %188, %190 : vector<2x16x16xf32>
    %192 = arith.addf %187, %191 : vector<2x16x16xf32>
    %193 = vector.extract_strided_slice %178 {offsets = [0, 3, 0], sizes = [2, 16, 16], strides = [1, 1, 1]} : vector<2x22x16xf32> to vector<2x16x16xf32>
    %c22 = arith.constant 22 : index
    %194 = memref.load %arg2[%c22] : memref<99xf32, #tpu.memory_space<smem>>
    %195 = vector.broadcast %194 : f32 to vector<2x16x16xf32>
    %196 = arith.mulf %193, %195 : vector<2x16x16xf32>
    %197 = arith.addf %192, %196 : vector<2x16x16xf32>
    %198 = vector.extract_strided_slice %178 {offsets = [0, 4, 0], sizes = [2, 16, 16], strides = [1, 1, 1]} : vector<2x22x16xf32> to vector<2x16x16xf32>
    %c29 = arith.constant 29 : index
    %199 = memref.load %arg2[%c29] : memref<99xf32, #tpu.memory_space<smem>>
    %200 = vector.broadcast %199 : f32 to vector<2x16x16xf32>
    %201 = arith.mulf %198, %200 : vector<2x16x16xf32>
    %202 = arith.addf %197, %201 : vector<2x16x16xf32>
    %203 = vector.extract_strided_slice %178 {offsets = [0, 5, 0], sizes = [2, 16, 16], strides = [1, 1, 1]} : vector<2x22x16xf32> to vector<2x16x16xf32>
    %c36 = arith.constant 36 : index
    %204 = memref.load %arg2[%c36] : memref<99xf32, #tpu.memory_space<smem>>
    %205 = vector.broadcast %204 : f32 to vector<2x16x16xf32>
    %206 = arith.mulf %203, %205 : vector<2x16x16xf32>
    %207 = arith.addf %202, %206 : vector<2x16x16xf32>
    %208 = vector.extract_strided_slice %178 {offsets = [0, 6, 0], sizes = [2, 16, 16], strides = [1, 1, 1]} : vector<2x22x16xf32> to vector<2x16x16xf32>
    %c43 = arith.constant 43 : index
    %209 = memref.load %arg2[%c43] : memref<99xf32, #tpu.memory_space<smem>>
    %210 = vector.broadcast %209 : f32 to vector<2x16x16xf32>
    %211 = arith.mulf %208, %210 : vector<2x16x16xf32>
    %212 = arith.addf %207, %211 : vector<2x16x16xf32>
    %c0_148 = arith.constant 0 : index
    %c0_149 = arith.constant 0 : index
    %c0_150 = arith.constant 0 : index
    %c2 = arith.constant 2 : index
    %213 = vector.load %arg4[%c0_148, %c0_149, %c0_150, %c2] : memref<2x2x22x22xf32, #tpu.memory_space<vmem>>, vector<1x2x22x16xf32>
    %214 = vector.shape_cast %213 : vector<1x2x22x16xf32> to vector<2x22x16xf32>
    %215 = vector.extract_strided_slice %214 {offsets = [0, 0, 0], sizes = [2, 16, 16], strides = [1, 1, 1]} : vector<2x22x16xf32> to vector<2x16x16xf32>
    %c2_151 = arith.constant 2 : index
    %216 = memref.load %arg2[%c2_151] : memref<99xf32, #tpu.memory_space<smem>>
    %217 = vector.broadcast %216 : f32 to vector<2x16x16xf32>
    %218 = arith.mulf %215, %217 : vector<2x16x16xf32>
    %219 = vector.extract_strided_slice %214 {offsets = [0, 1, 0], sizes = [2, 16, 16], strides = [1, 1, 1]} : vector<2x22x16xf32> to vector<2x16x16xf32>
    %c9_152 = arith.constant 9 : index
    %220 = memref.load %arg2[%c9_152] : memref<99xf32, #tpu.memory_space<smem>>
    %221 = vector.broadcast %220 : f32 to vector<2x16x16xf32>
    %222 = arith.mulf %219, %221 : vector<2x16x16xf32>
    %223 = arith.addf %218, %222 : vector<2x16x16xf32>
    %224 = vector.extract_strided_slice %214 {offsets = [0, 2, 0], sizes = [2, 16, 16], strides = [1, 1, 1]} : vector<2x22x16xf32> to vector<2x16x16xf32>
    %c16_153 = arith.constant 16 : index
    %225 = memref.load %arg2[%c16_153] : memref<99xf32, #tpu.memory_space<smem>>
    %226 = vector.broadcast %225 : f32 to vector<2x16x16xf32>
    %227 = arith.mulf %224, %226 : vector<2x16x16xf32>
    %228 = arith.addf %223, %227 : vector<2x16x16xf32>
    %229 = vector.extract_strided_slice %214 {offsets = [0, 3, 0], sizes = [2, 16, 16], strides = [1, 1, 1]} : vector<2x22x16xf32> to vector<2x16x16xf32>
    %c23 = arith.constant 23 : index
    %230 = memref.load %arg2[%c23] : memref<99xf32, #tpu.memory_space<smem>>
    %231 = vector.broadcast %230 : f32 to vector<2x16x16xf32>
    %232 = arith.mulf %229, %231 : vector<2x16x16xf32>
    %233 = arith.addf %228, %232 : vector<2x16x16xf32>
    %234 = vector.extract_strided_slice %214 {offsets = [0, 4, 0], sizes = [2, 16, 16], strides = [1, 1, 1]} : vector<2x22x16xf32> to vector<2x16x16xf32>
    %c30 = arith.constant 30 : index
    %235 = memref.load %arg2[%c30] : memref<99xf32, #tpu.memory_space<smem>>
    %236 = vector.broadcast %235 : f32 to vector<2x16x16xf32>
    %237 = arith.mulf %234, %236 : vector<2x16x16xf32>
    %238 = arith.addf %233, %237 : vector<2x16x16xf32>
    %239 = vector.extract_strided_slice %214 {offsets = [0, 5, 0], sizes = [2, 16, 16], strides = [1, 1, 1]} : vector<2x22x16xf32> to vector<2x16x16xf32>
    %c37 = arith.constant 37 : index
    %240 = memref.load %arg2[%c37] : memref<99xf32, #tpu.memory_space<smem>>
    %241 = vector.broadcast %240 : f32 to vector<2x16x16xf32>
    %242 = arith.mulf %239, %241 : vector<2x16x16xf32>
    %243 = arith.addf %238, %242 : vector<2x16x16xf32>
    %244 = vector.extract_strided_slice %214 {offsets = [0, 6, 0], sizes = [2, 16, 16], strides = [1, 1, 1]} : vector<2x22x16xf32> to vector<2x16x16xf32>
    %c44 = arith.constant 44 : index
    %245 = memref.load %arg2[%c44] : memref<99xf32, #tpu.memory_space<smem>>
    %246 = vector.broadcast %245 : f32 to vector<2x16x16xf32>
    %247 = arith.mulf %244, %246 : vector<2x16x16xf32>
    %248 = arith.addf %243, %247 : vector<2x16x16xf32>
    %c0_154 = arith.constant 0 : index
    %c0_155 = arith.constant 0 : index
    %c0_156 = arith.constant 0 : index
    %c3_157 = arith.constant 3 : index
    %249 = vector.load %arg4[%c0_154, %c0_155, %c0_156, %c3_157] : memref<2x2x22x22xf32, #tpu.memory_space<vmem>>, vector<1x2x22x16xf32>
    %250 = vector.shape_cast %249 : vector<1x2x22x16xf32> to vector<2x22x16xf32>
    %251 = vector.extract_strided_slice %250 {offsets = [0, 0, 0], sizes = [2, 16, 16], strides = [1, 1, 1]} : vector<2x22x16xf32> to vector<2x16x16xf32>
    %c3_158 = arith.constant 3 : index
    %252 = memref.load %arg2[%c3_158] : memref<99xf32, #tpu.memory_space<smem>>
    %253 = vector.broadcast %252 : f32 to vector<2x16x16xf32>
    %254 = arith.mulf %251, %253 : vector<2x16x16xf32>
    %255 = vector.extract_strided_slice %250 {offsets = [0, 1, 0], sizes = [2, 16, 16], strides = [1, 1, 1]} : vector<2x22x16xf32> to vector<2x16x16xf32>
    %c10_159 = arith.constant 10 : index
    %256 = memref.load %arg2[%c10_159] : memref<99xf32, #tpu.memory_space<smem>>
    %257 = vector.broadcast %256 : f32 to vector<2x16x16xf32>
    %258 = arith.mulf %255, %257 : vector<2x16x16xf32>
    %259 = arith.addf %254, %258 : vector<2x16x16xf32>
    %260 = vector.extract_strided_slice %250 {offsets = [0, 2, 0], sizes = [2, 16, 16], strides = [1, 1, 1]} : vector<2x22x16xf32> to vector<2x16x16xf32>
    %c17_160 = arith.constant 17 : index
    %261 = memref.load %arg2[%c17_160] : memref<99xf32, #tpu.memory_space<smem>>
    %262 = vector.broadcast %261 : f32 to vector<2x16x16xf32>
    %263 = arith.mulf %260, %262 : vector<2x16x16xf32>
    %264 = arith.addf %259, %263 : vector<2x16x16xf32>
    %265 = vector.extract_strided_slice %250 {offsets = [0, 3, 0], sizes = [2, 16, 16], strides = [1, 1, 1]} : vector<2x22x16xf32> to vector<2x16x16xf32>
    %c24 = arith.constant 24 : index
    %266 = memref.load %arg2[%c24] : memref<99xf32, #tpu.memory_space<smem>>
    %267 = vector.broadcast %266 : f32 to vector<2x16x16xf32>
    %268 = arith.mulf %265, %267 : vector<2x16x16xf32>
    %269 = arith.addf %264, %268 : vector<2x16x16xf32>
    %270 = vector.extract_strided_slice %250 {offsets = [0, 4, 0], sizes = [2, 16, 16], strides = [1, 1, 1]} : vector<2x22x16xf32> to vector<2x16x16xf32>
    %c31 = arith.constant 31 : index
    %271 = memref.load %arg2[%c31] : memref<99xf32, #tpu.memory_space<smem>>
    %272 = vector.broadcast %271 : f32 to vector<2x16x16xf32>
    %273 = arith.mulf %270, %272 : vector<2x16x16xf32>
    %274 = arith.addf %269, %273 : vector<2x16x16xf32>
    %275 = vector.extract_strided_slice %250 {offsets = [0, 5, 0], sizes = [2, 16, 16], strides = [1, 1, 1]} : vector<2x22x16xf32> to vector<2x16x16xf32>
    %c38 = arith.constant 38 : index
    %276 = memref.load %arg2[%c38] : memref<99xf32, #tpu.memory_space<smem>>
    %277 = vector.broadcast %276 : f32 to vector<2x16x16xf32>
    %278 = arith.mulf %275, %277 : vector<2x16x16xf32>
    %279 = arith.addf %274, %278 : vector<2x16x16xf32>
    %280 = vector.extract_strided_slice %250 {offsets = [0, 6, 0], sizes = [2, 16, 16], strides = [1, 1, 1]} : vector<2x22x16xf32> to vector<2x16x16xf32>
    %c45 = arith.constant 45 : index
    %281 = memref.load %arg2[%c45] : memref<99xf32, #tpu.memory_space<smem>>
    %282 = vector.broadcast %281 : f32 to vector<2x16x16xf32>
    %283 = arith.mulf %280, %282 : vector<2x16x16xf32>
    %284 = arith.addf %279, %283 : vector<2x16x16xf32>
    %c0_161 = arith.constant 0 : index
    %c0_162 = arith.constant 0 : index
    %c0_163 = arith.constant 0 : index
    %c4_164 = arith.constant 4 : index
    %285 = vector.load %arg4[%c0_161, %c0_162, %c0_163, %c4_164] : memref<2x2x22x22xf32, #tpu.memory_space<vmem>>, vector<1x2x22x16xf32>
    %286 = vector.shape_cast %285 : vector<1x2x22x16xf32> to vector<2x22x16xf32>
    %287 = vector.extract_strided_slice %286 {offsets = [0, 0, 0], sizes = [2, 16, 16], strides = [1, 1, 1]} : vector<2x22x16xf32> to vector<2x16x16xf32>
    %c4_165 = arith.constant 4 : index
    %288 = memref.load %arg2[%c4_165] : memref<99xf32, #tpu.memory_space<smem>>
    %289 = vector.broadcast %288 : f32 to vector<2x16x16xf32>
    %290 = arith.mulf %287, %289 : vector<2x16x16xf32>
    %291 = vector.extract_strided_slice %286 {offsets = [0, 1, 0], sizes = [2, 16, 16], strides = [1, 1, 1]} : vector<2x22x16xf32> to vector<2x16x16xf32>
    %c11_166 = arith.constant 11 : index
    %292 = memref.load %arg2[%c11_166] : memref<99xf32, #tpu.memory_space<smem>>
    %293 = vector.broadcast %292 : f32 to vector<2x16x16xf32>
    %294 = arith.mulf %291, %293 : vector<2x16x16xf32>
    %295 = arith.addf %290, %294 : vector<2x16x16xf32>
    %296 = vector.extract_strided_slice %286 {offsets = [0, 2, 0], sizes = [2, 16, 16], strides = [1, 1, 1]} : vector<2x22x16xf32> to vector<2x16x16xf32>
    %c18_167 = arith.constant 18 : index
    %297 = memref.load %arg2[%c18_167] : memref<99xf32, #tpu.memory_space<smem>>
    %298 = vector.broadcast %297 : f32 to vector<2x16x16xf32>
    %299 = arith.mulf %296, %298 : vector<2x16x16xf32>
    %300 = arith.addf %295, %299 : vector<2x16x16xf32>
    %301 = vector.extract_strided_slice %286 {offsets = [0, 3, 0], sizes = [2, 16, 16], strides = [1, 1, 1]} : vector<2x22x16xf32> to vector<2x16x16xf32>
    %c25 = arith.constant 25 : index
    %302 = memref.load %arg2[%c25] : memref<99xf32, #tpu.memory_space<smem>>
    %303 = vector.broadcast %302 : f32 to vector<2x16x16xf32>
    %304 = arith.mulf %301, %303 : vector<2x16x16xf32>
    %305 = arith.addf %300, %304 : vector<2x16x16xf32>
    %306 = vector.extract_strided_slice %286 {offsets = [0, 4, 0], sizes = [2, 16, 16], strides = [1, 1, 1]} : vector<2x22x16xf32> to vector<2x16x16xf32>
    %c32 = arith.constant 32 : index
    %307 = memref.load %arg2[%c32] : memref<99xf32, #tpu.memory_space<smem>>
    %308 = vector.broadcast %307 : f32 to vector<2x16x16xf32>
    %309 = arith.mulf %306, %308 : vector<2x16x16xf32>
    %310 = arith.addf %305, %309 : vector<2x16x16xf32>
    %311 = vector.extract_strided_slice %286 {offsets = [0, 5, 0], sizes = [2, 16, 16], strides = [1, 1, 1]} : vector<2x22x16xf32> to vector<2x16x16xf32>
    %c39 = arith.constant 39 : index
    %312 = memref.load %arg2[%c39] : memref<99xf32, #tpu.memory_space<smem>>
    %313 = vector.broadcast %312 : f32 to vector<2x16x16xf32>
    %314 = arith.mulf %311, %313 : vector<2x16x16xf32>
    %315 = arith.addf %310, %314 : vector<2x16x16xf32>
    %316 = vector.extract_strided_slice %286 {offsets = [0, 6, 0], sizes = [2, 16, 16], strides = [1, 1, 1]} : vector<2x22x16xf32> to vector<2x16x16xf32>
    %c46 = arith.constant 46 : index
    %317 = memref.load %arg2[%c46] : memref<99xf32, #tpu.memory_space<smem>>
    %318 = vector.broadcast %317 : f32 to vector<2x16x16xf32>
    %319 = arith.mulf %316, %318 : vector<2x16x16xf32>
    %320 = arith.addf %315, %319 : vector<2x16x16xf32>
    %321 = arith.addf %176, %320 : vector<2x16x16xf32>
    %c0_168 = arith.constant 0 : index
    %c0_169 = arith.constant 0 : index
    %c0_170 = arith.constant 0 : index
    %c5_171 = arith.constant 5 : index
    %322 = vector.load %arg4[%c0_168, %c0_169, %c0_170, %c5_171] : memref<2x2x22x22xf32, #tpu.memory_space<vmem>>, vector<1x2x22x16xf32>
    %323 = vector.shape_cast %322 : vector<1x2x22x16xf32> to vector<2x22x16xf32>
    %324 = vector.extract_strided_slice %323 {offsets = [0, 0, 0], sizes = [2, 16, 16], strides = [1, 1, 1]} : vector<2x22x16xf32> to vector<2x16x16xf32>
    %c5_172 = arith.constant 5 : index
    %325 = memref.load %arg2[%c5_172] : memref<99xf32, #tpu.memory_space<smem>>
    %326 = vector.broadcast %325 : f32 to vector<2x16x16xf32>
    %327 = arith.mulf %324, %326 : vector<2x16x16xf32>
    %328 = vector.extract_strided_slice %323 {offsets = [0, 1, 0], sizes = [2, 16, 16], strides = [1, 1, 1]} : vector<2x22x16xf32> to vector<2x16x16xf32>
    %c12_173 = arith.constant 12 : index
    %329 = memref.load %arg2[%c12_173] : memref<99xf32, #tpu.memory_space<smem>>
    %330 = vector.broadcast %329 : f32 to vector<2x16x16xf32>
    %331 = arith.mulf %328, %330 : vector<2x16x16xf32>
    %332 = arith.addf %327, %331 : vector<2x16x16xf32>
    %333 = vector.extract_strided_slice %323 {offsets = [0, 2, 0], sizes = [2, 16, 16], strides = [1, 1, 1]} : vector<2x22x16xf32> to vector<2x16x16xf32>
    %c19_174 = arith.constant 19 : index
    %334 = memref.load %arg2[%c19_174] : memref<99xf32, #tpu.memory_space<smem>>
    %335 = vector.broadcast %334 : f32 to vector<2x16x16xf32>
    %336 = arith.mulf %333, %335 : vector<2x16x16xf32>
    %337 = arith.addf %332, %336 : vector<2x16x16xf32>
    %338 = vector.extract_strided_slice %323 {offsets = [0, 3, 0], sizes = [2, 16, 16], strides = [1, 1, 1]} : vector<2x22x16xf32> to vector<2x16x16xf32>
    %c26 = arith.constant 26 : index
    %339 = memref.load %arg2[%c26] : memref<99xf32, #tpu.memory_space<smem>>
    %340 = vector.broadcast %339 : f32 to vector<2x16x16xf32>
    %341 = arith.mulf %338, %340 : vector<2x16x16xf32>
    %342 = arith.addf %337, %341 : vector<2x16x16xf32>
    %343 = vector.extract_strided_slice %323 {offsets = [0, 4, 0], sizes = [2, 16, 16], strides = [1, 1, 1]} : vector<2x22x16xf32> to vector<2x16x16xf32>
    %c33 = arith.constant 33 : index
    %344 = memref.load %arg2[%c33] : memref<99xf32, #tpu.memory_space<smem>>
    %345 = vector.broadcast %344 : f32 to vector<2x16x16xf32>
    %346 = arith.mulf %343, %345 : vector<2x16x16xf32>
    %347 = arith.addf %342, %346 : vector<2x16x16xf32>
    %348 = vector.extract_strided_slice %323 {offsets = [0, 5, 0], sizes = [2, 16, 16], strides = [1, 1, 1]} : vector<2x22x16xf32> to vector<2x16x16xf32>
    %c40 = arith.constant 40 : index
    %349 = memref.load %arg2[%c40] : memref<99xf32, #tpu.memory_space<smem>>
    %350 = vector.broadcast %349 : f32 to vector<2x16x16xf32>
    %351 = arith.mulf %348, %350 : vector<2x16x16xf32>
    %352 = arith.addf %347, %351 : vector<2x16x16xf32>
    %353 = vector.extract_strided_slice %323 {offsets = [0, 6, 0], sizes = [2, 16, 16], strides = [1, 1, 1]} : vector<2x22x16xf32> to vector<2x16x16xf32>
    %c47 = arith.constant 47 : index
    %354 = memref.load %arg2[%c47] : memref<99xf32, #tpu.memory_space<smem>>
    %355 = vector.broadcast %354 : f32 to vector<2x16x16xf32>
    %356 = arith.mulf %353, %355 : vector<2x16x16xf32>
    %357 = arith.addf %352, %356 : vector<2x16x16xf32>
    %358 = arith.addf %212, %357 : vector<2x16x16xf32>
    %c0_175 = arith.constant 0 : index
    %c0_176 = arith.constant 0 : index
    %c0_177 = arith.constant 0 : index
    %c6_178 = arith.constant 6 : index
    %359 = vector.load %arg4[%c0_175, %c0_176, %c0_177, %c6_178] : memref<2x2x22x22xf32, #tpu.memory_space<vmem>>, vector<1x2x22x16xf32>
    %360 = vector.shape_cast %359 : vector<1x2x22x16xf32> to vector<2x22x16xf32>
    %361 = vector.extract_strided_slice %360 {offsets = [0, 0, 0], sizes = [2, 16, 16], strides = [1, 1, 1]} : vector<2x22x16xf32> to vector<2x16x16xf32>
    %c6_179 = arith.constant 6 : index
    %362 = memref.load %arg2[%c6_179] : memref<99xf32, #tpu.memory_space<smem>>
    %363 = vector.broadcast %362 : f32 to vector<2x16x16xf32>
    %364 = arith.mulf %361, %363 : vector<2x16x16xf32>
    %365 = vector.extract_strided_slice %360 {offsets = [0, 1, 0], sizes = [2, 16, 16], strides = [1, 1, 1]} : vector<2x22x16xf32> to vector<2x16x16xf32>
    %c13_180 = arith.constant 13 : index
    %366 = memref.load %arg2[%c13_180] : memref<99xf32, #tpu.memory_space<smem>>
    %367 = vector.broadcast %366 : f32 to vector<2x16x16xf32>
    %368 = arith.mulf %365, %367 : vector<2x16x16xf32>
    %369 = arith.addf %364, %368 : vector<2x16x16xf32>
    %370 = vector.extract_strided_slice %360 {offsets = [0, 2, 0], sizes = [2, 16, 16], strides = [1, 1, 1]} : vector<2x22x16xf32> to vector<2x16x16xf32>
    %c20 = arith.constant 20 : index
    %371 = memref.load %arg2[%c20] : memref<99xf32, #tpu.memory_space<smem>>
    %372 = vector.broadcast %371 : f32 to vector<2x16x16xf32>
    %373 = arith.mulf %370, %372 : vector<2x16x16xf32>
    %374 = arith.addf %369, %373 : vector<2x16x16xf32>
    %375 = vector.extract_strided_slice %360 {offsets = [0, 3, 0], sizes = [2, 16, 16], strides = [1, 1, 1]} : vector<2x22x16xf32> to vector<2x16x16xf32>
    %c27 = arith.constant 27 : index
    %376 = memref.load %arg2[%c27] : memref<99xf32, #tpu.memory_space<smem>>
    %377 = vector.broadcast %376 : f32 to vector<2x16x16xf32>
    %378 = arith.mulf %375, %377 : vector<2x16x16xf32>
    %379 = arith.addf %374, %378 : vector<2x16x16xf32>
    %380 = vector.extract_strided_slice %360 {offsets = [0, 4, 0], sizes = [2, 16, 16], strides = [1, 1, 1]} : vector<2x22x16xf32> to vector<2x16x16xf32>
    %c34 = arith.constant 34 : index
    %381 = memref.load %arg2[%c34] : memref<99xf32, #tpu.memory_space<smem>>
    %382 = vector.broadcast %381 : f32 to vector<2x16x16xf32>
    %383 = arith.mulf %380, %382 : vector<2x16x16xf32>
    %384 = arith.addf %379, %383 : vector<2x16x16xf32>
    %385 = vector.extract_strided_slice %360 {offsets = [0, 5, 0], sizes = [2, 16, 16], strides = [1, 1, 1]} : vector<2x22x16xf32> to vector<2x16x16xf32>
    %c41 = arith.constant 41 : index
    %386 = memref.load %arg2[%c41] : memref<99xf32, #tpu.memory_space<smem>>
    %387 = vector.broadcast %386 : f32 to vector<2x16x16xf32>
    %388 = arith.mulf %385, %387 : vector<2x16x16xf32>
    %389 = arith.addf %384, %388 : vector<2x16x16xf32>
    %390 = vector.extract_strided_slice %360 {offsets = [0, 6, 0], sizes = [2, 16, 16], strides = [1, 1, 1]} : vector<2x22x16xf32> to vector<2x16x16xf32>
    %c48 = arith.constant 48 : index
    %391 = memref.load %arg2[%c48] : memref<99xf32, #tpu.memory_space<smem>>
    %392 = vector.broadcast %391 : f32 to vector<2x16x16xf32>
    %393 = arith.mulf %390, %392 : vector<2x16x16xf32>
    %394 = arith.addf %389, %393 : vector<2x16x16xf32>
    %395 = arith.addf %248, %394 : vector<2x16x16xf32>
    %c1_181 = arith.constant 1 : index
    %c0_182 = arith.constant 0 : index
    %c0_183 = arith.constant 0 : index
    %c0_184 = arith.constant 0 : index
    %396 = vector.load %arg4[%c1_181, %c0_182, %c0_183, %c0_184] : memref<2x2x22x22xf32, #tpu.memory_space<vmem>>, vector<1x2x22x16xf32>
    %397 = vector.shape_cast %396 : vector<1x2x22x16xf32> to vector<2x22x16xf32>
    %398 = vector.extract_strided_slice %397 {offsets = [0, 0, 0], sizes = [2, 16, 16], strides = [1, 1, 1]} : vector<2x22x16xf32> to vector<2x16x16xf32>
    %c49 = arith.constant 49 : index
    %399 = memref.load %arg2[%c49] : memref<99xf32, #tpu.memory_space<smem>>
    %400 = vector.broadcast %399 : f32 to vector<2x16x16xf32>
    %401 = arith.mulf %398, %400 : vector<2x16x16xf32>
    %402 = vector.extract_strided_slice %397 {offsets = [0, 1, 0], sizes = [2, 16, 16], strides = [1, 1, 1]} : vector<2x22x16xf32> to vector<2x16x16xf32>
    %c56 = arith.constant 56 : index
    %403 = memref.load %arg2[%c56] : memref<99xf32, #tpu.memory_space<smem>>
    %404 = vector.broadcast %403 : f32 to vector<2x16x16xf32>
    %405 = arith.mulf %402, %404 : vector<2x16x16xf32>
    %406 = arith.addf %401, %405 : vector<2x16x16xf32>
    %407 = vector.extract_strided_slice %397 {offsets = [0, 2, 0], sizes = [2, 16, 16], strides = [1, 1, 1]} : vector<2x22x16xf32> to vector<2x16x16xf32>
    %c63 = arith.constant 63 : index
    %408 = memref.load %arg2[%c63] : memref<99xf32, #tpu.memory_space<smem>>
    %409 = vector.broadcast %408 : f32 to vector<2x16x16xf32>
    %410 = arith.mulf %407, %409 : vector<2x16x16xf32>
    %411 = arith.addf %406, %410 : vector<2x16x16xf32>
    %412 = vector.extract_strided_slice %397 {offsets = [0, 3, 0], sizes = [2, 16, 16], strides = [1, 1, 1]} : vector<2x22x16xf32> to vector<2x16x16xf32>
    %c70 = arith.constant 70 : index
    %413 = memref.load %arg2[%c70] : memref<99xf32, #tpu.memory_space<smem>>
    %414 = vector.broadcast %413 : f32 to vector<2x16x16xf32>
    %415 = arith.mulf %412, %414 : vector<2x16x16xf32>
    %416 = arith.addf %411, %415 : vector<2x16x16xf32>
    %417 = vector.extract_strided_slice %397 {offsets = [0, 4, 0], sizes = [2, 16, 16], strides = [1, 1, 1]} : vector<2x22x16xf32> to vector<2x16x16xf32>
    %c77 = arith.constant 77 : index
    %418 = memref.load %arg2[%c77] : memref<99xf32, #tpu.memory_space<smem>>
    %419 = vector.broadcast %418 : f32 to vector<2x16x16xf32>
    %420 = arith.mulf %417, %419 : vector<2x16x16xf32>
    %421 = arith.addf %416, %420 : vector<2x16x16xf32>
    %422 = vector.extract_strided_slice %397 {offsets = [0, 5, 0], sizes = [2, 16, 16], strides = [1, 1, 1]} : vector<2x22x16xf32> to vector<2x16x16xf32>
    %c84 = arith.constant 84 : index
    %423 = memref.load %arg2[%c84] : memref<99xf32, #tpu.memory_space<smem>>
    %424 = vector.broadcast %423 : f32 to vector<2x16x16xf32>
    %425 = arith.mulf %422, %424 : vector<2x16x16xf32>
    %426 = arith.addf %421, %425 : vector<2x16x16xf32>
    %427 = vector.extract_strided_slice %397 {offsets = [0, 6, 0], sizes = [2, 16, 16], strides = [1, 1, 1]} : vector<2x22x16xf32> to vector<2x16x16xf32>
    %c91 = arith.constant 91 : index
    %428 = memref.load %arg2[%c91] : memref<99xf32, #tpu.memory_space<smem>>
    %429 = vector.broadcast %428 : f32 to vector<2x16x16xf32>
    %430 = arith.mulf %427, %429 : vector<2x16x16xf32>
    %431 = arith.addf %426, %430 : vector<2x16x16xf32>
    %432 = arith.addf %284, %431 : vector<2x16x16xf32>
    %c1_185 = arith.constant 1 : index
    %c0_186 = arith.constant 0 : index
    %c0_187 = arith.constant 0 : index
    %c1_188 = arith.constant 1 : index
    %433 = vector.load %arg4[%c1_185, %c0_186, %c0_187, %c1_188] : memref<2x2x22x22xf32, #tpu.memory_space<vmem>>, vector<1x2x22x16xf32>
    %434 = vector.shape_cast %433 : vector<1x2x22x16xf32> to vector<2x22x16xf32>
    %435 = vector.extract_strided_slice %434 {offsets = [0, 0, 0], sizes = [2, 16, 16], strides = [1, 1, 1]} : vector<2x22x16xf32> to vector<2x16x16xf32>
    %c50 = arith.constant 50 : index
    %436 = memref.load %arg2[%c50] : memref<99xf32, #tpu.memory_space<smem>>
    %437 = vector.broadcast %436 : f32 to vector<2x16x16xf32>
    %438 = arith.mulf %435, %437 : vector<2x16x16xf32>
    %439 = vector.extract_strided_slice %434 {offsets = [0, 1, 0], sizes = [2, 16, 16], strides = [1, 1, 1]} : vector<2x22x16xf32> to vector<2x16x16xf32>
    %c57 = arith.constant 57 : index
    %440 = memref.load %arg2[%c57] : memref<99xf32, #tpu.memory_space<smem>>
    %441 = vector.broadcast %440 : f32 to vector<2x16x16xf32>
    %442 = arith.mulf %439, %441 : vector<2x16x16xf32>
    %443 = arith.addf %438, %442 : vector<2x16x16xf32>
    %444 = vector.extract_strided_slice %434 {offsets = [0, 2, 0], sizes = [2, 16, 16], strides = [1, 1, 1]} : vector<2x22x16xf32> to vector<2x16x16xf32>
    %c64 = arith.constant 64 : index
    %445 = memref.load %arg2[%c64] : memref<99xf32, #tpu.memory_space<smem>>
    %446 = vector.broadcast %445 : f32 to vector<2x16x16xf32>
    %447 = arith.mulf %444, %446 : vector<2x16x16xf32>
    %448 = arith.addf %443, %447 : vector<2x16x16xf32>
    %449 = vector.extract_strided_slice %434 {offsets = [0, 3, 0], sizes = [2, 16, 16], strides = [1, 1, 1]} : vector<2x22x16xf32> to vector<2x16x16xf32>
    %c71 = arith.constant 71 : index
    %450 = memref.load %arg2[%c71] : memref<99xf32, #tpu.memory_space<smem>>
    %451 = vector.broadcast %450 : f32 to vector<2x16x16xf32>
    %452 = arith.mulf %449, %451 : vector<2x16x16xf32>
    %453 = arith.addf %448, %452 : vector<2x16x16xf32>
    %454 = vector.extract_strided_slice %434 {offsets = [0, 4, 0], sizes = [2, 16, 16], strides = [1, 1, 1]} : vector<2x22x16xf32> to vector<2x16x16xf32>
    %c78 = arith.constant 78 : index
    %455 = memref.load %arg2[%c78] : memref<99xf32, #tpu.memory_space<smem>>
    %456 = vector.broadcast %455 : f32 to vector<2x16x16xf32>
    %457 = arith.mulf %454, %456 : vector<2x16x16xf32>
    %458 = arith.addf %453, %457 : vector<2x16x16xf32>
    %459 = vector.extract_strided_slice %434 {offsets = [0, 5, 0], sizes = [2, 16, 16], strides = [1, 1, 1]} : vector<2x22x16xf32> to vector<2x16x16xf32>
    %c85 = arith.constant 85 : index
    %460 = memref.load %arg2[%c85] : memref<99xf32, #tpu.memory_space<smem>>
    %461 = vector.broadcast %460 : f32 to vector<2x16x16xf32>
    %462 = arith.mulf %459, %461 : vector<2x16x16xf32>
    %463 = arith.addf %458, %462 : vector<2x16x16xf32>
    %464 = vector.extract_strided_slice %434 {offsets = [0, 6, 0], sizes = [2, 16, 16], strides = [1, 1, 1]} : vector<2x22x16xf32> to vector<2x16x16xf32>
    %c92 = arith.constant 92 : index
    %465 = memref.load %arg2[%c92] : memref<99xf32, #tpu.memory_space<smem>>
    %466 = vector.broadcast %465 : f32 to vector<2x16x16xf32>
    %467 = arith.mulf %464, %466 : vector<2x16x16xf32>
    %468 = arith.addf %463, %467 : vector<2x16x16xf32>
    %469 = arith.addf %321, %468 : vector<2x16x16xf32>
    %c1_189 = arith.constant 1 : index
    %c0_190 = arith.constant 0 : index
    %c0_191 = arith.constant 0 : index
    %c2_192 = arith.constant 2 : index
    %470 = vector.load %arg4[%c1_189, %c0_190, %c0_191, %c2_192] : memref<2x2x22x22xf32, #tpu.memory_space<vmem>>, vector<1x2x22x16xf32>
    %471 = vector.shape_cast %470 : vector<1x2x22x16xf32> to vector<2x22x16xf32>
    %472 = vector.extract_strided_slice %471 {offsets = [0, 0, 0], sizes = [2, 16, 16], strides = [1, 1, 1]} : vector<2x22x16xf32> to vector<2x16x16xf32>
    %c51 = arith.constant 51 : index
    %473 = memref.load %arg2[%c51] : memref<99xf32, #tpu.memory_space<smem>>
    %474 = vector.broadcast %473 : f32 to vector<2x16x16xf32>
    %475 = arith.mulf %472, %474 : vector<2x16x16xf32>
    %476 = vector.extract_strided_slice %471 {offsets = [0, 1, 0], sizes = [2, 16, 16], strides = [1, 1, 1]} : vector<2x22x16xf32> to vector<2x16x16xf32>
    %c58 = arith.constant 58 : index
    %477 = memref.load %arg2[%c58] : memref<99xf32, #tpu.memory_space<smem>>
    %478 = vector.broadcast %477 : f32 to vector<2x16x16xf32>
    %479 = arith.mulf %476, %478 : vector<2x16x16xf32>
    %480 = arith.addf %475, %479 : vector<2x16x16xf32>
    %481 = vector.extract_strided_slice %471 {offsets = [0, 2, 0], sizes = [2, 16, 16], strides = [1, 1, 1]} : vector<2x22x16xf32> to vector<2x16x16xf32>
    %c65 = arith.constant 65 : index
    %482 = memref.load %arg2[%c65] : memref<99xf32, #tpu.memory_space<smem>>
    %483 = vector.broadcast %482 : f32 to vector<2x16x16xf32>
    %484 = arith.mulf %481, %483 : vector<2x16x16xf32>
    %485 = arith.addf %480, %484 : vector<2x16x16xf32>
    %486 = vector.extract_strided_slice %471 {offsets = [0, 3, 0], sizes = [2, 16, 16], strides = [1, 1, 1]} : vector<2x22x16xf32> to vector<2x16x16xf32>
    %c72 = arith.constant 72 : index
    %487 = memref.load %arg2[%c72] : memref<99xf32, #tpu.memory_space<smem>>
    %488 = vector.broadcast %487 : f32 to vector<2x16x16xf32>
    %489 = arith.mulf %486, %488 : vector<2x16x16xf32>
    %490 = arith.addf %485, %489 : vector<2x16x16xf32>
    %491 = vector.extract_strided_slice %471 {offsets = [0, 4, 0], sizes = [2, 16, 16], strides = [1, 1, 1]} : vector<2x22x16xf32> to vector<2x16x16xf32>
    %c79 = arith.constant 79 : index
    %492 = memref.load %arg2[%c79] : memref<99xf32, #tpu.memory_space<smem>>
    %493 = vector.broadcast %492 : f32 to vector<2x16x16xf32>
    %494 = arith.mulf %491, %493 : vector<2x16x16xf32>
    %495 = arith.addf %490, %494 : vector<2x16x16xf32>
    %496 = vector.extract_strided_slice %471 {offsets = [0, 5, 0], sizes = [2, 16, 16], strides = [1, 1, 1]} : vector<2x22x16xf32> to vector<2x16x16xf32>
    %c86 = arith.constant 86 : index
    %497 = memref.load %arg2[%c86] : memref<99xf32, #tpu.memory_space<smem>>
    %498 = vector.broadcast %497 : f32 to vector<2x16x16xf32>
    %499 = arith.mulf %496, %498 : vector<2x16x16xf32>
    %500 = arith.addf %495, %499 : vector<2x16x16xf32>
    %501 = vector.extract_strided_slice %471 {offsets = [0, 6, 0], sizes = [2, 16, 16], strides = [1, 1, 1]} : vector<2x22x16xf32> to vector<2x16x16xf32>
    %c93 = arith.constant 93 : index
    %502 = memref.load %arg2[%c93] : memref<99xf32, #tpu.memory_space<smem>>
    %503 = vector.broadcast %502 : f32 to vector<2x16x16xf32>
    %504 = arith.mulf %501, %503 : vector<2x16x16xf32>
    %505 = arith.addf %500, %504 : vector<2x16x16xf32>
    %506 = arith.addf %358, %505 : vector<2x16x16xf32>
    %c1_193 = arith.constant 1 : index
    %c0_194 = arith.constant 0 : index
    %c0_195 = arith.constant 0 : index
    %c3_196 = arith.constant 3 : index
    %507 = vector.load %arg4[%c1_193, %c0_194, %c0_195, %c3_196] : memref<2x2x22x22xf32, #tpu.memory_space<vmem>>, vector<1x2x22x16xf32>
    %508 = vector.shape_cast %507 : vector<1x2x22x16xf32> to vector<2x22x16xf32>
    %509 = vector.extract_strided_slice %508 {offsets = [0, 0, 0], sizes = [2, 16, 16], strides = [1, 1, 1]} : vector<2x22x16xf32> to vector<2x16x16xf32>
    %c52 = arith.constant 52 : index
    %510 = memref.load %arg2[%c52] : memref<99xf32, #tpu.memory_space<smem>>
    %511 = vector.broadcast %510 : f32 to vector<2x16x16xf32>
    %512 = arith.mulf %509, %511 : vector<2x16x16xf32>
    %513 = vector.extract_strided_slice %508 {offsets = [0, 1, 0], sizes = [2, 16, 16], strides = [1, 1, 1]} : vector<2x22x16xf32> to vector<2x16x16xf32>
    %c59 = arith.constant 59 : index
    %514 = memref.load %arg2[%c59] : memref<99xf32, #tpu.memory_space<smem>>
    %515 = vector.broadcast %514 : f32 to vector<2x16x16xf32>
    %516 = arith.mulf %513, %515 : vector<2x16x16xf32>
    %517 = arith.addf %512, %516 : vector<2x16x16xf32>
    %518 = vector.extract_strided_slice %508 {offsets = [0, 2, 0], sizes = [2, 16, 16], strides = [1, 1, 1]} : vector<2x22x16xf32> to vector<2x16x16xf32>
    %c66 = arith.constant 66 : index
    %519 = memref.load %arg2[%c66] : memref<99xf32, #tpu.memory_space<smem>>
    %520 = vector.broadcast %519 : f32 to vector<2x16x16xf32>
    %521 = arith.mulf %518, %520 : vector<2x16x16xf32>
    %522 = arith.addf %517, %521 : vector<2x16x16xf32>
    %523 = vector.extract_strided_slice %508 {offsets = [0, 3, 0], sizes = [2, 16, 16], strides = [1, 1, 1]} : vector<2x22x16xf32> to vector<2x16x16xf32>
    %c73 = arith.constant 73 : index
    %524 = memref.load %arg2[%c73] : memref<99xf32, #tpu.memory_space<smem>>
    %525 = vector.broadcast %524 : f32 to vector<2x16x16xf32>
    %526 = arith.mulf %523, %525 : vector<2x16x16xf32>
    %527 = arith.addf %522, %526 : vector<2x16x16xf32>
    %528 = vector.extract_strided_slice %508 {offsets = [0, 4, 0], sizes = [2, 16, 16], strides = [1, 1, 1]} : vector<2x22x16xf32> to vector<2x16x16xf32>
    %c80 = arith.constant 80 : index
    %529 = memref.load %arg2[%c80] : memref<99xf32, #tpu.memory_space<smem>>
    %530 = vector.broadcast %529 : f32 to vector<2x16x16xf32>
    %531 = arith.mulf %528, %530 : vector<2x16x16xf32>
    %532 = arith.addf %527, %531 : vector<2x16x16xf32>
    %533 = vector.extract_strided_slice %508 {offsets = [0, 5, 0], sizes = [2, 16, 16], strides = [1, 1, 1]} : vector<2x22x16xf32> to vector<2x16x16xf32>
    %c87 = arith.constant 87 : index
    %534 = memref.load %arg2[%c87] : memref<99xf32, #tpu.memory_space<smem>>
    %535 = vector.broadcast %534 : f32 to vector<2x16x16xf32>
    %536 = arith.mulf %533, %535 : vector<2x16x16xf32>
    %537 = arith.addf %532, %536 : vector<2x16x16xf32>
    %538 = vector.extract_strided_slice %508 {offsets = [0, 6, 0], sizes = [2, 16, 16], strides = [1, 1, 1]} : vector<2x22x16xf32> to vector<2x16x16xf32>
    %c94 = arith.constant 94 : index
    %539 = memref.load %arg2[%c94] : memref<99xf32, #tpu.memory_space<smem>>
    %540 = vector.broadcast %539 : f32 to vector<2x16x16xf32>
    %541 = arith.mulf %538, %540 : vector<2x16x16xf32>
    %542 = arith.addf %537, %541 : vector<2x16x16xf32>
    %543 = arith.addf %395, %542 : vector<2x16x16xf32>
    %c1_197 = arith.constant 1 : index
    %c0_198 = arith.constant 0 : index
    %c0_199 = arith.constant 0 : index
    %c4_200 = arith.constant 4 : index
    %544 = vector.load %arg4[%c1_197, %c0_198, %c0_199, %c4_200] : memref<2x2x22x22xf32, #tpu.memory_space<vmem>>, vector<1x2x22x16xf32>
    %545 = vector.shape_cast %544 : vector<1x2x22x16xf32> to vector<2x22x16xf32>
    %546 = vector.extract_strided_slice %545 {offsets = [0, 0, 0], sizes = [2, 16, 16], strides = [1, 1, 1]} : vector<2x22x16xf32> to vector<2x16x16xf32>
    %c53 = arith.constant 53 : index
    %547 = memref.load %arg2[%c53] : memref<99xf32, #tpu.memory_space<smem>>
    %548 = vector.broadcast %547 : f32 to vector<2x16x16xf32>
    %549 = arith.mulf %546, %548 : vector<2x16x16xf32>
    %550 = vector.extract_strided_slice %545 {offsets = [0, 1, 0], sizes = [2, 16, 16], strides = [1, 1, 1]} : vector<2x22x16xf32> to vector<2x16x16xf32>
    %c60 = arith.constant 60 : index
    %551 = memref.load %arg2[%c60] : memref<99xf32, #tpu.memory_space<smem>>
    %552 = vector.broadcast %551 : f32 to vector<2x16x16xf32>
    %553 = arith.mulf %550, %552 : vector<2x16x16xf32>
    %554 = arith.addf %549, %553 : vector<2x16x16xf32>
    %555 = vector.extract_strided_slice %545 {offsets = [0, 2, 0], sizes = [2, 16, 16], strides = [1, 1, 1]} : vector<2x22x16xf32> to vector<2x16x16xf32>
    %c67 = arith.constant 67 : index
    %556 = memref.load %arg2[%c67] : memref<99xf32, #tpu.memory_space<smem>>
    %557 = vector.broadcast %556 : f32 to vector<2x16x16xf32>
    %558 = arith.mulf %555, %557 : vector<2x16x16xf32>
    %559 = arith.addf %554, %558 : vector<2x16x16xf32>
    %560 = vector.extract_strided_slice %545 {offsets = [0, 3, 0], sizes = [2, 16, 16], strides = [1, 1, 1]} : vector<2x22x16xf32> to vector<2x16x16xf32>
    %c74 = arith.constant 74 : index
    %561 = memref.load %arg2[%c74] : memref<99xf32, #tpu.memory_space<smem>>
    %562 = vector.broadcast %561 : f32 to vector<2x16x16xf32>
    %563 = arith.mulf %560, %562 : vector<2x16x16xf32>
    %564 = arith.addf %559, %563 : vector<2x16x16xf32>
    %565 = vector.extract_strided_slice %545 {offsets = [0, 4, 0], sizes = [2, 16, 16], strides = [1, 1, 1]} : vector<2x22x16xf32> to vector<2x16x16xf32>
    %c81 = arith.constant 81 : index
    %566 = memref.load %arg2[%c81] : memref<99xf32, #tpu.memory_space<smem>>
    %567 = vector.broadcast %566 : f32 to vector<2x16x16xf32>
    %568 = arith.mulf %565, %567 : vector<2x16x16xf32>
    %569 = arith.addf %564, %568 : vector<2x16x16xf32>
    %570 = vector.extract_strided_slice %545 {offsets = [0, 5, 0], sizes = [2, 16, 16], strides = [1, 1, 1]} : vector<2x22x16xf32> to vector<2x16x16xf32>
    %c88 = arith.constant 88 : index
    %571 = memref.load %arg2[%c88] : memref<99xf32, #tpu.memory_space<smem>>
    %572 = vector.broadcast %571 : f32 to vector<2x16x16xf32>
    %573 = arith.mulf %570, %572 : vector<2x16x16xf32>
    %574 = arith.addf %569, %573 : vector<2x16x16xf32>
    %575 = vector.extract_strided_slice %545 {offsets = [0, 6, 0], sizes = [2, 16, 16], strides = [1, 1, 1]} : vector<2x22x16xf32> to vector<2x16x16xf32>
    %c95 = arith.constant 95 : index
    %576 = memref.load %arg2[%c95] : memref<99xf32, #tpu.memory_space<smem>>
    %577 = vector.broadcast %576 : f32 to vector<2x16x16xf32>
    %578 = arith.mulf %575, %577 : vector<2x16x16xf32>
    %579 = arith.addf %574, %578 : vector<2x16x16xf32>
    %580 = arith.addf %432, %579 : vector<2x16x16xf32>
    %c1_201 = arith.constant 1 : index
    %c0_202 = arith.constant 0 : index
    %c0_203 = arith.constant 0 : index
    %c5_204 = arith.constant 5 : index
    %581 = vector.load %arg4[%c1_201, %c0_202, %c0_203, %c5_204] : memref<2x2x22x22xf32, #tpu.memory_space<vmem>>, vector<1x2x22x16xf32>
    %582 = vector.shape_cast %581 : vector<1x2x22x16xf32> to vector<2x22x16xf32>
    %583 = vector.extract_strided_slice %582 {offsets = [0, 0, 0], sizes = [2, 16, 16], strides = [1, 1, 1]} : vector<2x22x16xf32> to vector<2x16x16xf32>
    %c54 = arith.constant 54 : index
    %584 = memref.load %arg2[%c54] : memref<99xf32, #tpu.memory_space<smem>>
    %585 = vector.broadcast %584 : f32 to vector<2x16x16xf32>
    %586 = arith.mulf %583, %585 : vector<2x16x16xf32>
    %587 = vector.extract_strided_slice %582 {offsets = [0, 1, 0], sizes = [2, 16, 16], strides = [1, 1, 1]} : vector<2x22x16xf32> to vector<2x16x16xf32>
    %c61 = arith.constant 61 : index
    %588 = memref.load %arg2[%c61] : memref<99xf32, #tpu.memory_space<smem>>
    %589 = vector.broadcast %588 : f32 to vector<2x16x16xf32>
    %590 = arith.mulf %587, %589 : vector<2x16x16xf32>
    %591 = arith.addf %586, %590 : vector<2x16x16xf32>
    %592 = vector.extract_strided_slice %582 {offsets = [0, 2, 0], sizes = [2, 16, 16], strides = [1, 1, 1]} : vector<2x22x16xf32> to vector<2x16x16xf32>
    %c68 = arith.constant 68 : index
    %593 = memref.load %arg2[%c68] : memref<99xf32, #tpu.memory_space<smem>>
    %594 = vector.broadcast %593 : f32 to vector<2x16x16xf32>
    %595 = arith.mulf %592, %594 : vector<2x16x16xf32>
    %596 = arith.addf %591, %595 : vector<2x16x16xf32>
    %597 = vector.extract_strided_slice %582 {offsets = [0, 3, 0], sizes = [2, 16, 16], strides = [1, 1, 1]} : vector<2x22x16xf32> to vector<2x16x16xf32>
    %c75 = arith.constant 75 : index
    %598 = memref.load %arg2[%c75] : memref<99xf32, #tpu.memory_space<smem>>
    %599 = vector.broadcast %598 : f32 to vector<2x16x16xf32>
    %600 = arith.mulf %597, %599 : vector<2x16x16xf32>
    %601 = arith.addf %596, %600 : vector<2x16x16xf32>
    %602 = vector.extract_strided_slice %582 {offsets = [0, 4, 0], sizes = [2, 16, 16], strides = [1, 1, 1]} : vector<2x22x16xf32> to vector<2x16x16xf32>
    %c82 = arith.constant 82 : index
    %603 = memref.load %arg2[%c82] : memref<99xf32, #tpu.memory_space<smem>>
    %604 = vector.broadcast %603 : f32 to vector<2x16x16xf32>
    %605 = arith.mulf %602, %604 : vector<2x16x16xf32>
    %606 = arith.addf %601, %605 : vector<2x16x16xf32>
    %607 = vector.extract_strided_slice %582 {offsets = [0, 5, 0], sizes = [2, 16, 16], strides = [1, 1, 1]} : vector<2x22x16xf32> to vector<2x16x16xf32>
    %c89 = arith.constant 89 : index
    %608 = memref.load %arg2[%c89] : memref<99xf32, #tpu.memory_space<smem>>
    %609 = vector.broadcast %608 : f32 to vector<2x16x16xf32>
    %610 = arith.mulf %607, %609 : vector<2x16x16xf32>
    %611 = arith.addf %606, %610 : vector<2x16x16xf32>
    %612 = vector.extract_strided_slice %582 {offsets = [0, 6, 0], sizes = [2, 16, 16], strides = [1, 1, 1]} : vector<2x22x16xf32> to vector<2x16x16xf32>
    %c96 = arith.constant 96 : index
    %613 = memref.load %arg2[%c96] : memref<99xf32, #tpu.memory_space<smem>>
    %614 = vector.broadcast %613 : f32 to vector<2x16x16xf32>
    %615 = arith.mulf %612, %614 : vector<2x16x16xf32>
    %616 = arith.addf %611, %615 : vector<2x16x16xf32>
    %617 = arith.addf %469, %616 : vector<2x16x16xf32>
    %c1_205 = arith.constant 1 : index
    %c0_206 = arith.constant 0 : index
    %c0_207 = arith.constant 0 : index
    %c6_208 = arith.constant 6 : index
    %618 = vector.load %arg4[%c1_205, %c0_206, %c0_207, %c6_208] : memref<2x2x22x22xf32, #tpu.memory_space<vmem>>, vector<1x2x22x16xf32>
    %619 = vector.shape_cast %618 : vector<1x2x22x16xf32> to vector<2x22x16xf32>
    %620 = vector.extract_strided_slice %619 {offsets = [0, 0, 0], sizes = [2, 16, 16], strides = [1, 1, 1]} : vector<2x22x16xf32> to vector<2x16x16xf32>
    %c55 = arith.constant 55 : index
    %621 = memref.load %arg2[%c55] : memref<99xf32, #tpu.memory_space<smem>>
    %622 = vector.broadcast %621 : f32 to vector<2x16x16xf32>
    %623 = arith.mulf %620, %622 : vector<2x16x16xf32>
    %624 = vector.extract_strided_slice %619 {offsets = [0, 1, 0], sizes = [2, 16, 16], strides = [1, 1, 1]} : vector<2x22x16xf32> to vector<2x16x16xf32>
    %c62 = arith.constant 62 : index
    %625 = memref.load %arg2[%c62] : memref<99xf32, #tpu.memory_space<smem>>
    %626 = vector.broadcast %625 : f32 to vector<2x16x16xf32>
    %627 = arith.mulf %624, %626 : vector<2x16x16xf32>
    %628 = arith.addf %623, %627 : vector<2x16x16xf32>
    %629 = vector.extract_strided_slice %619 {offsets = [0, 2, 0], sizes = [2, 16, 16], strides = [1, 1, 1]} : vector<2x22x16xf32> to vector<2x16x16xf32>
    %c69 = arith.constant 69 : index
    %630 = memref.load %arg2[%c69] : memref<99xf32, #tpu.memory_space<smem>>
    %631 = vector.broadcast %630 : f32 to vector<2x16x16xf32>
    %632 = arith.mulf %629, %631 : vector<2x16x16xf32>
    %633 = arith.addf %628, %632 : vector<2x16x16xf32>
    %634 = vector.extract_strided_slice %619 {offsets = [0, 3, 0], sizes = [2, 16, 16], strides = [1, 1, 1]} : vector<2x22x16xf32> to vector<2x16x16xf32>
    %c76 = arith.constant 76 : index
    %635 = memref.load %arg2[%c76] : memref<99xf32, #tpu.memory_space<smem>>
    %636 = vector.broadcast %635 : f32 to vector<2x16x16xf32>
    %637 = arith.mulf %634, %636 : vector<2x16x16xf32>
    %638 = arith.addf %633, %637 : vector<2x16x16xf32>
    %639 = vector.extract_strided_slice %619 {offsets = [0, 4, 0], sizes = [2, 16, 16], strides = [1, 1, 1]} : vector<2x22x16xf32> to vector<2x16x16xf32>
    %c83 = arith.constant 83 : index
    %640 = memref.load %arg2[%c83] : memref<99xf32, #tpu.memory_space<smem>>
    %641 = vector.broadcast %640 : f32 to vector<2x16x16xf32>
    %642 = arith.mulf %639, %641 : vector<2x16x16xf32>
    %643 = arith.addf %638, %642 : vector<2x16x16xf32>
    %644 = vector.extract_strided_slice %619 {offsets = [0, 5, 0], sizes = [2, 16, 16], strides = [1, 1, 1]} : vector<2x22x16xf32> to vector<2x16x16xf32>
    %c90 = arith.constant 90 : index
    %645 = memref.load %arg2[%c90] : memref<99xf32, #tpu.memory_space<smem>>
    %646 = vector.broadcast %645 : f32 to vector<2x16x16xf32>
    %647 = arith.mulf %644, %646 : vector<2x16x16xf32>
    %648 = arith.addf %643, %647 : vector<2x16x16xf32>
    %649 = vector.extract_strided_slice %619 {offsets = [0, 6, 0], sizes = [2, 16, 16], strides = [1, 1, 1]} : vector<2x22x16xf32> to vector<2x16x16xf32>
    %c97 = arith.constant 97 : index
    %650 = memref.load %arg2[%c97] : memref<99xf32, #tpu.memory_space<smem>>
    %651 = vector.broadcast %650 : f32 to vector<2x16x16xf32>
    %652 = arith.mulf %649, %651 : vector<2x16x16xf32>
    %653 = arith.addf %648, %652 : vector<2x16x16xf32>
    %654 = arith.addf %506, %653 : vector<2x16x16xf32>
    %655 = arith.addf %617, %654 : vector<2x16x16xf32>
    %656 = arith.addf %543, %580 : vector<2x16x16xf32>
    %657 = arith.addf %655, %656 : vector<2x16x16xf32>
    %c98 = arith.constant 98 : index
    %658 = memref.load %arg2[%c98] : memref<99xf32, #tpu.memory_space<smem>>
    %659 = vector.broadcast %658 : f32 to vector<2x16x16xf32>
    %660 = arith.addf %657, %659 : vector<2x16x16xf32>
    %661 = vector.extract_strided_slice %660 {offsets = [0, 0, 0], sizes = [2, 1, 16], strides = [1, 1, 1]} : vector<2x16x16xf32> to vector<2x1x16xf32>
    %662 = vector.shape_cast %661 : vector<2x1x16xf32> to vector<2x16xf32>
    %c0_209 = arith.constant 0 : index
    %c0_210 = arith.constant 0 : index
    %663 = vector.load %arg5[%c0_209, %c0_210] : memref<2x256xf32, #tpu.memory_space<vmem>>, vector<2x16xf32>
    tpu.vector_store %arg5[%c0_209, %c0_210], %662 {strides = array<i32>} : memref<2x256xf32, #tpu.memory_space<vmem>>, vector<2x16xf32>,
    %664 = vector.extract_strided_slice %660 {offsets = [0, 1, 0], sizes = [2, 1, 16], strides = [1, 1, 1]} : vector<2x16x16xf32> to vector<2x1x16xf32>
    %665 = vector.shape_cast %664 : vector<2x1x16xf32> to vector<2x16xf32>
    %c0_211 = arith.constant 0 : index
    %c16_212 = arith.constant 16 : index
    %666 = vector.load %arg5[%c0_211, %c16_212] : memref<2x256xf32, #tpu.memory_space<vmem>>, vector<2x16xf32>
    tpu.vector_store %arg5[%c0_211, %c16_212], %665 {strides = array<i32>} : memref<2x256xf32, #tpu.memory_space<vmem>>, vector<2x16xf32>,
    %667 = vector.extract_strided_slice %660 {offsets = [0, 2, 0], sizes = [2, 1, 16], strides = [1, 1, 1]} : vector<2x16x16xf32> to vector<2x1x16xf32>
    %668 = vector.shape_cast %667 : vector<2x1x16xf32> to vector<2x16xf32>
    %c0_213 = arith.constant 0 : index
    %c32_214 = arith.constant 32 : index
    %669 = vector.load %arg5[%c0_213, %c32_214] : memref<2x256xf32, #tpu.memory_space<vmem>>, vector<2x16xf32>
    tpu.vector_store %arg5[%c0_213, %c32_214], %668 {strides = array<i32>} : memref<2x256xf32, #tpu.memory_space<vmem>>, vector<2x16xf32>,
    %670 = vector.extract_strided_slice %660 {offsets = [0, 3, 0], sizes = [2, 1, 16], strides = [1, 1, 1]} : vector<2x16x16xf32> to vector<2x1x16xf32>
    %671 = vector.shape_cast %670 : vector<2x1x16xf32> to vector<2x16xf32>
    %c0_215 = arith.constant 0 : index
    %c48_216 = arith.constant 48 : index
    %672 = vector.load %arg5[%c0_215, %c48_216] : memref<2x256xf32, #tpu.memory_space<vmem>>, vector<2x16xf32>
    tpu.vector_store %arg5[%c0_215, %c48_216], %671 {strides = array<i32>} : memref<2x256xf32, #tpu.memory_space<vmem>>, vector<2x16xf32>,
    %673 = vector.extract_strided_slice %660 {offsets = [0, 4, 0], sizes = [2, 1, 16], strides = [1, 1, 1]} : vector<2x16x16xf32> to vector<2x1x16xf32>
    %674 = vector.shape_cast %673 : vector<2x1x16xf32> to vector<2x16xf32>
    %c0_217 = arith.constant 0 : index
    %c64_218 = arith.constant 64 : index
    %675 = vector.load %arg5[%c0_217, %c64_218] : memref<2x256xf32, #tpu.memory_space<vmem>>, vector<2x16xf32>
    tpu.vector_store %arg5[%c0_217, %c64_218], %674 {strides = array<i32>} : memref<2x256xf32, #tpu.memory_space<vmem>>, vector<2x16xf32>,
    %676 = vector.extract_strided_slice %660 {offsets = [0, 5, 0], sizes = [2, 1, 16], strides = [1, 1, 1]} : vector<2x16x16xf32> to vector<2x1x16xf32>
    %677 = vector.shape_cast %676 : vector<2x1x16xf32> to vector<2x16xf32>
    %c0_219 = arith.constant 0 : index
    %c80_220 = arith.constant 80 : index
    %678 = vector.load %arg5[%c0_219, %c80_220] : memref<2x256xf32, #tpu.memory_space<vmem>>, vector<2x16xf32>
    tpu.vector_store %arg5[%c0_219, %c80_220], %677 {strides = array<i32>} : memref<2x256xf32, #tpu.memory_space<vmem>>, vector<2x16xf32>,
    %679 = vector.extract_strided_slice %660 {offsets = [0, 6, 0], sizes = [2, 1, 16], strides = [1, 1, 1]} : vector<2x16x16xf32> to vector<2x1x16xf32>
    %680 = vector.shape_cast %679 : vector<2x1x16xf32> to vector<2x16xf32>
    %c0_221 = arith.constant 0 : index
    %c96_222 = arith.constant 96 : index
    %681 = vector.load %arg5[%c0_221, %c96_222] : memref<2x256xf32, #tpu.memory_space<vmem>>, vector<2x16xf32>
    tpu.vector_store %arg5[%c0_221, %c96_222], %680 {strides = array<i32>} : memref<2x256xf32, #tpu.memory_space<vmem>>, vector<2x16xf32>,
    %682 = vector.extract_strided_slice %660 {offsets = [0, 7, 0], sizes = [2, 1, 16], strides = [1, 1, 1]} : vector<2x16x16xf32> to vector<2x1x16xf32>
    %683 = vector.shape_cast %682 : vector<2x1x16xf32> to vector<2x16xf32>
    %c0_223 = arith.constant 0 : index
    %c112 = arith.constant 112 : index
    %684 = vector.load %arg5[%c0_223, %c112] : memref<2x256xf32, #tpu.memory_space<vmem>>, vector<2x16xf32>
    tpu.vector_store %arg5[%c0_223, %c112], %683 {strides = array<i32>} : memref<2x256xf32, #tpu.memory_space<vmem>>, vector<2x16xf32>,
    %685 = vector.extract_strided_slice %660 {offsets = [0, 8, 0], sizes = [2, 1, 16], strides = [1, 1, 1]} : vector<2x16x16xf32> to vector<2x1x16xf32>
    %686 = vector.shape_cast %685 : vector<2x1x16xf32> to vector<2x16xf32>
    %c0_224 = arith.constant 0 : index
    %c128 = arith.constant 128 : index
    %687 = vector.load %arg5[%c0_224, %c128] : memref<2x256xf32, #tpu.memory_space<vmem>>, vector<2x16xf32>
    tpu.vector_store %arg5[%c0_224, %c128], %686 {strides = array<i32>} : memref<2x256xf32, #tpu.memory_space<vmem>>, vector<2x16xf32>,
    %688 = vector.extract_strided_slice %660 {offsets = [0, 9, 0], sizes = [2, 1, 16], strides = [1, 1, 1]} : vector<2x16x16xf32> to vector<2x1x16xf32>
    %689 = vector.shape_cast %688 : vector<2x1x16xf32> to vector<2x16xf32>
    %c0_225 = arith.constant 0 : index
    %c144 = arith.constant 144 : index
    %690 = vector.load %arg5[%c0_225, %c144] : memref<2x256xf32, #tpu.memory_space<vmem>>, vector<2x16xf32>
    tpu.vector_store %arg5[%c0_225, %c144], %689 {strides = array<i32>} : memref<2x256xf32, #tpu.memory_space<vmem>>, vector<2x16xf32>,
    %691 = vector.extract_strided_slice %660 {offsets = [0, 10, 0], sizes = [2, 1, 16], strides = [1, 1, 1]} : vector<2x16x16xf32> to vector<2x1x16xf32>
    %692 = vector.shape_cast %691 : vector<2x1x16xf32> to vector<2x16xf32>
    %c0_226 = arith.constant 0 : index
    %c160 = arith.constant 160 : index
    %693 = vector.load %arg5[%c0_226, %c160] : memref<2x256xf32, #tpu.memory_space<vmem>>, vector<2x16xf32>
    tpu.vector_store %arg5[%c0_226, %c160], %692 {strides = array<i32>} : memref<2x256xf32, #tpu.memory_space<vmem>>, vector<2x16xf32>,
    %694 = vector.extract_strided_slice %660 {offsets = [0, 11, 0], sizes = [2, 1, 16], strides = [1, 1, 1]} : vector<2x16x16xf32> to vector<2x1x16xf32>
    %695 = vector.shape_cast %694 : vector<2x1x16xf32> to vector<2x16xf32>
    %c0_227 = arith.constant 0 : index
    %c176 = arith.constant 176 : index
    %696 = vector.load %arg5[%c0_227, %c176] : memref<2x256xf32, #tpu.memory_space<vmem>>, vector<2x16xf32>
    tpu.vector_store %arg5[%c0_227, %c176], %695 {strides = array<i32>} : memref<2x256xf32, #tpu.memory_space<vmem>>, vector<2x16xf32>,
    %697 = vector.extract_strided_slice %660 {offsets = [0, 12, 0], sizes = [2, 1, 16], strides = [1, 1, 1]} : vector<2x16x16xf32> to vector<2x1x16xf32>
    %698 = vector.shape_cast %697 : vector<2x1x16xf32> to vector<2x16xf32>
    %c0_228 = arith.constant 0 : index
    %c192 = arith.constant 192 : index
    %699 = vector.load %arg5[%c0_228, %c192] : memref<2x256xf32, #tpu.memory_space<vmem>>, vector<2x16xf32>
    tpu.vector_store %arg5[%c0_228, %c192], %698 {strides = array<i32>} : memref<2x256xf32, #tpu.memory_space<vmem>>, vector<2x16xf32>,
    %700 = vector.extract_strided_slice %660 {offsets = [0, 13, 0], sizes = [2, 1, 16], strides = [1, 1, 1]} : vector<2x16x16xf32> to vector<2x1x16xf32>
    %701 = vector.shape_cast %700 : vector<2x1x16xf32> to vector<2x16xf32>
    %c0_229 = arith.constant 0 : index
    %c208 = arith.constant 208 : index
    %702 = vector.load %arg5[%c0_229, %c208] : memref<2x256xf32, #tpu.memory_space<vmem>>, vector<2x16xf32>
    tpu.vector_store %arg5[%c0_229, %c208], %701 {strides = array<i32>} : memref<2x256xf32, #tpu.memory_space<vmem>>, vector<2x16xf32>,
    %703 = vector.extract_strided_slice %660 {offsets = [0, 14, 0], sizes = [2, 1, 16], strides = [1, 1, 1]} : vector<2x16x16xf32> to vector<2x1x16xf32>
    %704 = vector.shape_cast %703 : vector<2x1x16xf32> to vector<2x16xf32>
    %c0_230 = arith.constant 0 : index
    %c224 = arith.constant 224 : index
    %705 = vector.load %arg5[%c0_230, %c224] : memref<2x256xf32, #tpu.memory_space<vmem>>, vector<2x16xf32>
    tpu.vector_store %arg5[%c0_230, %c224], %704 {strides = array<i32>} : memref<2x256xf32, #tpu.memory_space<vmem>>, vector<2x16xf32>,
    %706 = vector.extract_strided_slice %660 {offsets = [0, 15, 0], sizes = [2, 1, 16], strides = [1, 1, 1]} : vector<2x16x16xf32> to vector<2x1x16xf32>
    %707 = vector.shape_cast %706 : vector<2x1x16xf32> to vector<2x16xf32>
    %c0_231 = arith.constant 0 : index
    %c240 = arith.constant 240 : index
    %708 = vector.load %arg5[%c0_231, %c240] : memref<2x256xf32, #tpu.memory_space<vmem>>, vector<2x16xf32>
    tpu.vector_store %arg5[%c0_231, %c240], %707 {strides = array<i32>} : memref<2x256xf32, #tpu.memory_space<vmem>>, vector<2x16xf32>,
    %c0_232 = arith.constant 0 : index
    %c0_233 = arith.constant 0 : index
    %709 = vector.load %arg5[%c0_232, %c0_233] : memref<2x256xf32, #tpu.memory_space<vmem>>, vector<2x256xf32>
    %710 = arith.negf %709 : vector<2x256xf32>
    %711 = math.exp %710 : vector<2x256xf32>
    %cst_234 = arith.constant 1.000000e+00 : f32
    %712 = vector.broadcast %cst_234 : f32 to vector<2x256xf32>
    %713 = arith.addf %712, %711 : vector<2x256xf32>
    %714 = arith.divf %712, %713 : vector<2x256xf32>
    %715 = vector.shape_cast %714 : vector<2x256xf32> to vector<2x1x256xf32>
    %c0_235 = arith.constant 0 : index
    %c0_236 = arith.constant 0 : index
    %c0_237 = arith.constant 0 : index
    %716 = vector.load %arg1[%c0_235, %c0_236, %c0_237] : memref<2x4x256xf32, #tpu.memory_space<vmem>>, vector<2x4x256xf32>
    %717 = vector.broadcast %715 : vector<2x1x256xf32> to vector<2x4x256xf32>
    %718 = arith.mulf %716, %717 : vector<2x4x256xf32>
    %c0_238 = arith.constant 0 : index
    %c0_239 = arith.constant 0 : index
    %c0_240 = arith.constant 0 : index
    %719 = vector.load %arg3[%c0_238, %c0_239, %c0_240] : memref<2x4x256xf32, #tpu.memory_space<vmem>>, vector<2x4x256xf32>
    tpu.vector_store %arg3[%c0_238, %c0_239, %c0_240], %718 {strides = array<i32>} : memref<2x4x256xf32, #tpu.memory_space<vmem>>, vector<2x4x256xf32>,
    return
  }
  func.func @transform_0(%arg0: i32) -> (i32, i32, i32) {
    %c0_i32 = arith.constant 0 : i32
    %c0_i32_0 = arith.constant 0 : i32
    %c0_i32_1 = arith.constant 0 : i32
    return %arg0, %c0_i32, %c0_i32_0 : i32, i32, i32
  }
  func.func @transform_1(%arg0: i32) -> i32 {
    %c0_i32 = arith.constant 0 : i32
    %c0_i32_0 = arith.constant 0 : i32
    return %c0_i32 : i32
  }
  func.func @transform_2(%arg0: i32) -> (i32, i32, i32) {
    %c0_i32 = arith.constant 0 : i32
    %c0_i32_0 = arith.constant 0 : i32
    %c0_i32_1 = arith.constant 0 : i32
    return %arg0, %c0_i32, %c0_i32_0 : i32, i32, i32
  }
}

</mosaic_0001>

<bundles_post_ra>
// kernel: tpu_custom_call.1
= control target key start
LH: loop header
LB: loop body
LE: loop exit
PB: predicated region body
PF: predicated region fallthrough
CT: control target
= control target key end

     0   :  { %s7404_s0 = inlined_call_operand.hbm [shape: f32[2,4,256], index: 0, kind: input, shape index: {}]   ;;  %s7405_s1 = inlined_call_operand.vmem [shape: f32[99], index: 1, kind: input, shape index: {}]   ;;  %s7406_s2 = inlined_call_operand.hbm [shape: f32[2,4,256], index: 2, kind: output, shape index: {}]  }
   0x1   :  { %7480 = sst [smem:[#allocation47_spill]] %s7406_s2 }
   0x2   :  { %7 = vsyncpa [#allocation5], 0 }
   0x3   :  { %8 = vsyncpa [#allocation7], 0 }
   0x4   :  { %9 = vsyncpa [#allocation6], 0  ;;  %s4002_s9 = smov [#allocation4]   ;;  %s28_s13 = sshll.u32 %s7405_s1, 4  ;;  %s29_s13 = int_to_ptr.vmem [resolvable:$true] %s28_s13 }
   0x5   :  { %s15_s10 = sshll.u32 %s4002_s9, 4  ;;  %s3940_s16 = scalar_lea.hbm %s7404_s0, 256  ;;  %s16_s10 = int_to_ptr.vmem [resolvable:$true] %s15_s10 }
   0x6   :  { %p3941_p0 = scmp.ne.s32.totalorder %s7404_s0, %s3940_s16  ;;  %p3944_p1 = scmp.lt.u32.totalorder %s3940_s16, %s7404_s0 }
   0x8   :  { %p3946_p2 = pnand %p3944_p1, %p3941_p0 }
   0xa   :  { %3949 = shalt.err (!%p3946_p2)
}
   0xb   :  { %s3950_s21 = scalar_lea.vmem %s16_s10, 256  ;;  %p3955_p4 = scmp.lt.s32.totalorder %s16_s10, %s16_s10 }
   0xc   :  { %p3951_p3 = scmp.ne.s32.totalorder %s16_s10, %s3950_s21  ;;  %p3956_p5 = scmp.lt.s32.totalorder %s3950_s21, %s3950_s21 }
   0xe   :  { %p3957_p6 = por %p3956_p5, %p3955_p4 }
  0x10   :  { %p3958_p7 = pnand %p3957_p6, %p3951_p3 }
  0x12   :  { %3961 = shalt.err (!%p3958_p7)
}
  0x13   :  { %s7407_s1 = smov 128   ;;  %s7408_s22 = smov 8  }
  0x14   :  { %21 = dma.hbm_to_vmem [thread:$0]  %s7404_s0, 256, %s16_s10, [#allocation5], %s7407_s1, %s7407_s1, %s7408_s22  }
  0x15   :  { %s3962_s25 = scalar_lea.vmem %s29_s13, 16  ;;  %p3967_p9 = scmp.lt.s32.totalorder %s29_s13, %s29_s13 }
  0x16   :  { %p3963_p8 = scmp.ne.s32.totalorder %s29_s13, %s3962_s25  ;;  %p3968_p10 = scmp.lt.s32.totalorder %s3962_s25, %s3962_s25 }
  0x18   :  { %p3969_p11 = por %p3968_p10, %p3967_p9 }
  0x1a   :  { %p3970_p12 = pnand %p3969_p11, %p3963_p8 }
  0x1c   :  { %3973 = shalt.err (!%p3970_p12)
}
  0x1d   :  { %s4005_s26 = smov [#allocation8]  }
  0x1e   :  { %31 = dma.vmem_to_smem %s29_s13, 16, %s4005_s26, [#allocation7]  }
  0x1f   :  { %3996 = dma.done.wait [#allocation5], 256  }
  0x20   :  { %3997 = vsyncadd [#allocation5], 4294967040 }
  0x21   :  { %3998 = dma.done.wait [#allocation7], 16  }
  0x22   :  { %3999 = vsyncadd [#allocation7], 4294967280 }
  0x23   :  { %38 = sfence }
  0x24   :  { %v4062_v0 = vld [vmem:[#allocation4 + $0x8] sm:$0xff]  ;;  %vm47_vm0 = vcmask 1043456   ;;  %vm108_vm1 = vcmask 174080   ;;  %v4072_v14 = vld [vmem:[#allocation4] sm:$0xff]  ;;  %s4006_s0 = smov 99   ;;  %s7409_s27 = smov 3  }
  0x25   :  { %v90_v1 = vsel %vm47_vm0, %v4062_v0, 0.0  ;;  %v4068_v2 = vcombine.high %v4062_v0, %v4062_v0  ;;  %v4008_v16 = vmov 0.0   ;;  %vm117_vm2 = vcmask 23552   ;;  %s4009_s28 = smov 83   ;;  %s4010_s29 = smov 115  }
  0x26   :  { %v91_v3 = vrot.slane %v90_v1, 4  ;;  %112 = vst.msk [vmem:[#allocation2 + $0x48] sm:$0x7] %vm108_vm1, %v4008_v16  ;;  %vm131_vm3 = vcmask 179352   ;;  %109 = vst.msk [vmem:[#allocation2] sm:$0x7] %vm108_vm1, %v4008_v16  ;;  %v4110_v24 = vcombine.high %v4072_v14, %v4072_v14 }
  0x27   :  { %v97_v4 = vsel %vm47_vm0, %v4068_v2, 0.0  ;;  %110 = vst.msk [vmem:[#allocation2 + $0x18] sm:$0x7] %vm108_vm1, %v4008_v16  ;;  %111 = vst.msk [vmem:[#allocation2 + $0x30] sm:$0x7] %vm108_vm1, %v4008_v16  ;;  %v76_v17 = vsel %vm47_vm0, %v4072_v14, 0.0 }
  0x28   :  { %v92_v5 = vadd.f32 %v91_v3, %v90_v1  ;;  %v98_v6 = vrot.slane %v97_v4, 4  ;;  %113 = vst.msk [vmem:[#allocation2 + $0x13] sm:$0x7] %vm108_vm1, %v4008_v16  ;;  %114 = vst.msk [vmem:[#allocation2 + $0x2b] sm:$0x7] %vm108_vm1, %v4008_v16  ;;  %v77_v19 = vrot.slane %v76_v17, 4 }
  0x29   :  { %115 = vst.msk [vmem:[#allocation2 + $0x43] sm:$0x7] %vm108_vm1, %v4008_v16  ;;  %116 = vst.msk [vmem:[#allocation2 + $0x5b] sm:$0x7] %vm108_vm1, %v4008_v16  ;;  %vm120_vm4 = vcmask 21504   ;;  %vm134_vm5 = vcmask 177304  }
  0x2a   :  { %v93_v7 = vrot.slane %v92_v5, 2  ;;  %v99_v9 = vadd.f32 %v98_v6, %v97_v4  ;;  %128 = vst.msk [vmem:[#allocation2 + $0x48] sm:$0xff] %vm117_vm2, %v4008_v16  ;;  %119 = vst.msk [vmem:[#allocation2 + $0x8] sm:$0xff] %vm117_vm2, %v4008_v16  ;;  %s4011_s30 = smov 51   ;;  %s4012_s3 = smov 67   ;;  %v78_v21 = vadd.f32 %v77_v19, %v76_v17  ;;  %v83_v26 = vsel %vm47_vm0, %v4110_v24, 0.0 }
  0x2b   :  { %123 = vst.msk [vmem:[#allocation2 + $0x20] sm:$0xff] %vm117_vm2, %v4008_v16  ;;  %126 = vst.msk [vmem:[#allocation2 + $0x38] sm:$0xff] %vm117_vm2, %v4008_v16  ;;  %s4013_s4 = smov 19   ;;  %s4014_s5 = smov 35   ;;  %v84_v28 = vrot.slane %v83_v26, 4  ;;  %v62_v35 = vsel %vm47_vm0, %v4062_v0, -inf }
  0x2c   :  { %v94_v8 = vadd.f32 %v93_v7, %v92_v5  ;;  %v100_v12 = vrot.slane %v99_v9, 2  ;;  %129 = vst.msk [vmem:[#allocation2 + $0x50] sm:$0xff] %vm117_vm2, %v4008_v16  ;;  %118 = vst.msk [vmem:[#allocation2] sm:$0xff] %vm117_vm2, %v4008_v16  ;;  %v79_v23 = vrot.slane %v78_v21, 2  ;;  %v63_v37 = vrot.slane %v62_v35, 4  ;;  %s4170_s6 = sld [smem:[#allocation8 + $0x31]] }
  0x2d   :  { %122 = vst.msk [vmem:[#allocation2 + $0x18] sm:$0xff] %vm117_vm2, %v4008_v16  ;;  %125 = vst.msk [vmem:[#allocation2 + $0x30] sm:$0xff] %vm117_vm2, %v4008_v16  ;;  %v85_v30 = vadd.f32 %v84_v28, %v83_v26  ;;  %v69_v42 = vsel %vm47_vm0, %v4068_v2, -inf  ;;  %v48_v49 = vsel %vm47_vm0, %v4072_v14, -inf  ;;  %v55_v56 = vsel %vm47_vm0, %v4110_v24, -inf  ;;  %s4174_s7 = sld [smem:[#allocation8 + $0x38]] }
  0x2e   :  { %v95_v10 = vrot.slane %v94_v8, 1  ;;  %v101_v15 = vadd.f32 %v100_v12, %v99_v9  ;;  %142 = vst.msk [vmem:[#allocation2 + $0x48] sm:$0xff] %vm131_vm3, %v4008_v16  ;;  %133 = vst.msk [vmem:[#allocation2 + $0x8] sm:$0xff] %vm131_vm3, %v4008_v16  ;;  %v80_v25 = vadd.f32 %v79_v23, %v78_v21  ;;  %v64_v39 = vmax.f32 %v62_v35, %v63_v37  ;;  %s4176_s8 = sld [smem:[#allocation8 + $0x3f]]  ;;  %s4178_s9 = sld [smem:[#allocation8 + $0x46]] }
  0x2f   :  { %137 = vst.msk [vmem:[#allocation2 + $0x20] sm:$0xff] %vm131_vm3, %v4008_v16  ;;  %140 = vst.msk [vmem:[#allocation2 + $0x38] sm:$0xff] %vm131_vm3, %v4008_v16  ;;  %v86_v32 = vrot.slane %v85_v30, 2  ;;  %v70_v44 = vrot.slane %v69_v42, 4  ;;  %v49_v51 = vrot.slane %v48_v49, 4  ;;  %v56_v58 = vrot.slane %v55_v56, 4 }
  0x30   :  { %v96_v11 = vadd.f32 %v95_v10, %v94_v8  ;;  %143 = vst.msk [vmem:[#allocation2 + $0x50] sm:$0xff] %vm131_vm3, %v4008_v16  ;;  %132 = vst.msk [vmem:[#allocation2] sm:$0xff] %vm131_vm3, %v4008_v16  ;;  %v102_v18 = vrot.slane %v101_v15, 1  ;;  %v81_v27 = vrot.slane %v80_v25, 1  ;;  %v65_v40 = vrot.slane %v64_v39, 2  ;;  %s4180_s10 = sld [smem:[#allocation8 + $0x4d]] }
  0x31   :  { %136 = vst.msk [vmem:[#allocation2 + $0x18] sm:$0xff] %vm131_vm3, %v4008_v16  ;;  %139 = vst.msk [vmem:[#allocation2 + $0x30] sm:$0xff] %vm131_vm3, %v4008_v16  ;;  %v87_v33 = vadd.f32 %v86_v32, %v85_v30  ;;  %v71_v46 = vmax.f32 %v69_v42, %v70_v44  ;;  %v50_v53 = vmax.f32 %v48_v49, %v49_v51  ;;  %vm153_vm6 = vcmask 147480   ;;  %s4182_s11 = sld [smem:[#allocation8 + $0x54]]  ;;  %s4184_s12 = sld [smem:[#allocation8 + $0x5b]] }
  0x32   :  { %v106_v13 = vmul.f32 0.25, %v96_v11  ;;  %v103_v20 = vadd.f32 %v102_v18, %v101_v15  ;;  %130 = vst.msk [vmem:[#allocation2 + $0x58] sm:$0x3f] %vm120_vm4, %v4008_v16  ;;  %121 = vst.msk [vmem:[#allocation2 + $0x10] sm:$0x3f] %vm120_vm4, %v4008_v16  ;;  %v82_v29 = vadd.f32 %v81_v27, %v80_v25  ;;  %v66_v41 = vmax.f32 %v64_v39, %v65_v40  ;;  %s4188_s13 = sld [smem:[#allocation8 + $0x35]] }
  0x33   :  { %124 = vst.msk [vmem:[#allocation2 + $0x28] sm:$0x3f] %vm120_vm4, %v4008_v16  ;;  %127 = vst.msk [vmem:[#allocation2 + $0x40] sm:$0x3f] %vm120_vm4, %v4008_v16  ;;  %v88_v34 = vrot.slane %v87_v33, 1  ;;  %v72_v47 = vrot.slane %v71_v46, 2  ;;  %v57_v60 = vmax.f32 %v55_v56, %v56_v58  ;;  %v4249_v9 = vstv %s4170_s6 }
  0x34   :  { %193 = vrot.lane.b32.xlu1 %v106_v13, %s4006_s0  ;;  %160 = vrot.lane.b32.xlu0 %v106_v13, %s7409_s27  ;;  %144 = vst.msk [vmem:[#allocation2 + $0x58] sm:$0x3f] %vm134_vm5, %v4008_v16  ;;  %135 = vst.msk [vmem:[#allocation2 + $0x10] sm:$0x3f] %vm134_vm5, %v4008_v16  ;;  %v107_v22 = vmul.f32 0.25, %v103_v20  ;;  %v104_v31 = vmul.f32 0.25, %v82_v29  ;;  %v4252_v10 = vstv %s4174_s7  ;;  %v4259_v11 = vstv %s4176_s8 }
  0x35   :  { %138 = vst.msk [vmem:[#allocation2 + $0x28] sm:$0x3f] %vm134_vm5, %v4008_v16  ;;  %141 = vst.msk [vmem:[#allocation2 + $0x40] sm:$0x3f] %vm134_vm5, %v4008_v16  ;;  %v89_v36 = vadd.f32 %v88_v34, %v87_v33  ;;  %v67_v43 = vrot.slane %v66_v41, 1  ;;  %v73_v48 = vmax.f32 %v71_v46, %v72_v47  ;;  %v51_v54 = vrot.slane %v50_v53, 2 }
  0x36   :  { %v58_v61 = vrot.slane %v57_v60, 2  ;;  %s4190_s14 = sld [smem:[#allocation8 + $0x3c]]  ;;  %s4194_s15 = sld [smem:[#allocation8 + $0x43]]  ;;  %v4262_v12 = vstv %s4178_s9  ;;  %vm437_vm7 = vcmask 1046528   ;;  %vm470_vm8 = vcmask 1045504  }
  0x37   :  { %v105_v38 = vmul.f32 0.25, %v89_v36  ;;  %v68_v45 = vmax.f32 %v66_v41, %v67_v43  ;;  %v74_v50 = vrot.slane %v73_v48, 1  ;;  %v52_v55 = vmax.f32 %v50_v53, %v51_v54  ;;  %s4196_s16 = sld [smem:[#allocation8 + $0x4a]]  ;;  %s4198_s17 = sld [smem:[#allocation8 + $0x51]] }
  0x38   :  { %209 = vrot.lane.b32.xlu1 %v106_v13, %s4009_s28  ;;  %177 = vrot.lane.b32.xlu0 %v106_v13, %s4010_s29  ;;  %v59_v62 = vmax.f32 %v57_v60, %v58_v61  ;;  %s4200_s18 = sld [smem:[#allocation8 + $0x58]]  ;;  %s4202_s19 = sld [smem:[#allocation8 + $0x5f]]  ;;  %v4268_v14 = vstv %s4182_s11  ;;  %v4275_v15 = vstv %s4184_s12  ;;  %vm503_vm9 = vcmask 1044480  }
  0x39   :  { %v75_v52 = vmax.f32 %v73_v48, %v74_v50  ;;  %v53_v57 = vrot.slane %v52_v55, 1  ;;  %s4204_s20 = sld [smem:[#allocation8 + $0x33]]  ;;  %s4208_s21 = sld [smem:[#allocation8 + $0x3a]]  ;;  %v4278_v16 = vstv %s4188_s13  ;;  %vm568_vm10 = vcmask 1042432  }
  0x3a   :  { %v60_v63 = vrot.slane %v59_v62, 1  ;;  %s4210_s23 = sld [smem:[#allocation8 + $0x41]]  ;;  %s4214_s24 = sld [smem:[#allocation8 + $0x48]]  ;;  %vm601_vm11 = vcmask 1041408   ;;  %vm3487_vm12 = vcmask 1041409   ;;  %vm3489_vm13 = vcmask 1043459  }
  0x3b   :  { %v54_v59 = vmax.f32 %v52_v55, %v53_v57  ;;  %s4216_s25 = sld [smem:[#allocation8 + $0x4f]]  ;;  %s4218_s26 = sld [smem:[#allocation8 + $0x56]]  ;;  %vm3491_vm14 = vcmask 1045509   ;;  %vm3493_vm15 = vcmask 1047559   ;;  %vm3508_vm1 = vcmask 255104  }
  0x3c   :  { %241 = vrot.lane.b32.xlu1 %v106_v13, %s4011_s30  ;;  %225 = vrot.lane.b32.xlu0 %v106_v13, %s4012_s3  ;;  %v61_v0 = vmax.f32 %v59_v62, %v60_v63  ;;  %s4234_s1 = sld [smem:[#allocation8 + $0x21]]  ;;  %s4236_s22 = sld [smem:[#allocation8 + $0x28]]  ;;  %v4281_v17 = vstv %s4190_s14  ;;  %v4284_v18 = vstv %s4194_s15  ;;  %vm3522_vm2 = vcmask 386304  }
  0x3d   :  { %s4240_s2 = sld [smem:[#allocation8 + $0x6]]  ;;  %s4270_s6 = sld [smem:[#allocation8 + $0x29]]  ;;  %v4291_v21 = vstv %s4196_s16  ;;  %vm3534_vm3 = vcmask 517504   ;;  %vm3562_vm4 = vcmask 648704   ;;  %vm3574_vm5 = vcmask 779904  }
  0x3e   :  { %s4272_s7 = sld [smem:[#allocation8 + $0x30]]  ;;  %s4286_s8 = sld [smem:[#allocation8 + $0x34]]  ;;  %v4297_v23 = vstv %s4200_s18  ;;  %v4300_v24 = vstv %s4202_s19 }
  0x3f   :  { %s4288_s9 = sld [smem:[#allocation8 + $0x3b]]  ;;  %v4307_v26 = vstv %s4204_s20  ;;  %v4310_v27 = vstv %s4208_s21  ;;  %s5408_s12 = sld [smem:[#allocation8 + $0xa]] }
  0x40   :  { %273 = vrot.lane.b32.xlu1 %v106_v13, %s4013_s4  ;;  %257 = vrot.lane.b32.xlu0 %v106_v13, %s4014_s5  ;;  %v4265_v13 = vstv %s4180_s10  ;;  %7484 = vst [vmem:[#allocation15_spill] sm:$0xff] %v4307_v26  ;;  %v4313_v28 = vstv %s4210_s23  ;;  %s5413_s13 = sld [smem:[#allocation8 + $0x11]]  ;;  %s5415_s14 = sld [smem:[#allocation8 + $0x18]] }
  0x41   :  { %7486 = vst [vmem:[#allocation16_spill] sm:$0xff] %v4313_v28  ;;  %v4316_v29 = vstv %s4214_s24  ;;  %v4325_v32 = vstv %s4218_s26  ;;  %s5435_s15 = sld [smem:[#allocation8 + $0x1f]]  ;;  %s5445_s16 = sld [smem:[#allocation8 + $0x26]] }
  0x42   :  { %7487 = vst [vmem:[#allocation17_spill] sm:$0xff] %v4316_v29  ;;  %7489 = vst [vmem:[#allocation19_spill] sm:$0xff] %v4325_v32  ;;  %v4340_v37 = vstv %s4234_s1  ;;  %v4347_v41 = vstv %s4236_s22  ;;  %s4015_s1 = smov 127   ;;  %s4016_s22 = smov 124  }
  0x43   :  { %7482 = sst [smem:[#allocation14_spill]] %s4240_s2  ;;  %s4256_s2 = sld [smem:[#allocation8 + $0x22]]  ;;  %7493 = vst [vmem:[#allocation23_spill] sm:$0xff] %v4340_v37  ;;  %7494 = vst [vmem:[#allocation24_spill] sm:$0xff] %v4347_v41  ;;  %v4378_v50 = vstv %s4270_s6 }
  0x44   :  { %309 = vrot.lane.b32.xlu1 %v107_v22, %s4010_s29  ;;  %293 = vrot.lane.b32.xlu0 %v107_v22, %s7409_s27  ;;  %s7485_s11 = sld [smem:[#allocation14_spill]]  ;;  %7501 = vst [vmem:[#allocation31_spill] sm:$0xff] %v4378_v50  ;;  %v4381_v51 = vstv %s4272_s7  ;;  %v4392_v54 = vstv %s4286_s8  ;;  %s5494_s18 = sld [smem:[#allocation8 + $0x42]] }
  0x45   :  { %7502 = vst [vmem:[#allocation32_spill] sm:$0xff] %v4381_v51  ;;  %7503 = vst [vmem:[#allocation33_spill] sm:$0xff] %v4392_v54  ;;  %v4395_v55 = vstv %s4288_s9  ;;  %s5500_s19 = sld [smem:[#allocation8 + $0x49]]  ;;  %s5522_s20 = sld [smem:[#allocation8 + $0x50]] }
  0x46   :  { %7504 = vst [vmem:[#allocation34_spill] sm:$0xff] %v4395_v55  ;;  %s5538_s21 = sld [smem:[#allocation8 + $0x57]]  ;;  %s5540_s23 = sld [smem:[#allocation8 + $0x5e]] }
  0x47   :  { %s5646_s24 = sld [smem:[#allocation8 + $0x37]]  ;;  %s5671_s26 = sld [smem:[#allocation8 + $0x45]] }
  0x48   :  { %341 = vrot.lane.b32.xlu1 %v107_v22, %s4009_s28  ;;  %325 = vrot.lane.b32.xlu0 %v107_v22, %s4006_s0  ;;  %s6095_s6 = sld [smem:[#allocation8 + $0x12]]  ;;  %s6112_s7 = sld [smem:[#allocation8 + $0x19]] }
  0x49   :  { %v4375_v49 = vstv %s4256_s2  ;;  %s7519_s2 = smov 3   ;;  %s6114_s8 = sld [smem:[#allocation8 + $0x20]] }
  0x4a   :  { %v4353_v43 = vstv %s7485_s11  ;;  %7500 = vst [vmem:[#allocation30_spill] sm:$0xff] %v4375_v49  ;;  %s6123_s9 = sld [smem:[#allocation8 + $0x27]]  ;;  %s6238_s11 = sld [smem:[#allocation8 + $0x32]] }
  0x4b   :  { %7496 = vst [vmem:[#allocation26_spill] sm:$0xff] %v4353_v43 }
  0x4c   :  { %373 = vrot.lane.b32.xlu1 %v107_v22, %s4011_s30  ;;  %357 = vrot.lane.b32.xlu0 %v107_v22, %s4012_s3 }
  0x50   :  { %405 = vrot.lane.b32.xlu1 %v107_v22, %s4013_s4  ;;  %389 = vrot.lane.b32.xlu0 %v107_v22, %s4014_s5  ;;  %v4294_v22 = vstv %s4198_s17  ;;  %s5470_s17 = sld [smem:[#allocation8 + $0x2d]] }
  0x54   :  { %175 = vrot.lane.b32.xlu1 %v104_v31, %s4010_s29  ;;  %158 = vrot.lane.b32.xlu0 %v104_v31, %s7409_s27 }
  0x58   :  { %207 = vrot.lane.b32.xlu1 %v104_v31, %s4009_s28  ;;  %191 = vrot.lane.b32.xlu0 %v104_v31, %s4006_s0 }
  0x5c   :  { %239 = vrot.lane.b32.xlu1 %v104_v31, %s4011_s30  ;;  %223 = vrot.lane.b32.xlu0 %v104_v31, %s4012_s3 }
  0x60   :  { %271 = vrot.lane.b32.xlu1 %v104_v31, %s4013_s4  ;;  %255 = vrot.lane.b32.xlu0 %v104_v31, %s4014_s5  ;;  %v4322_v31 = vstv %s4216_s25  ;;  %s5664_s25 = sld [smem:[#allocation8 + $0x3e]] }
  0x61   :  { %7488 = vst [vmem:[#allocation18_spill] sm:$0xff] %v4322_v31 }
  0x64   :  { %307 = vrot.lane.b32.xlu1 %v105_v38, %s4010_s29  ;;  %291 = vrot.lane.b32.xlu0 %v105_v38, %s7409_s27 }
  0x68   :  { %339 = vrot.lane.b32.xlu1 %v105_v38, %s4009_s28  ;;  %323 = vrot.lane.b32.xlu0 %v105_v38, %s4006_s0 }
  0x6c   :  { %371 = vrot.lane.b32.xlu1 %v105_v38, %s4011_s30  ;;  %355 = vrot.lane.b32.xlu0 %v105_v38, %s4012_s3 }
  0x70   :  { %403 = vrot.lane.b32.xlu1 %v105_v38, %s4013_s4  ;;  %387 = vrot.lane.b32.xlu0 %v105_v38, %s4014_s5 }
  0x74   :  { %169 = vrot.lane.b32.xlu1 %v68_v45, %s4010_s29  ;;  %149 = vrot.lane.b32.xlu0 %v68_v45, %s7409_s27 }
  0x78   :  { %201 = vrot.lane.b32.xlu1 %v68_v45, %s4009_s28  ;;  %185 = vrot.lane.b32.xlu0 %v68_v45, %s4006_s0 }
  0x7c   :  { %233 = vrot.lane.b32.xlu1 %v68_v45, %s4011_s30  ;;  %217 = vrot.lane.b32.xlu0 %v68_v45, %s4012_s3 }
  0x80   :  { %265 = vrot.lane.b32.xlu1 %v68_v45, %s4013_s4  ;;  %249 = vrot.lane.b32.xlu0 %v68_v45, %s4014_s5 }
  0x84   :  { %301 = vrot.lane.b32.xlu1 %v75_v52, %s4010_s29  ;;  %283 = vrot.lane.b32.xlu0 %v75_v52, %s7409_s27 }
  0x88   :  { %333 = vrot.lane.b32.xlu1 %v75_v52, %s4009_s28  ;;  %317 = vrot.lane.b32.xlu0 %v75_v52, %s4006_s0 }
  0x8c   :  { %365 = vrot.lane.b32.xlu1 %v75_v52, %s4011_s30  ;;  %349 = vrot.lane.b32.xlu0 %v75_v52, %s4012_s3 }
  0x90   :  { %397 = vrot.lane.b32.xlu1 %v75_v52, %s4013_s4  ;;  %381 = vrot.lane.b32.xlu0 %v75_v52, %s4014_s5 }
  0x94   :  { %167 = vrot.lane.b32.xlu1 %v54_v59, %s4010_s29  ;;  %147 = vrot.lane.b32.xlu0 %v54_v59, %s7409_s27 }
  0x98   :  { %199 = vrot.lane.b32.xlu1 %v54_v59, %s4009_s28  ;;  %183 = vrot.lane.b32.xlu0 %v54_v59, %s4006_s0 }
  0x9c   :  { %231 = vrot.lane.b32.xlu1 %v54_v59, %s4011_s30  ;;  %215 = vrot.lane.b32.xlu0 %v54_v59, %s4012_s3 }
  0xa0   :  { %263 = vrot.lane.b32.xlu1 %v54_v59, %s4013_s4  ;;  %247 = vrot.lane.b32.xlu0 %v54_v59, %s4014_s5 }
  0xa4   :  { %299 = vrot.lane.b32.xlu1 %v61_v0, %s4010_s29  ;;  %281 = vrot.lane.b32.xlu0 %v61_v0, %s7409_s27  ;;  %s4224_s29 = sld [smem:[#allocation8 + $0xc]]  ;;  %s4238_s27 = sld [smem:[#allocation8 + $0x2f]] }
  0xa6   :  { %v194_v1 = vpop.permute.xlu1 %193  ;;  %v161_v2 = vpop.permute.xlu0 %160 }
  0xa7   :  { %198 = vst.msk [vmem:[#allocation2 + $0x4d] sm:$0x1] %vm153_vm6, %v194_v1  ;;  %166 = vst.msk [vmem:[#allocation2 + $0x4b] sm:$0x1] %vm153_vm6, %v161_v2 }
  0xa8   :  { %331 = vrot.lane.b32.xlu1 %v61_v0, %s4009_s28  ;;  %315 = vrot.lane.b32.xlu0 %v61_v0, %s4006_s0  ;;  %s4220_s0 = sld [smem:[#allocation8 + $0x5d]] }
  0xa9   :  { %s4222_s28 = sld [smem:[#allocation8 + $0x5]] }
  0xaa   :  { %v210_v3 = vpop.permute.xlu1 %209  ;;  %v178_v4 = vpop.permute.xlu0 %177  ;;  %v4331_v34 = vstv %s4224_s29  ;;  %v4350_v42 = vstv %s4238_s27  ;;  %s5388_s27 = sld [smem:[#allocation8 + $0x3]]  ;;  %s5714_s29 = sld [smem:[#allocation8 + $0x5a]] }
  0xab   :  { %214 = vst.msk [vmem:[#allocation2 + $0x4e] sm:$0x1] %vm153_vm6, %v210_v3  ;;  %182 = vst.msk [vmem:[#allocation2 + $0x4c] sm:$0x1] %vm153_vm6, %v178_v4 }
  0xac   :  { %363 = vrot.lane.b32.xlu1 %v61_v0, %s4011_s30  ;;  %347 = vrot.lane.b32.xlu0 %v61_v0, %s4012_s3  ;;  %s4228_s30 = sld [smem:[#allocation8 + $0x13]]  ;;  %s4230_s3 = sld [smem:[#allocation8 + $0x1a]]  ;;  %7495 = vst [vmem:[#allocation25_spill] sm:$0xff] %v4350_v42 }
  0xae   :  { %v242_v5 = vpop.permute.xlu1 %241  ;;  %v226_v6 = vpop.permute.xlu0 %225  ;;  %v4328_v33 = vstv %s4220_s0  ;;  %s5680_s0 = sld [smem:[#allocation8 + $0x4c]] }
  0xaf   :  { %246 = vst.msk [vmem:[#allocation2 + $0x50] sm:$0x1] %vm153_vm6, %v242_v5  ;;  %230 = vst.msk [vmem:[#allocation2 + $0x4f] sm:$0x1] %vm153_vm6, %v226_v6  ;;  %v4319_v30 = vstv %s4222_s28  ;;  %s5694_s28 = sld [smem:[#allocation8 + $0x53]] }
  0xb0   :  { %395 = vrot.lane.b32.xlu1 %v61_v0, %s4013_s4  ;;  %379 = vrot.lane.b32.xlu0 %v61_v0, %s4014_s5  ;;  %s4244_s4 = sld [smem:[#allocation8 + $0x14]]  ;;  %s4254_s5 = sld [smem:[#allocation8 + $0x1b]]  ;;  %7490 = vst [vmem:[#allocation20_spill] sm:$0xff] %v4328_v33 }
  0xb2   :  { %7481 = sst [smem:[#allocation13_spill]] %s4230_s3  ;;  %v274_v7 = vpop.permute.xlu1 %273  ;;  %v258_v8 = vpop.permute.xlu0 %257  ;;  %s4242_s3 = sld [smem:[#allocation8 + $0xd]]  ;;  %v4334_v35 = vstv %s4228_s30 }
  0xb3   :  { %278 = vst.msk [vmem:[#allocation2 + $0x52] sm:$0x1] %vm153_vm6, %v274_v7  ;;  %262 = vst.msk [vmem:[#allocation2 + $0x51] sm:$0x1] %vm153_vm6, %v258_v8  ;;  %s7483_s10 = sld [smem:[#allocation13_spill]]  ;;  %s5716_s30 = sld [smem:[#allocation8 + $0x61]] }
  0xb4   :  { %7491 = vst [vmem:[#allocation21_spill] sm:$0xff] %v4334_v35 }
  0xb6   :  { %v310_v19 = vpop.permute.xlu1 %309  ;;  %v294_v20 = vpop.permute.xlu0 %293  ;;  %v4302_v25 = vld [vmem:[#allocation2 + $0x48] sm:$0xff]  ;;  %v4369_v47 = vstv %s4244_s4  ;;  %v4372_v48 = vstv %s4254_s5  ;;  %s6088_s4 = sld [smem:[#allocation8 + $0x4]]  ;;  %s6093_s5 = sld [smem:[#allocation8 + $0xb]] }
  0xb7   :  { %314 = vst.msk [vmem:[#allocation2 + $0x54] sm:$0x1] %vm153_vm6, %v310_v19  ;;  %298 = vst.msk [vmem:[#allocation2 + $0x53] sm:$0x1] %vm153_vm6, %v294_v20  ;;  %v4344_v40 = vmul.f32 %v4252_v10, %v4302_v25  ;;  %v4359_v44 = vmul.f32 %v4259_v11, %v4302_v25  ;;  %v4363_v45 = vmul.f32 %v4262_v12, %v4302_v25 }
  0xb8   :  { %v4366_v46 = vstv %s4242_s3  ;;  %7498 = vst [vmem:[#allocation28_spill] sm:$0xff] %v4369_v47  ;;  %7499 = vst [vmem:[#allocation29_spill] sm:$0xff] %v4372_v48  ;;  %v4385_v52 = vmul.f32 %v4249_v9, %v4302_v25  ;;  %v4389_v53 = vmul.f32 %v4265_v13, %v4302_v25  ;;  %v4400_v59 = vmul.f32 %v4268_v14, %v4302_v25  ;;  %s4017_s3 = smov 123  }
  0xb9   :  { %v4337_v36 = vstv %s7483_s10  ;;  %7497 = vst [vmem:[#allocation27_spill] sm:$0xff] %v4366_v46  ;;  %v4404_v60 = vmul.f32 %v4275_v15, %v4302_v25  ;;  %v4408_v61 = vmul.f32 %v4278_v16, %v4302_v25  ;;  %v4416_v0 = vmul.f32 %v4281_v17, %v4302_v25  ;;  %s6145_s10 = sld [smem:[#allocation8 + $0x2e]] }
  0xba   :  { %7492 = vst [vmem:[#allocation22_spill] sm:$0xff] %v4337_v36  ;;  %v342_v38 = vpop.permute.xlu1 %341  ;;  %v326_v39 = vpop.permute.xlu0 %325  ;;  %v4420_v1 = vmul.f32 %v4284_v18, %v4302_v25  ;;  %v4424_v2 = vmul.f32 %v4291_v21, %v4302_v25  ;;  %v4428_v3 = vmul.f32 %v4294_v22, %v4302_v25  ;;  %v4432_v4 = vmul.f32 %v4297_v23, %v4302_v25 }
  0xbb   :  { %346 = vst.msk [vmem:[#allocation2 + $0x56] sm:$0x1] %vm153_vm6, %v342_v38  ;;  %330 = vst.msk [vmem:[#allocation2 + $0x55] sm:$0x1] %vm153_vm6, %v326_v39  ;;  %v4436_v5 = vmul.f32 %v4300_v24, %v4302_v25  ;;  %v1995_v6 = vrot.slane %v4389_v53, 4  ;;  %v4441_v7 = vmul.f32 %v4310_v27, %v4302_v25  ;;  %v4445_v8 = vmul.f32 %v4313_v28, %v4302_v25 }
  0xbc   :  { %v4449_v19 = vmul.f32 %v4316_v29, %v4302_v25  ;;  %v2027_v39 = vrot.slane %v4400_v59, 5  ;;  %v4458_v53 = vmul.f32 %v4325_v32, %v4302_v25  ;;  %v2059_v63 = vrot.slane %v4404_v60, 6 }
  0xbd   :  { %7505 = vst [vmem:[#allocation35_spill] sm:$0xff] %v4441_v7  ;;  %7506 = vst [vmem:[#allocation36_spill] sm:$0xff] %v4445_v8  ;;  %v2771_v59 = vrot.slane %v4416_v0, 1  ;;  %v4471_v58 = vmul.f32 %v4307_v26, %v4302_v25  ;;  %v4482_v62 = vmul.f32 %v4392_v54, %v4302_v25 }
  0xbe   :  { %v374_v56 = vpop.permute.xlu1 %373  ;;  %v358_v57 = vpop.permute.xlu0 %357  ;;  %7507 = vst [vmem:[#allocation37_spill] sm:$0xff] %v4449_v19  ;;  %7509 = vst [vmem:[#allocation39_spill] sm:$0xff] %v4458_v53 }
  0xbf   :  { %378 = vst.msk [vmem:[#allocation2 + $0x58] sm:$0x1] %vm153_vm6, %v374_v56  ;;  %362 = vst.msk [vmem:[#allocation2 + $0x57] sm:$0x1] %vm153_vm6, %v358_v57  ;;  %v4454_v56 = vmul.f32 %v4322_v31, %v4302_v25  ;;  %v4462_v57 = vmul.f32 %v4328_v33, %v4302_v25 }
  0xc0   :  { %7511 = vst [vmem:[#allocation41_spill] sm:$0xff] %v4471_v58  ;;  %7512 = vst [vmem:[#allocation42_spill] sm:$0xff] %v4482_v62 }
  0xc1   :  { %7508 = vst [vmem:[#allocation38_spill] sm:$0xff] %v4454_v56  ;;  %7510 = vst [vmem:[#allocation40_spill] sm:$0xff] %v4462_v57 }
  0xc2   :  { %v406_v20 = vpop.permute.xlu1 %405  ;;  %v390_v38 = vpop.permute.xlu0 %389 }
  0xc3   :  { %410 = vst.msk [vmem:[#allocation2 + $0x5a] sm:$0x1] %vm153_vm6, %v406_v20  ;;  %394 = vst.msk [vmem:[#allocation2 + $0x59] sm:$0x1] %vm153_vm6, %v390_v38  ;;  %v4491_v38 = vmul.f32 %v4395_v55, %v4302_v25 }
  0xc5   :  { %7513 = vst [vmem:[#allocation43_spill] sm:$0xff] %v4491_v38 }
  0xc6   :  { %v4484_v26 = vld [vmem:[#allocation2 + $0x50] sm:$0xff]  ;;  %v176_v58 = vpop.permute.xlu1 %175  ;;  %v159_v32 = vpop.permute.xlu0 %158 }
  0xc7   :  { %181 = vst.msk [vmem:[#allocation2 + $0x34] sm:$0x1] %vm153_vm6, %v176_v58  ;;  %165 = vst.msk [vmem:[#allocation2 + $0x33] sm:$0x1] %vm153_vm6, %v159_v32  ;;  %v1886_v0 = vmul.f32 %v4252_v10, %v4484_v26  ;;  %v1918_v60 = vmul.f32 %v4259_v11, %v4484_v26  ;;  %v1950_v51 = vmul.f32 %v4262_v12, %v4484_v26 }
  0xc8   :  { %v1982_v20 = vmul.f32 %v4265_v13, %v4484_v26  ;;  %v2014_v25 = vmul.f32 %v4268_v14, %v4484_v26  ;;  %v2046_v58 = vmul.f32 %v4275_v15, %v4484_v26  ;;  %v1879_v32 = vmul.f32 %v4249_v9, %v4484_v26 }
  0xc9   :  { %v4511_v33 = vmul.f32 %v4281_v17, %v4484_v26  ;;  %v1900_v54 = vrot.slane %v1886_v0, 1  ;;  %v1932_v62 = vrot.slane %v1918_v60, 2  ;;  %v1964_v38 = vrot.slane %v1950_v51, 3 }
  0xca   :  { %v1996_v55 = vrot.slane %v1982_v20, 4  ;;  %v4513_v57 = vld [vmem:[#allocation2 + $0x58] sm:$0x3f]  ;;  %v208_v53 = vpop.permute.xlu1 %207  ;;  %v192_v56 = vpop.permute.xlu0 %191  ;;  %v2028_v19 = vrot.slane %v2014_v25, 5  ;;  %v2060_v8 = vrot.slane %v2046_v58, 6  ;;  %v4518_v50 = vmul.f32 %v4284_v18, %v4484_v26 }
  0xcb   :  { %213 = vst.msk [vmem:[#allocation2 + $0x36] sm:$0x1] %vm153_vm6, %v208_v53  ;;  %197 = vst.msk [vmem:[#allocation2 + $0x35] sm:$0x1] %vm153_vm6, %v192_v56  ;;  %v7514_v60 = vrot.slane %v4344_v40, 1  ;;  %v7515_v20 = vrot.slane %v4359_v44, 2  ;;  %v1887_v40 = vmul.f32 %v4252_v10, %v4513_v57  ;;  %v1919_v44 = vmul.f32 %v4259_v11, %v4513_v57 }
  0xcc   :  { %v7516_v25 = vrot.slane %v4363_v45, 3  ;;  %v1997_v7 = vsel %vm47_vm0, %v1995_v6, %v1996_v55  ;;  %v2029_v53 = vsel %vm568_vm10, %v2027_v39, %v2028_v19  ;;  %v2061_v56 = vsel %vm601_vm11, %v2059_v63, %v2060_v8 }
  0xcd   :  { %v1901_v51 = vsel %vm437_vm7, %v7514_v60, %v1900_v54  ;;  %v1933_v0 = vsel %vm470_vm8, %v7515_v20, %v1932_v62  ;;  %v1951_v60 = vmul.f32 %v4262_v12, %v4513_v57  ;;  %v1983_v45 = vmul.f32 %v4265_v13, %v4513_v57 }
  0xce   :  { %v1965_v58 = vsel %vm503_vm9, %v7516_v25, %v1964_v38  ;;  %v1910_v49 = vadd.f32 %v1901_v51, %v4385_v52  ;;  %v2015_v6 = vmul.f32 %v4268_v14, %v4513_v57  ;;  %v240_v52 = vpop.permute.xlu1 %239  ;;  %v224_v51 = vpop.permute.xlu0 %223  ;;  %v1902_v20 = vrot.slane %v1887_v40, 1 }
  0xcf   :  { %v2047_v63 = vmul.f32 %v4275_v15, %v4513_v57  ;;  %v7517_v25 = vrot.slane %v4511_v33, 1  ;;  %245 = vst.msk [vmem:[#allocation2 + $0x38] sm:$0x1] %vm153_vm6, %v240_v52  ;;  %229 = vst.msk [vmem:[#allocation2 + $0x37] sm:$0x1] %vm153_vm6, %v224_v51  ;;  %v1934_v47 = vrot.slane %v1919_v44, 2 }
  0xd0   :  { %v1942_v39 = vadd.f32 %v1933_v0, %v1910_v49  ;;  %v1966_v46 = vrot.slane %v1951_v60, 3  ;;  %v1998_v43 = vrot.slane %v1983_v45, 4  ;;  %v2030_v42 = vrot.slane %v2015_v6, 5 }
  0xd1   :  { %v2773_v48 = vsel %vm437_vm7, %v2771_v59, %v7517_v25  ;;  %v1903_v37 = vsel %vm437_vm7, %v1900_v54, %v1902_v20  ;;  %v2062_v49 = vrot.slane %v2047_v63, 6  ;;  %v1935_v36 = vsel %vm470_vm8, %v1932_v62, %v1934_v47 }
  0xd2   :  { %v1974_v41 = vadd.f32 %v1965_v58, %v1942_v39  ;;  %v2782_v0 = vadd.f32 %v2773_v48, %v4408_v61  ;;  %v1911_v40 = vadd.f32 %v1903_v37, %v1879_v32  ;;  %v1967_v35 = vsel %vm503_vm9, %v1964_v38, %v1966_v46  ;;  %v272_v52 = vpop.permute.xlu1 %271  ;;  %v256_v25 = vpop.permute.xlu0 %255 }
  0xd3   :  { %v1999_v59 = vsel %vm47_vm0, %v1996_v55, %v1998_v43  ;;  %v2031_v44 = vsel %vm568_vm10, %v2028_v19, %v2030_v42  ;;  %v2063_v60 = vsel %vm601_vm11, %v2060_v8, %v2062_v49  ;;  %v2804_v58 = vrot.slane %v4518_v50, 2  ;;  %277 = vst.msk [vmem:[#allocation2 + $0x3a] sm:$0x1] %vm153_vm6, %v272_v52  ;;  %261 = vst.msk [vmem:[#allocation2 + $0x39] sm:$0x1] %vm153_vm6, %v256_v25 }
  0xd4   :  { %v2006_v51 = vadd.f32 %v1997_v7, %v1974_v41  ;;  %v1943_v37 = vadd.f32 %v1935_v36, %v1911_v40  ;;  %v4564_v47 = vmul.f32 %v4291_v21, %v4484_v26  ;;  %v4568_v43 = vmul.f32 %v4294_v22, %v4484_v26 }
  0xd5   :  { %v4572_v41 = vmul.f32 %v4297_v23, %v4484_v26  ;;  %v7518_v46 = vrot.slane %v4420_v1, 2  ;;  %v4581_v36 = vmul.f32 %v4300_v24, %v4484_v26  ;;  %v2751_v54 = vmul.f32 %v4278_v16, %v4484_v26 }
  0xd6   :  { %v2038_v42 = vadd.f32 %v2029_v53, %v2006_v51  ;;  %v1975_v55 = vadd.f32 %v1967_v35, %v1943_v37  ;;  %v2836_v62 = vrot.slane %v4564_v47, 3  ;;  %v2868_v7 = vrot.slane %v4568_v43, 4  ;;  %v4587_v8 = vld [vmem:[#allocation2 + $0x30] sm:$0xff]  ;;  %v308_v19 = vpop.permute.xlu1 %307  ;;  %v292_v38 = vpop.permute.xlu0 %291 }
  0xd7   :  { %v2805_v48 = vsel %vm470_vm8, %v7518_v46, %v2804_v58  ;;  %v2900_v32 = vrot.slane %v4572_v41, 5  ;;  %v2932_v53 = vrot.slane %v4581_v36, 6  ;;  %v2759_v45 = vmul.f32 %v4281_v17, %v4513_v57  ;;  %313 = vst.msk [vmem:[#allocation2 + $0x3c] sm:$0x1] %vm153_vm6, %v308_v19  ;;  %297 = vst.msk [vmem:[#allocation2 + $0x3b] sm:$0x1] %vm153_vm6, %v292_v38 }
  0xd8   :  { %v2814_v61 = vadd.f32 %v2805_v48, %v2782_v0  ;;  %v2070_v1 = vadd.f32 %v2061_v56, %v2038_v42  ;;  %v2007_v35 = vadd.f32 %v1999_v59, %v1975_v55  ;;  %v4597_v6 = vmul.f32 %v4249_v9, %v4587_v8 }
  0xd9   :  { %v4601_v39 = vmul.f32 %v4252_v10, %v4587_v8  ;;  %v4605_v56 = vmul.f32 %v4259_v11, %v4587_v8  ;;  %v4610_v20 = vmul.f32 %v4262_v12, %v4587_v8  ;;  %v4614_v63 = vmul.f32 %v4265_v13, %v4587_v8 }
  0xda   :  { %2080 = vrot.lane.b32.xlu0 %v2070_v1, %s7519_s2  ;;  %v4618_v49 = vmul.f32 %v4268_v14, %v4587_v8  ;;  %v4622_v0 = vmul.f32 %v4275_v15, %v4587_v8  ;;  %v2039_v40 = vadd.f32 %v2031_v44, %v2007_v35  ;;  %v7520_v25 = vrot.slane %v4424_v2, 3  ;;  %v340_v37 = vpop.permute.xlu1 %339  ;;  %v324_v47 = vpop.permute.xlu0 %323 }
  0xdb   :  { %v1894_v59 = vrot.slane %v4601_v39, 1  ;;  %345 = vst.msk [vmem:[#allocation2 + $0x3e] sm:$0x1] %vm153_vm6, %v340_v37  ;;  %329 = vst.msk [vmem:[#allocation2 + $0x3d] sm:$0x1] %vm153_vm6, %v324_v47  ;;  %v7521_v2 = vrot.slane %v4428_v3, 4  ;;  %v2791_v37 = vmul.f32 %v4284_v18, %v4513_v57 }
  0xdc   :  { %v2837_v51 = vsel %vm503_vm9, %v7520_v25, %v2836_v62  ;;  %v2071_v44 = vadd.f32 %v2063_v60, %v2039_v40  ;;  %v7522_v19 = vrot.slane %v4432_v4, 5  ;;  %v7523_v1 = vrot.slane %v4436_v5, 6 }
  0xdd   :  { %v2846_v36 = vadd.f32 %v2837_v51, %v2814_v61  ;;  %v2869_v55 = vsel %vm47_vm0, %v7521_v2, %v2868_v7  ;;  %v2774_v25 = vrot.slane %v2759_v45, 1  ;;  %v2823_v60 = vmul.f32 %v4291_v21, %v4513_v57 }
  0xde   :  { %v2901_v38 = vsel %vm568_vm10, %v7522_v19, %v2900_v32  ;;  %v2933_v35 = vsel %vm601_vm11, %v7523_v1, %v2932_v53  ;;  %2082 = vrot.lane.b32.xlu1 %v2071_v44, %s7519_s2  ;;  %v2855_v61 = vmul.f32 %v4294_v22, %v4513_v57  ;;  %v2887_v4 = vmul.f32 %v4297_v23, %v4513_v57  ;;  %v372_v40 = vpop.permute.xlu1 %371  ;;  %v356_v45 = vpop.permute.xlu0 %355 }
  0xdf   :  { %v2878_v3 = vadd.f32 %v2869_v55, %v2846_v36  ;;  %v2919_v5 = vmul.f32 %v4300_v24, %v4513_v57  ;;  %v7524_v51 = vrot.slane %v4511_v33, 1  ;;  %v2806_v2 = vrot.slane %v2791_v37, 2  ;;  %377 = vst.msk [vmem:[#allocation2 + $0x40] sm:$0x1] %vm153_vm6, %v372_v40  ;;  %361 = vst.msk [vmem:[#allocation2 + $0x3f] sm:$0x1] %vm153_vm6, %v356_v45 }
  0xe0   :  { %v2838_v19 = vrot.slane %v2823_v60, 3  ;;  %v4662_v44 = vmul.f32 %v4278_v16, %v4587_v8  ;;  %v2870_v1 = vrot.slane %v2855_v61, 4  ;;  %v2902_v57 = vrot.slane %v2887_v4, 5 }
  0xe1   :  { %v2775_v47 = vsel %vm437_vm7, %v7524_v51, %v2774_v25  ;;  %v2910_v36 = vadd.f32 %v2901_v38, %v2878_v3  ;;  %v2807_v33 = vsel %vm470_vm8, %v2804_v58, %v2806_v2  ;;  %v2934_v37 = vrot.slane %v2919_v5, 6 }
  0xe2   :  { %v2783_v55 = vadd.f32 %v2775_v47, %v2751_v54  ;;  %v2839_v25 = vsel %vm503_vm9, %v2836_v62, %v2838_v19  ;;  %v4672_v60 = vmul.f32 %v4281_v17, %v4587_v8  ;;  %v2871_v54 = vsel %vm47_vm0, %v2868_v7, %v2870_v1  ;;  %v404_v3 = vpop.permute.xlu1 %403  ;;  %v388_v50 = vpop.permute.xlu0 %387 }
  0xe3   :  { %v4674_v51 = vadd.f32 %v2933_v35, %v2910_v36  ;;  %v2903_v38 = vsel %vm568_vm10, %v2900_v32, %v2902_v57  ;;  %v2935_v58 = vsel %vm601_vm11, %v2932_v53, %v2934_v37  ;;  %v4684_v61 = vmul.f32 %v4284_v18, %v4587_v8  ;;  %409 = vst.msk [vmem:[#allocation2 + $0x42] sm:$0x1] %vm153_vm6, %v404_v3 }
  0xe4   :  { %v2815_v40 = vadd.f32 %v2807_v33, %v2783_v55  ;;  %v4688_v35 = vmul.f32 %v4291_v21, %v4587_v8  ;;  %393 = vst.msk [vmem:[#allocation2 + $0x41] sm:$0x1] %vm153_vm6, %v388_v50  ;;  %v4694_v7 = vmul.f32 %v4294_v22, %v4587_v8  ;;  %v4698_v32 = vmul.f32 %v4297_v23, %v4587_v8 }
  0xe5   :  { %v4702_v53 = vmul.f32 %v4300_v24, %v4587_v8  ;;  %v4708_v45 = vmul.f32 %v4310_v27, %v4484_v26  ;;  %v4712_v47 = vmul.f32 %v4313_v28, %v4484_v26  ;;  %v4723_v37 = vmul.f32 %v4316_v29, %v4484_v26 }
  0xe6   :  { %v2847_v43 = vadd.f32 %v2839_v25, %v2815_v40  ;;  %v4717_v55 = vld [vmem:[#allocation2 + $0x38] sm:$0xff]  ;;  %v170_v1 = vpop.permute.xlu1 %169  ;;  %v150_v57 = vpop.permute.xlu0 %149  ;;  %v4727_v40 = vmul.f32 %v4322_v31, %v4484_v26 }
  0xe7   :  { %7525 = vst [vmem:[#allocation44_spill] sm:$0xff] %v4708_v45  ;;  %7526 = vst [vmem:[#allocation45_spill] sm:$0xff] %v4717_v55  ;;  %v1915_v3 = vmul.f32 %v4259_v11, %v4717_v55  ;;  %v1947_v50 = vmul.f32 %v4262_v12, %v4717_v55  ;;  %v2011_v25 = vmul.f32 %v4268_v14, %v4717_v55 }
  0xe8   :  { %v2879_v2 = vadd.f32 %v2871_v54, %v2847_v43  ;;  %174 = vst.msk [vmem:[#allocation2 + $0x1c] sm:$0x1] %vm153_vm6, %v170_v1  ;;  %155 = vst.msk [vmem:[#allocation2 + $0x1b] sm:$0x1] %vm153_vm6, %v150_v57  ;;  %v1883_v54 = vmul.f32 %v4252_v10, %v4717_v55  ;;  %v1979_v43 = vmul.f32 %v4265_v13, %v4717_v55 }
  0xe9   :  { %v2043_v1 = vmul.f32 %v4275_v15, %v4717_v55  ;;  %v1877_v57 = vmul.f32 %v4249_v9, %v4717_v55  ;;  %v1927_v36 = vrot.slane %v1915_v3, 2  ;;  %v1959_v19 = vrot.slane %v1947_v50, 3 }
  0xea   :  { %v2911_v33 = vadd.f32 %v2903_v38, %v2879_v2  ;;  %v1895_v8 = vrot.slane %v1883_v54, 1  ;;  %v1991_v5 = vrot.slane %v1979_v43, 4  ;;  %v202_v62 = vpop.permute.xlu1 %201  ;;  %v186_v48 = vpop.permute.xlu0 %185  ;;  %v2023_v46 = vrot.slane %v2011_v25, 5 }
  0xeb   :  { %v4745_v4 = vld [vmem:[#allocation2 + $0x40] sm:$0x3f]  ;;  %v2055_v42 = vrot.slane %v2043_v1, 6  ;;  %v4751_v52 = vmul.f32 %v4281_v17, %v4717_v55  ;;  %206 = vst.msk [vmem:[#allocation2 + $0x1e] sm:$0x1] %vm153_vm6, %v202_v62  ;;  %v7527_v38 = vrot.slane %v4605_v56, 2 }
  0xec   :  { %v4747_v41 = vadd.f32 %v2935_v58, %v2911_v33  ;;  %190 = vst.msk [vmem:[#allocation2 + $0x1d] sm:$0x1] %vm153_vm6, %v186_v48  ;;  %v1896_v9 = vsel %vm437_vm7, %v1894_v59, %v1895_v8  ;;  %v7528_v25 = vrot.slane %v4610_v20, 3  ;;  %v7529_v33 = vrot.slane %v4614_v63, 4 }
  0xed   :  { %v1928_v2 = vsel %vm470_vm8, %v7527_v38, %v1927_v36  ;;  %v1908_v62 = vadd.f32 %v1896_v9, %v4597_v6  ;;  %v7530_v48 = vrot.slane %v4618_v49, 5  ;;  %v7531_v59 = vrot.slane %v4622_v0, 6 }
  0xee   :  { %v1960_v58 = vsel %vm503_vm9, %v7528_v25, %v1959_v19  ;;  %v1992_v54 = vsel %vm47_vm0, %v7529_v33, %v1991_v5  ;;  %v1884_v3 = vmul.f32 %v4252_v10, %v4745_v4  ;;  %v1916_v20 = vmul.f32 %v4259_v11, %v4745_v4  ;;  %v234_v50 = vpop.permute.xlu1 %233  ;;  %v218_v43 = vpop.permute.xlu0 %217 }
  0xef   :  { %v2024_v39 = vsel %vm568_vm10, %v7530_v48, %v2023_v46  ;;  %v2056_v56 = vsel %vm601_vm11, %v7531_v59, %v2055_v42  ;;  %v1948_v63 = vmul.f32 %v4262_v12, %v4745_v4  ;;  %v1980_v6 = vmul.f32 %v4265_v13, %v4745_v4  ;;  %238 = vst.msk [vmem:[#allocation2 + $0x20] sm:$0x1] %vm153_vm6, %v234_v50 }
  0xf0   :  { %v2012_v49 = vmul.f32 %v4268_v14, %v4745_v4  ;;  %v1940_v0 = vadd.f32 %v1928_v2, %v1908_v62  ;;  %v1897_v1 = vrot.slane %v1884_v3, 1  ;;  %v2044_v9 = vmul.f32 %v4275_v15, %v4745_v4  ;;  %222 = vst.msk [vmem:[#allocation2 + $0x1f] sm:$0x1] %vm153_vm6, %v218_v43 }
  0xf1   :  { %v2767_v10 = vrot.slane %v4751_v52, 1  ;;  %v1929_v11 = vrot.slane %v1916_v20, 2  ;;  %v1961_v12 = vrot.slane %v1948_v63, 3  ;;  %v1993_v38 = vrot.slane %v1980_v6, 4 }
  0xf2   :  { %v2025_v13 = vrot.slane %v2012_v49, 5  ;;  %v1972_v25 = vadd.f32 %v1960_v58, %v1940_v0  ;;  %v1898_v14 = vsel %vm437_vm7, %v1895_v8, %v1897_v1  ;;  %v2057_v33 = vrot.slane %v2044_v9, 6  ;;  %v266_v3 = vpop.permute.xlu1 %265  ;;  %v250_v20 = vpop.permute.xlu0 %249 }
  0xf3   :  { %v7532_v2 = vrot.slane %v4672_v60, 1  ;;  %v1909_v48 = vadd.f32 %v1898_v14, %v1877_v57  ;;  %v1930_v15 = vsel %vm470_vm8, %v1927_v36, %v1929_v11  ;;  %v1962_v52 = vsel %vm503_vm9, %v1959_v19, %v1961_v12  ;;  %270 = vst.msk [vmem:[#allocation2 + $0x22] sm:$0x1] %vm153_vm6, %v266_v3  ;;  %254 = vst.msk [vmem:[#allocation2 + $0x21] sm:$0x1] %vm153_vm6, %v250_v20 }
  0xf4   :  { %v1994_v59 = vsel %vm47_vm0, %v1991_v5, %v1993_v38  ;;  %v2004_v63 = vadd.f32 %v1992_v54, %v1972_v25  ;;  %v2026_v6 = vsel %vm568_vm10, %v2023_v46, %v2025_v13  ;;  %v2058_v58 = vsel %vm601_vm11, %v2055_v42, %v2057_v33 }
  0xf5   :  { %v2768_v62 = vsel %vm437_vm7, %v7532_v2, %v2767_v10  ;;  %v1941_v60 = vadd.f32 %v1930_v15, %v1909_v48  ;;  %v2787_v36 = vmul.f32 %v4284_v18, %v4717_v55  ;;  %v2819_v5 = vmul.f32 %v4291_v21, %v4717_v55 }
  0xf6   :  { %v2780_v8 = vadd.f32 %v2768_v62, %v4662_v44  ;;  %v2851_v19 = vmul.f32 %v4294_v22, %v4717_v55  ;;  %v2036_v57 = vadd.f32 %v2024_v39, %v2004_v63  ;;  %v2883_v42 = vmul.f32 %v4297_v23, %v4717_v55  ;;  %v302_v0 = vpop.permute.xlu1 %301  ;;  %v284_v1 = vpop.permute.xlu0 %283 }
  0xf7   :  { %v2915_v46 = vmul.f32 %v4300_v24, %v4717_v55  ;;  %v2749_v44 = vmul.f32 %v4278_v16, %v4717_v55  ;;  %v1973_v54 = vadd.f32 %v1962_v52, %v1941_v60  ;;  %v2799_v49 = vrot.slane %v2787_v36, 2  ;;  %306 = vst.msk [vmem:[#allocation2 + $0x24] sm:$0x1] %vm153_vm6, %v302_v0  ;;  %288 = vst.msk [vmem:[#allocation2 + $0x23] sm:$0x1] %vm153_vm6, %v284_v1  ;;  %v4839_v3 = vld [vmem:[#allocation2 + $0x18] sm:$0xff] }
  0xf8   :  { %v2831_v50 = vrot.slane %v2819_v5, 3  ;;  %v2863_v43 = vrot.slane %v2851_v19, 4  ;;  %v2068_v9 = vadd.f32 %v2056_v56, %v2036_v57  ;;  %v2895_v11 = vrot.slane %v2883_v42, 5  ;;  %7538 = vst [vmem:[#allocation46_spill] sm:$0xff] %v4839_v3  ;;  %v7539_v0 = vld [vmem:[#allocation21_spill] sm:$0xff] }
  0xf9   :  { %v2927_v12 = vrot.slane %v2915_v46, 6  ;;  %v2756_v39 = vmul.f32 %v4281_v17, %v4745_v4  ;;  %v2005_v38 = vadd.f32 %v1994_v59, %v1973_v54  ;;  %v7533_v13 = vrot.slane %v4684_v61, 2 }
  0xfa   :  { %v7534_v25 = vrot.slane %v4688_v35, 3  ;;  %v7535_v56 = vrot.slane %v4694_v7, 4  ;;  %2076 = vrot.lane.b32.xlu0 %v2068_v9, %s7519_s2  ;;  %v7536_v2 = vrot.slane %v4698_v32, 5  ;;  %v7537_v48 = vrot.slane %v4702_v53, 6  ;;  %v334_v32 = vpop.permute.xlu1 %333  ;;  %v318_v20 = vpop.permute.xlu0 %317  ;;  %v7540_v9 = vld [vmem:[#allocation22_spill] sm:$0xff] }
  0xfb   :  { %v2800_v16 = vsel %vm470_vm8, %v7533_v13, %v2799_v49  ;;  %v2769_v15 = vrot.slane %v2756_v39, 1  ;;  %v2037_v52 = vadd.f32 %v2026_v6, %v2005_v38  ;;  %v2788_v35 = vmul.f32 %v4284_v18, %v4745_v4  ;;  %338 = vst.msk [vmem:[#allocation2 + $0x26] sm:$0x1] %vm153_vm6, %v334_v32  ;;  %322 = vst.msk [vmem:[#allocation2 + $0x25] sm:$0x1] %vm153_vm6, %v318_v20  ;;  %v7547_v20 = vld [vmem:[#allocation29_spill] sm:$0xff] }
  0xfc   :  { %v2832_v14 = vsel %vm503_vm9, %v7534_v25, %v2831_v50  ;;  %v2864_v33 = vsel %vm47_vm0, %v7535_v56, %v2863_v43  ;;  %v2812_v17 = vadd.f32 %v2800_v16, %v2780_v8  ;;  %v2896_v62 = vsel %vm568_vm10, %v7536_v2, %v2895_v11  ;;  %v7542_v16 = vld [vmem:[#allocation24_spill] sm:$0xff]  ;;  %v7543_v56 = vld [vmem:[#allocation25_spill] sm:$0xff] }
  0xfd   :  { %v2928_v61 = vsel %vm601_vm11, %v7537_v48, %v2927_v12  ;;  %v2820_v7 = vmul.f32 %v4291_v21, %v4745_v4  ;;  %v2852_v59 = vmul.f32 %v4294_v22, %v4745_v4  ;;  %v2770_v53 = vsel %vm437_vm7, %v2767_v10, %v2769_v15 }
  0xfe   :  { %v2844_v63 = vadd.f32 %v2832_v14, %v2812_v17  ;;  %v2884_v8 = vmul.f32 %v4297_v23, %v4745_v4  ;;  %v2916_v6 = vmul.f32 %v4300_v24, %v4745_v4  ;;  %v2069_v18 = vadd.f32 %v2058_v58, %v2037_v52  ;;  %2952 = vrot.lane.b32.xlu0 %v4674_v51, %s4015_s1  ;;  %v366_v57 = vpop.permute.xlu1 %365  ;;  %v350_v51 = vpop.permute.xlu0 %349  ;;  %v7544_v17 = vld [vmem:[#allocation26_spill] sm:$0xff]  ;;  %v7545_v52 = vld [vmem:[#allocation27_spill] sm:$0xff] }
  0xff   :  { %v2781_v21 = vadd.f32 %v2770_v53, %v2749_v44  ;;  %v2801_v22 = vrot.slane %v2788_v35, 2  ;;  %v2833_v60 = vrot.slane %v2820_v7, 3  ;;  %v2865_v10 = vrot.slane %v2852_v59, 4  ;;  %370 = vst.msk [vmem:[#allocation2 + $0x28] sm:$0x1] %vm153_vm6, %v366_v57  ;;  %v7546_v59 = vld [vmem:[#allocation28_spill] sm:$0xff] }
 0x100   :  { %v2876_v36 = vadd.f32 %v2864_v33, %v2844_v63  ;;  %v2897_v5 = vrot.slane %v2884_v8, 5  ;;  %v2929_v19 = vrot.slane %v2916_v6, 6  ;;  %2078 = vrot.lane.b32.xlu1 %v2069_v18, %s7519_s2  ;;  %v4855_v4 = vmul.f32 %v4319_v30, %v4839_v3  ;;  %354 = vst.msk [vmem:[#allocation2 + $0x27] sm:$0x1] %vm153_vm6, %v350_v51  ;;  %v7548_v53 = vld [vmem:[#allocation30_spill] sm:$0xff]  ;;  %s6250_s2 = sld [smem:[#allocation8 + $0x39]] }
 0x101   :  { %v2802_v23 = vsel %vm470_vm8, %v2799_v49, %v2801_v22  ;;  %v2834_v24 = vsel %vm503_vm9, %v2831_v50, %v2833_v60  ;;  %v4859_v58 = vmul.f32 %v4331_v34, %v4839_v3  ;;  %v2866_v44 = vsel %vm47_vm0, %v2863_v43, %v2865_v10  ;;  %v7550_v60 = vld [vmem:[#allocation32_spill] sm:$0xff] }
 0x102   :  { %v2908_v42 = vadd.f32 %v2896_v62, %v2876_v36  ;;  %v2813_v46 = vadd.f32 %v2802_v23, %v2781_v21  ;;  %v2898_v54 = vsel %vm568_vm10, %v2895_v11, %v2897_v5  ;;  %v2930_v49 = vsel %vm601_vm11, %v2927_v12, %v2929_v19  ;;  %v7541_v11 = vld [vmem:[#allocation23_spill] sm:$0xff]  ;;  %v398_v62 = vpop.permute.xlu1 %397  ;;  %v382_v48 = vpop.permute.xlu0 %381 }
 0x103   :  { %v1457_v50 = vrot.slane %v4859_v58, 1  ;;  %v4869_v1 = vmul.f32 %v7539_v0, %v4839_v3  ;;  %v4873_v39 = vmul.f32 %v7540_v9, %v4839_v3  ;;  %v4877_v13 = vmul.f32 %v7541_v11, %v4839_v3  ;;  %402 = vst.msk [vmem:[#allocation2 + $0x2a] sm:$0x1] %vm153_vm6, %v398_v62  ;;  %386 = vst.msk [vmem:[#allocation2 + $0x29] sm:$0x1] %vm153_vm6, %v382_v48  ;;  %v7549_v21 = vld [vmem:[#allocation31_spill] sm:$0xff] }
 0x104   :  { %v2940_v38 = vadd.f32 %v2928_v61, %v2908_v42  ;;  %v2845_v43 = vadd.f32 %v2834_v24, %v2813_v46  ;;  %v4881_v25 = vmul.f32 %v7542_v16, %v4839_v3  ;;  %2954 = vrot.lane.b32.xlu1 %v4747_v41, %s4015_s1  ;;  %v1603_v33 = vmul.f32 %v7543_v56, %v4839_v3  ;;  %v7552_v24 = vld [vmem:[#allocation35_spill] sm:$0xff] }
 0x105   :  { %v1489_v12 = vrot.slane %v4869_v1, 2  ;;  %v1521_v14 = vrot.slane %v4873_v39, 3  ;;  %v4891_v2 = vmul.f32 %v7544_v17, %v4839_v3  ;;  %v1553_v15 = vrot.slane %v4877_v13, 4 }
 0x106   :  { %2948 = vrot.lane.b32.xlu0 %v2940_v38, %s4015_s1  ;;  %v2877_v61 = vadd.f32 %v2866_v44, %v2845_v43  ;;  %v1585_v41 = vrot.slane %v4881_v25, 5  ;;  %v4898_v35 = vmul.f32 %v7545_v52, %v4839_v3  ;;  %v1617_v7 = vrot.slane %v1603_v33, 6  ;;  %v168_v44 = vpop.permute.xlu1 %167  ;;  %v7555_v38 = vld [vmem:[#allocation41_spill] sm:$0xff] }
 0x107   :  { %v4904_v32 = vmul.f32 %v7546_v59, %v4839_v3  ;;  %v4908_v63 = vmul.f32 %v7547_v20, %v4839_v3  ;;  %v4912_v8 = vmul.f32 %v7548_v53, %v4839_v3  ;;  %v4917_v22 = vmul.f32 %v7549_v21, %v4839_v3  ;;  %v4931_v42 = vld [vmem:[#allocation2 + $0x20] sm:$0xff]  ;;  %173 = vst.msk [vmem:[#allocation2 + $0x4] sm:$0x1] %vm153_vm6, %v168_v44 }
 0x108   :  { %v2909_v6 = vadd.f32 %v2898_v54, %v2877_v61  ;;  %v1675_v18 = vrot.slane %v4898_v35, 1  ;;  %v4921_v36 = vmul.f32 %v7550_v60, %v4839_v3  ;;  %v7551_v23 = vrot.slane %v4708_v45, 1  ;;  %7554 = vst [vmem:[#allocation21_spill] sm:$0xff] %v4931_v42  ;;  %v148_v54 = vpop.permute.xlu0 %147 }
 0x109   :  { %v7553_v57 = vrot.slane %v7552_v24, 1  ;;  %154 = vst.msk [vmem:[#allocation2 + $0x3] sm:$0x1] %vm153_vm6, %v148_v54  ;;  %v1444_v13 = vmul.f32 %v4331_v34, %v4931_v42  ;;  %v1476_v25 = vmul.f32 %v7539_v0, %v4931_v42  ;;  %v1540_v33 = vmul.f32 %v7541_v11, %v4931_v42 }
 0x10a   :  { %v2941_v46 = vadd.f32 %v2930_v49, %v2909_v6  ;;  %v1508_v49 = vmul.f32 %v7540_v9, %v4931_v42  ;;  %v1572_v62 = vmul.f32 %v7542_v16, %v4931_v42  ;;  %v1604_v48 = vmul.f32 %v7543_v56, %v4931_v42 }
 0x10b   :  { %v2337_v51 = vsel %vm437_vm7, %v7553_v57, %v7551_v23  ;;  %v1437_v61 = vmul.f32 %v4319_v30, %v4931_v42  ;;  %v4957_v35 = vmul.f32 %v7545_v52, %v4931_v42  ;;  %v1458_v6 = vrot.slane %v1444_v13, 1 }
 0x10c   :  { %v4936_v43 = vadd.f32 %v2337_v51, %v7555_v38  ;;  %2950 = vrot.lane.b32.xlu1 %v2941_v46, %s4015_s1  ;;  %v1490_v23 = vrot.slane %v1476_v25, 2  ;;  %v1522_v24 = vrot.slane %v1508_v49, 3  ;;  %v1554_v57 = vrot.slane %v1540_v33, 4  ;;  %v4959_v51 = vld [vmem:[#allocation2 + $0x28] sm:$0x3f]  ;;  %v200_v46 = vpop.permute.xlu1 %199  ;;  %v184_v44 = vpop.permute.xlu0 %183 }
 0x10d   :  { %7556 = vst [vmem:[#allocation22_spill] sm:$0xff] %v4959_v51  ;;  %v1586_v54 = vrot.slane %v1572_v62, 5  ;;  %v1618_v38 = vrot.slane %v1604_v48, 6  ;;  %v7451_v39 = vrot.slane %v4957_v35, 1  ;;  %v4964_v1 = vmul.f32 %v7546_v59, %v4931_v42  ;;  %205 = vst.msk [vmem:[#allocation2 + $0x6] sm:$0x1] %vm153_vm6, %v200_v46 }
 0x10e   :  { %189 = vst.msk [vmem:[#allocation2 + $0x5] sm:$0x1] %vm153_vm6, %v184_v44  ;;  %v1459_v13 = vsel %vm437_vm7, %v1457_v50, %v1458_v6  ;;  %v1491_v25 = vsel %vm470_vm8, %v1489_v12, %v1490_v23  ;;  %v1523_v49 = vsel %vm503_vm9, %v1521_v14, %v1522_v24  ;;  %v1555_v33 = vsel %vm47_vm0, %v1553_v15, %v1554_v57 }
 0x10f   :  { %v1468_v62 = vadd.f32 %v1459_v13, %v4855_v4  ;;  %v1587_v48 = vsel %vm568_vm10, %v1585_v41, %v1586_v54  ;;  %v1619_v19 = vsel %vm601_vm11, %v1617_v7, %v1618_v38  ;;  %v1445_v46 = vmul.f32 %v4331_v34, %v4959_v51 }
 0x110   :  { %v1477_v58 = vmul.f32 %v7539_v0, %v4959_v51  ;;  %v1509_v50 = vmul.f32 %v7540_v9, %v4959_v51  ;;  %v1541_v12 = vmul.f32 %v7541_v11, %v4959_v51  ;;  %v1573_v14 = vmul.f32 %v7542_v16, %v4959_v51  ;;  %v232_v4 = vpop.permute.xlu1 %231  ;;  %v216_v15 = vpop.permute.xlu0 %215 }
 0x111   :  { %v1500_v41 = vadd.f32 %v1491_v25, %v1468_v62  ;;  %v1460_v44 = vrot.slane %v1445_v46, 1  ;;  %v1605_v7 = vmul.f32 %v7543_v56, %v4959_v51  ;;  %v1677_v13 = vsel %vm437_vm7, %v1675_v18, %v7451_v39  ;;  %237 = vst.msk [vmem:[#allocation2 + $0x8] sm:$0x1] %vm153_vm6, %v232_v4  ;;  %221 = vst.msk [vmem:[#allocation2 + $0x7] sm:$0x1] %vm153_vm6, %v216_v15 }
 0x112   :  { %v1492_v5 = vrot.slane %v1477_v58, 2  ;;  %v1524_v10 = vrot.slane %v1509_v50, 3  ;;  %v1556_v3 = vrot.slane %v1541_v12, 4  ;;  %v1588_v55 = vrot.slane %v1573_v14, 5 }
 0x113   :  { %v1532_v45 = vadd.f32 %v1523_v49, %v1500_v41  ;;  %v1461_v31 = vsel %vm437_vm7, %v1458_v6, %v1460_v44  ;;  %v1620_v25 = vrot.slane %v1605_v7, 6  ;;  %v1686_v62 = vadd.f32 %v1677_v13, %v4891_v2 }
 0x114   :  { %v1469_v46 = vadd.f32 %v1461_v31, %v1437_v61  ;;  %v1493_v29 = vsel %vm470_vm8, %v1490_v23, %v1492_v5  ;;  %v1525_v28 = vsel %vm503_vm9, %v1522_v24, %v1524_v10  ;;  %v1557_v18 = vsel %vm47_vm0, %v1554_v57, %v1556_v3  ;;  %v264_v4 = vpop.permute.xlu1 %263  ;;  %v248_v39 = vpop.permute.xlu0 %247  ;;  %v7559_v61 = vld [vmem:[#allocation36_spill] sm:$0xff] }
 0x115   :  { %v1564_v15 = vadd.f32 %v1555_v33, %v1532_v45  ;;  %v1589_v58 = vsel %vm568_vm10, %v1586_v54, %v1588_v55  ;;  %v1621_v50 = vsel %vm601_vm11, %v1618_v38, %v1620_v25  ;;  %v1708_v49 = vrot.slane %v4964_v1, 2  ;;  %269 = vst.msk [vmem:[#allocation2 + $0xa] sm:$0x1] %vm153_vm6, %v264_v4  ;;  %253 = vst.msk [vmem:[#allocation2 + $0x9] sm:$0x1] %vm153_vm6, %v248_v39 }
 0x116   :  { %v1501_v31 = vadd.f32 %v1493_v29, %v1469_v46  ;;  %v5006_v2 = vmul.f32 %v7547_v20, %v4931_v42  ;;  %v5010_v3 = vmul.f32 %v7548_v53, %v4931_v42  ;;  %v5014_v45 = vmul.f32 %v7549_v21, %v4931_v42 }
 0x117   :  { %v1596_v55 = vadd.f32 %v1587_v48, %v1564_v15  ;;  %v7557_v10 = vrot.slane %v4904_v32, 2  ;;  %v5023_v29 = vmul.f32 %v7550_v60, %v4931_v42  ;;  %v7558_v39 = vrot.slane %v4712_v47, 2 }
 0x118   :  { %v7560_v6 = vrot.slane %v7559_v61, 2  ;;  %v1533_v24 = vadd.f32 %v1525_v28, %v1501_v31  ;;  %v1740_v54 = vrot.slane %v5006_v2, 3  ;;  %v1772_v38 = vrot.slane %v5010_v3, 4  ;;  %v5032_v33 = vld [vmem:[#allocation2] sm:$0xff]  ;;  %v300_v32 = vpop.permute.xlu1 %299  ;;  %v282_v48 = vpop.permute.xlu0 %281 }
 0x119   :  { %v1709_v5 = vsel %vm470_vm8, %v7557_v10, %v1708_v49  ;;  %v1628_v12 = vadd.f32 %v1619_v19, %v1596_v55  ;;  %v1804_v14 = vrot.slane %v5014_v45, 5  ;;  %v7454_v41 = vrot.slane %v5023_v29, 6  ;;  %305 = vst.msk [vmem:[#allocation2 + $0xc] sm:$0x1] %vm153_vm6, %v300_v32  ;;  %287 = vst.msk [vmem:[#allocation2 + $0xb] sm:$0x1] %vm153_vm6, %v282_v48 }
 0x11a   :  { %v2369_v23 = vsel %vm470_vm8, %v7560_v6, %v7558_v39  ;;  %v1718_v57 = vadd.f32 %v1709_v5, %v1686_v62  ;;  %v1565_v28 = vadd.f32 %v1557_v18, %v1533_v24  ;;  %v5041_v7 = vmul.f32 %v4319_v30, %v5032_v33 }
 0x11b   :  { %v2378_v44 = vadd.f32 %v2369_v23, %v4936_v43  ;;  %v5045_v13 = vmul.f32 %v4331_v34, %v5032_v33  ;;  %v5049_v19 = vmul.f32 %v7539_v0, %v5032_v33  ;;  %1638 = vrot.lane.b32.xlu0 %v1628_v12, %s4016_s22  ;;  %v5054_v43 = vmul.f32 %v7540_v9, %v5032_v33 }
 0x11c   :  { %v5058_v25 = vmul.f32 %v7541_v11, %v5032_v33  ;;  %v5062_v62 = vmul.f32 %v7542_v16, %v5032_v33  ;;  %v5066_v46 = vmul.f32 %v7543_v56, %v5032_v33  ;;  %v1597_v18 = vadd.f32 %v1589_v58, %v1565_v28  ;;  %v332_v10 = vpop.permute.xlu1 %331  ;;  %v316_v5 = vpop.permute.xlu0 %315 }
 0x11d   :  { %v7561_v31 = vrot.slane %v4908_v63, 3  ;;  %337 = vst.msk [vmem:[#allocation2 + $0xe] sm:$0x1] %vm153_vm6, %v332_v10  ;;  %321 = vst.msk [vmem:[#allocation2 + $0xd] sm:$0x1] %vm153_vm6, %v316_v5  ;;  %v7562_v63 = vrot.slane %v4912_v8, 4  ;;  %v1663_v5 = vmul.f32 %v7545_v52, %v4959_v51  ;;  %v1695_v61 = vmul.f32 %v7546_v59, %v4959_v51 }
 0x11e   :  { %v1629_v23 = vadd.f32 %v1621_v50, %v1597_v18  ;;  %v7563_v48 = vrot.slane %v4917_v22, 5  ;;  %v7564_v28 = vrot.slane %v4921_v36, 6  ;;  %v7452_v50 = vrot.slane %v4723_v37, 3  ;;  %v7565_v8 = vld [vmem:[#allocation19_spill] sm:$0xff]  ;;  %v7566_v22 = vld [vmem:[#allocation20_spill] sm:$0xff] }
 0x11f   :  { %v1741_v55 = vsel %vm503_vm9, %v7561_v31, %v1740_v54  ;;  %v1773_v32 = vsel %vm47_vm0, %v7562_v63, %v1772_v38  ;;  %v5100_v18 = vmul.f32 %v7565_v8, %v4484_v26  ;;  %v5105_v10 = vmul.f32 %v7566_v22, %v4484_v26 }
 0x120   :  { %v1750_v24 = vadd.f32 %v1741_v55, %v1718_v57  ;;  %v1805_v12 = vsel %vm568_vm10, %v7563_v48, %v1804_v14  ;;  %v1837_v31 = vsel %vm601_vm11, %v7564_v28, %v7454_v41  ;;  %v7453_v57 = vrot.slane %v4727_v40, 4  ;;  %1640 = vrot.lane.b32.xlu1 %v1629_v23, %s4016_s22  ;;  %v364_v63 = vpop.permute.xlu1 %363  ;;  %v348_v48 = vpop.permute.xlu0 %347  ;;  %v7567_v28 = vld [vmem:[#allocation37_spill] sm:$0xff]  ;;  %v7569_v23 = vld [vmem:[#allocation38_spill] sm:$0xff] }
 0x121   :  { %v1655_v36 = vmul.f32 %v7544_v17, %v4931_v42  ;;  %v7568_v58 = vrot.slane %v7567_v28, 3  ;;  %369 = vst.msk [vmem:[#allocation2 + $0x10] sm:$0x1] %vm153_vm6, %v364_v63  ;;  %353 = vst.msk [vmem:[#allocation2 + $0xf] sm:$0x1] %vm153_vm6, %v348_v48  ;;  %v7456_v28 = vrot.slane %v5105_v10, 6  ;;  %v1727_v4 = vmul.f32 %v7547_v20, %v4959_v51 }
 0x122   :  { %v1782_v55 = vadd.f32 %v1773_v32, %v1750_v24  ;;  %v7570_v24 = vrot.slane %v7569_v23, 4  ;;  %v7455_v32 = vrot.slane %v5100_v18, 5  ;;  %v1759_v63 = vmul.f32 %v7548_v53, %v4959_v51 }
 0x123   :  { %v2401_v6 = vsel %vm503_vm9, %v7568_v58, %v7452_v50  ;;  %v1678_v58 = vrot.slane %v1663_v5, 1  ;;  %v7571_v50 = vld [vmem:[#allocation39_spill] sm:$0xff]  ;;  %v5180_v3 = vmul.f32 %v7547_v20, %v5032_v33  ;;  %v7577_v42 = vrot.slane %v5045_v13, 1 }
 0x124   :  { %v2433_v26 = vsel %vm47_vm0, %v7570_v24, %v7453_v57  ;;  %v1814_v39 = vadd.f32 %v1805_v12, %v1782_v55  ;;  %v2410_v15 = vadd.f32 %v2401_v6, %v2378_v44  ;;  %v7572_v23 = vrot.slane %v7571_v50, 5  ;;  %v7573_v44 = vld [vmem:[#allocation40_spill] sm:$0xff]  ;;  %v380_v48 = vpop.permute.xlu0 %379 }
 0x125   :  { %v1710_v57 = vrot.slane %v1695_v61, 2  ;;  %v7574_v6 = vrot.slane %v7573_v44, 6  ;;  %v7575_v50 = vrot.slane %v4957_v35, 1  ;;  %v396_v61 = vpop.permute.xlu1 %395  ;;  %385 = vst.msk [vmem:[#allocation2 + $0x11] sm:$0x1] %vm153_vm6, %v380_v48  ;;  %v1823_v35 = vmul.f32 %v7550_v60, %v4959_v51 }
 0x126   :  { %v2465_v24 = vsel %vm568_vm10, %v7572_v23, %v7455_v32  ;;  %v5136_v41 = vadd.f32 %v1837_v31, %v1814_v39  ;;  %v2442_v12 = vadd.f32 %v2433_v26, %v2410_v15  ;;  %v1742_v39 = vrot.slane %v1727_v4, 3  ;;  %401 = vst.msk [vmem:[#allocation2 + $0x12] sm:$0x1] %vm153_vm6, %v396_v61 }
 0x127   :  { %v2497_v55 = vsel %vm601_vm11, %v7574_v6, %v7456_v28  ;;  %v1679_v5 = vsel %vm437_vm7, %v7575_v50, %v1678_v58  ;;  %v1711_v32 = vsel %vm470_vm8, %v1708_v49, %v1710_v57  ;;  %v1774_v31 = vrot.slane %v1759_v63, 4 }
 0x128   :  { %v1687_v23 = vadd.f32 %v1679_v5, %v1655_v36  ;;  %v2474_v15 = vadd.f32 %v2465_v24, %v2442_v12  ;;  %v1791_v26 = vmul.f32 %v7549_v21, %v4959_v51  ;;  %v5157_v36 = vmul.f32 %v7544_v17, %v5032_v33 }
 0x129   :  { %v1743_v49 = vsel %vm503_vm9, %v1740_v54, %v1742_v39  ;;  %v1775_v4 = vsel %vm47_vm0, %v1772_v38, %v1774_v31  ;;  %v5167_v57 = vmul.f32 %v7545_v52, %v5032_v33  ;;  %v1838_v63 = vrot.slane %v1823_v35, 6 }
 0x12a   :  { %v1719_v1 = vadd.f32 %v1711_v32, %v1687_v23  ;;  %v5169_v58 = vadd.f32 %v2497_v55, %v2474_v15  ;;  %v1806_v24 = vrot.slane %v1791_v26, 5  ;;  %v5173_v12 = vmul.f32 %v7546_v59, %v5032_v33  ;;  %v5175_v32 = vld [vmem:[#allocation2 + $0x8] sm:$0xff] }
 0x12b   :  { %v5184_v38 = vmul.f32 %v7548_v53, %v5032_v33  ;;  %v1441_v44 = vmul.f32 %v4331_v34, %v5175_v32  ;;  %v1473_v6 = vmul.f32 %v7539_v0, %v5175_v32  ;;  %v1505_v55 = vmul.f32 %v7540_v9, %v5175_v32 }
 0x12c   :  { %v1751_v2 = vadd.f32 %v1743_v49, %v1719_v1  ;;  %v1537_v50 = vmul.f32 %v7541_v11, %v5175_v32  ;;  %v1569_v5 = vmul.f32 %v7542_v16, %v5175_v32  ;;  %v1601_v61 = vmul.f32 %v7543_v56, %v5175_v32 }
 0x12d   :  { %v1435_v48 = vmul.f32 %v4319_v30, %v5175_v32  ;;  %v1453_v39 = vrot.slane %v1441_v44, 1  ;;  %v1485_v31 = vrot.slane %v1473_v6, 2  ;;  %v1517_v15 = vrot.slane %v1505_v55, 3  ;;  %v5200_v35 = vld [vmem:[#allocation2 + $0x10] sm:$0x3f] }
 0x12e   :  { %v1783_v23 = vadd.f32 %v1775_v4, %v1751_v2  ;;  %v1549_v26 = vrot.slane %v1537_v50, 4  ;;  %v1581_v1 = vrot.slane %v1569_v5, 5  ;;  %v1613_v49 = vrot.slane %v1601_v61, 6 }
 0x12f   :  { %v1807_v28 = vsel %vm568_vm10, %v1804_v14, %v1806_v24  ;;  %v7576_v54 = vrot.slane %v5023_v29, 6  ;;  %v1454_v30 = vsel %vm437_vm7, %v7577_v42, %v1453_v39  ;;  %v7578_v4 = vrot.slane %v5049_v19, 2 }
 0x130   :  { %v7579_v44 = vrot.slane %v5054_v43, 3  ;;  %v7580_v45 = vrot.slane %v5058_v25, 4  ;;  %v1466_v29 = vadd.f32 %v1454_v30, %v5041_v7  ;;  %v7581_v24 = vrot.slane %v5062_v62, 5 }
 0x131   :  { %v1839_v51 = vsel %vm601_vm11, %v7576_v54, %v1838_v63  ;;  %v1486_v2 = vsel %vm470_vm8, %v7578_v4, %v1485_v31  ;;  %v7582_v42 = vrot.slane %v5066_v46, 6  ;;  %v1442_v63 = vmul.f32 %v4331_v34, %v5200_v35 }
 0x132   :  { %v1518_v6 = vsel %vm503_vm9, %v7579_v44, %v1517_v15  ;;  %v1550_v14 = vsel %vm47_vm0, %v7580_v45, %v1549_v26  ;;  %v1582_v13 = vsel %vm568_vm10, %v7581_v24, %v1581_v1  ;;  %v1474_v43 = vmul.f32 %v7539_v0, %v5200_v35 }
 0x133   :  { %v1614_v19 = vsel %vm601_vm11, %v7582_v42, %v1613_v49  ;;  %v1506_v25 = vmul.f32 %v7540_v9, %v5200_v35  ;;  %v1538_v7 = vmul.f32 %v7541_v11, %v5200_v35  ;;  %v1570_v62 = vmul.f32 %v7542_v16, %v5200_v35 }
 0x134   :  { %v1498_v54 = vadd.f32 %v1486_v2, %v1466_v29  ;;  %v1455_v55 = vrot.slane %v1442_v63, 1  ;;  %v1602_v46 = vmul.f32 %v7543_v56, %v5200_v35  ;;  %v1815_v50 = vadd.f32 %v1807_v28, %v1783_v23 }
 0x135   :  { %v1487_v5 = vrot.slane %v1474_v43, 2  ;;  %v1519_v34 = vrot.slane %v1506_v25, 3  ;;  %v1551_v61 = vrot.slane %v1538_v7, 4  ;;  %v1583_v30 = vrot.slane %v1570_v62, 5 }
 0x136   :  { %v1530_v0 = vadd.f32 %v1518_v6, %v1498_v54  ;;  %v1456_v4 = vsel %vm437_vm7, %v1453_v39, %v1455_v55  ;;  %v1615_v9 = vrot.slane %v1602_v46, 6  ;;  %v5240_v44 = vadd.f32 %v1839_v51, %v1815_v50 }
 0x137   :  { %v1467_v11 = vadd.f32 %v1456_v4, %v1435_v48  ;;  %v1488_v45 = vsel %vm470_vm8, %v1485_v31, %v1487_v5  ;;  %v1520_v16 = vsel %vm503_vm9, %v1517_v15, %v1519_v34  ;;  %v1552_v2 = vsel %vm47_vm0, %v1549_v26, %v1551_v61  ;;  %v5298_v5 = vld [vmem:[#allocation2 + $0x50] sm:$0xff]  ;;  %v7584_v34 = vld [vmem:[#allocation15_spill] sm:$0xff]  ;;  %v5303_v4 = vld [vmem:[#allocation2 + $0x58] sm:$0x3f] }
 0x138   :  { %v1562_v29 = vadd.f32 %v1550_v14, %v1530_v0  ;;  %v1584_v56 = vsel %vm568_vm10, %v1581_v1, %v1583_v30  ;;  %v1616_v28 = vsel %vm601_vm11, %v1613_v49, %v1615_v9  ;;  %v5249_v23 = vmul.f32 %v7545_v52, %v5175_v32 }
 0x139   :  { %v1499_v39 = vadd.f32 %v1488_v45, %v1467_v11  ;;  %v5253_v51 = vmul.f32 %v7546_v59, %v5175_v32  ;;  %v1702_v48 = vrot.slane %v5173_v12, 2  ;;  %v5258_v31 = vmul.f32 %v7547_v20, %v5175_v32 }
 0x13a   :  { %v1594_v15 = vadd.f32 %v1582_v13, %v1562_v29  ;;  %v1671_v26 = vrot.slane %v5249_v23, 1  ;;  %v1734_v1 = vrot.slane %v5180_v3, 3  ;;  %v5264_v49 = vmul.f32 %v7548_v53, %v5175_v32  ;;  %v7586_v29 = vld [vmem:[#allocation17_spill] sm:$0xff] }
 0x13b   :  { %v1531_v6 = vadd.f32 %v1520_v16, %v1499_v39  ;;  %v1703_v14 = vrot.slane %v5253_v51, 2  ;;  %v1735_v24 = vrot.slane %v5258_v31, 3  ;;  %v1766_v12 = vrot.slane %v5184_v38, 4 }
 0x13c   :  { %v1626_v42 = vadd.f32 %v1614_v19, %v1594_v15  ;;  %v7583_v13 = vrot.slane %v5167_v57, 1  ;;  %v1767_v3 = vrot.slane %v5264_v49, 4  ;;  %v1786_v43 = vmul.f32 %v7549_v21, %v5032_v33 }
 0x13d   :  { %v1563_v25 = vadd.f32 %v1552_v2, %v1531_v6  ;;  %v1704_v62 = vsel %vm470_vm8, %v1702_v48, %v1703_v14  ;;  %v1736_v38 = vsel %vm503_vm9, %v1734_v1, %v1735_v24  ;;  %v5290_v19 = vmul.f32 %v7549_v21, %v5175_v32  ;;  %v7587_v1 = vld [vmem:[#allocation18_spill] sm:$0xff] }
 0x13e   :  { %v1672_v63 = vsel %vm437_vm7, %v7583_v13, %v1671_v26  ;;  %1634 = vrot.lane.b32.xlu0 %v1626_v42, %s4016_s22  ;;  %v1768_v57 = vsel %vm47_vm0, %v1766_v12, %v1767_v3  ;;  %v1798_v54 = vrot.slane %v1786_v43, 5  ;;  %v5296_v50 = vmul.f32 %v7550_v60, %v5175_v32  ;;  %v7588_v13 = vld [vmem:[#allocation44_spill] sm:$0xff] }
 0x13f   :  { %v1684_v7 = vadd.f32 %v1672_v63, %v5157_v36  ;;  %v1818_v36 = vmul.f32 %v7550_v60, %v5032_v33  ;;  %v1595_v55 = vadd.f32 %v1584_v56, %v1563_v25  ;;  %v2315_v61 = vmul.f32 %v5298_v5, %v7584_v34  ;;  %v7585_v33 = vld [vmem:[#allocation16_spill] sm:$0xff] }
 0x140   :  { %v1799_v30 = vrot.slane %v5290_v19, 5  ;;  %v2323_v9 = vmul.f32 %v5303_v4, %v4310_v27  ;;  %v2355_v11 = vmul.f32 %v5303_v4, %v7585_v33  ;;  %v1831_v2 = vrot.slane %v5296_v50, 6 }
 0x141   :  { %v1716_v46 = vadd.f32 %v1704_v62, %v1684_v7  ;;  %v1830_v0 = vrot.slane %v1818_v36, 6  ;;  %v1627_v45 = vadd.f32 %v1616_v28, %v1595_v55  ;;  %v2387_v56 = vmul.f32 %v5303_v4, %v7586_v29 }
 0x142   :  { %1856 = vrot.lane.b32.xlu0 %v5136_v41, %s4016_s22  ;;  %v1800_v39 = vsel %vm568_vm10, %v1798_v54, %v1799_v30  ;;  %v2338_v48 = vrot.slane %v2323_v9, 1  ;;  %v2370_v15 = vrot.slane %v2355_v11, 2  ;;  %v2419_v6 = vmul.f32 %v5303_v4, %v7587_v1  ;;  %v5341_v11 = vld [vmem:[#allocation2 + $0x30] sm:$0xff] }
 0x143   :  { %v1748_v16 = vadd.f32 %v1736_v38, %v1716_v46  ;;  %1636 = vrot.lane.b32.xlu1 %v1627_v45, %s4016_s22  ;;  %v1832_v12 = vsel %vm601_vm11, %v1830_v0, %v1831_v2  ;;  %v2402_v42 = vrot.slane %v2387_v56, 3  ;;  %v2451_v41 = vmul.f32 %v5303_v4, %v7565_v8  ;;  %v7594_v56 = vld [vmem:[#allocation45_spill] sm:$0xff] }
 0x144   :  { %v7589_v63 = vrot.slane %v7588_v13, 1  ;;  %v7590_v25 = vrot.slane %v4712_v47, 2  ;;  %v2434_v62 = vrot.slane %v2419_v6, 4  ;;  %v2483_v38 = vmul.f32 %v5303_v4, %v7566_v22 }
 0x145   :  { %v1780_v28 = vadd.f32 %v1768_v57, %v1748_v16  ;;  %v7591_v36 = vrot.slane %v4723_v37, 3  ;;  %v2466_v46 = vrot.slane %v2451_v41, 5  ;;  %v7592_v0 = vrot.slane %v4727_v40, 4 }
 0x146   :  { %v2339_v43 = vsel %vm437_vm7, %v7589_v63, %v2338_v48  ;;  %v2371_v7 = vsel %vm470_vm8, %v7590_v25, %v2370_v15  ;;  %2516 = vrot.lane.b32.xlu0 %v5169_v58, %s4015_s1  ;;  %v2498_v9 = vrot.slane %v2483_v38, 6  ;;  %v2312_v45 = vmul.f32 %v5341_v11, %v7584_v34 }
 0x147   :  { %v1812_v57 = vadd.f32 %v1800_v39, %v1780_v28  ;;  %v2347_v54 = vadd.f32 %v2339_v43, %v2315_v61  ;;  %v2403_v55 = vsel %vm503_vm9, %v7591_v36, %v2402_v42  ;;  %v2435_v47 = vsel %vm47_vm0, %v7592_v0, %v2434_v62  ;;  %1858 = vrot.lane.b32.xlu1 %v5240_v44, %s4016_s22 }
 0x148   :  { %v2318_v61 = vmul.f32 %v5341_v11, %v4310_v27  ;;  %v7593_v58 = vrot.slane %v5100_v18, 5  ;;  %v5354_v39 = vmul.f32 %v4310_v27, %v7594_v56  ;;  %v7595_v48 = vrot.slane %v5105_v10, 6 }
 0x149   :  { %v1844_v37 = vadd.f32 %v1832_v12, %v1812_v57  ;;  %v2379_v16 = vadd.f32 %v2371_v7, %v2347_v54  ;;  %v2350_v28 = vmul.f32 %v5341_v11, %v7585_v33  ;;  %v5363_v44 = vmul.f32 %v7585_v33, %v7594_v56 }
 0x14a   :  { %v2467_v40 = vsel %vm568_vm10, %v7593_v58, %v2466_v46  ;;  %v2499_v15 = vsel %vm601_vm11, %v7595_v48, %v2498_v9  ;;  %v2330_v6 = vrot.slane %v2318_v61, 1  ;;  %v2331_v18 = vrot.slane %v5354_v39, 1 }
 0x14b   :  { %v2411_v12 = vadd.f32 %v2403_v55, %v2379_v16  ;;  %v2382_v42 = vmul.f32 %v5341_v11, %v7586_v29  ;;  %v5370_v41 = vmul.f32 %v7586_v29, %v7594_v56  ;;  %1852 = vrot.lane.b32.xlu0 %v1844_v37, %s4016_s22  ;;  %v2362_v10 = vrot.slane %v2350_v28, 2 }
 0x14c   :  { %v2363_v13 = vrot.slane %v5363_v44, 2  ;;  %v2414_v63 = vmul.f32 %v5341_v11, %v7587_v1  ;;  %v5378_v43 = vmul.f32 %v7587_v1, %v7594_v56  ;;  %v2332_v7 = vsel %vm437_vm7, %v2330_v6, %v2331_v18 }
 0x14d   :  { %v2443_v25 = vadd.f32 %v2435_v47, %v2411_v12  ;;  %v2394_v62 = vrot.slane %v2382_v42, 3  ;;  %v2395_v38 = vrot.slane %v5370_v41, 3  ;;  %v2344_v57 = vadd.f32 %v2332_v7, %v2312_v45 }
 0x14e   :  { %v2364_v54 = vsel %vm470_vm8, %v2362_v10, %v2363_v13  ;;  %v2426_v36 = vrot.slane %v2414_v63, 4  ;;  %v2427_v55 = vrot.slane %v5378_v43, 4  ;;  %v2446_v47 = vmul.f32 %v5341_v11, %v7565_v8 }
 0x14f   :  { %v2475_v46 = vadd.f32 %v2467_v40, %v2443_v25  ;;  %v2396_v0 = vsel %vm503_vm9, %v2394_v62, %v2395_v38  ;;  %v5397_v9 = vmul.f32 %v7565_v8, %v7594_v56  ;;  %v2376_v45 = vadd.f32 %v2364_v54, %v2344_v57 }
 0x150   :  { %v2428_v61 = vsel %vm47_vm0, %v2426_v36, %v2427_v55  ;;  %v2478_v37 = vmul.f32 %v5341_v11, %v7566_v22  ;;  %v5406_v16 = vmul.f32 %v7566_v22, %v7594_v56  ;;  %v2458_v40 = vrot.slane %v2446_v47, 5 }
 0x151   :  { %v2507_v58 = vadd.f32 %v2499_v15, %v2475_v46  ;;  %v7471_v48 = vrot.slane %v5397_v9, 5  ;;  %v1653_v6 = vmul.f32 %v7544_v17, %v5175_v32  ;;  %v2408_v28 = vadd.f32 %v2396_v0, %v2376_v45  ;;  %v7596_v45 = vld [vmem:[#allocation46_spill] sm:$0xff] }
 0x152   :  { %v2490_v12 = vrot.slane %v2478_v37, 6  ;;  %v7470_v42 = vrot.slane %v5406_v16, 6  ;;  %v1660_v56 = vmul.f32 %v7545_v52, %v5200_v35  ;;  %v1692_v17 = vmul.f32 %v7546_v59, %v5200_v35 }
 0x153   :  { %2518 = vrot.lane.b32.xlu1 %v2507_v58, %s4015_s1  ;;  %v2460_v15 = vsel %vm568_vm10, %v2458_v40, %v7471_v48  ;;  %v1724_v32 = vmul.f32 %v7547_v20, %v5200_v35  ;;  %v1756_v10 = vmul.f32 %v7548_v53, %v5200_v35  ;;  %v2440_v63 = vadd.f32 %v2428_v61, %v2408_v28 }
 0x154   :  { %v2492_v52 = vsel %vm601_vm11, %v2490_v12, %v7470_v42  ;;  %v1673_v25 = vrot.slane %v1660_v56, 1  ;;  %v1788_v7 = vmul.f32 %v7549_v21, %v5200_v35  ;;  %v1705_v62 = vrot.slane %v1692_v17, 2 }
 0x155   :  { %v1737_v57 = vrot.slane %v1724_v32, 3  ;;  %v1769_v59 = vrot.slane %v1756_v10, 4  ;;  %v1820_v20 = vmul.f32 %v7550_v60, %v5200_v35  ;;  %v2472_v53 = vadd.f32 %v2460_v15, %v2440_v63 }
 0x156   :  { %v1674_v54 = vsel %vm437_vm7, %v1671_v26, %v1673_v25  ;;  %v1801_v36 = vrot.slane %v1788_v7, 5  ;;  %v5443_v46 = vstv %s5388_s27  ;;  %v1706_v0 = vsel %vm470_vm8, %v1703_v14, %v1705_v62  ;;  %s6252_s27 = sld [smem:[#allocation8 + $0x40]] }
 0x157   :  { %v1685_v21 = vadd.f32 %v1674_v54, %v1653_v6  ;;  %v1738_v60 = vsel %vm503_vm9, %v1735_v24, %v1737_v57  ;;  %v1770_v35 = vsel %vm47_vm0, %v1767_v3, %v1769_v59  ;;  %v2504_v23 = vadd.f32 %v2492_v52, %v2472_v53  ;;  %v7597_v3 = vld [vmem:[#allocation21_spill] sm:$0xff] }
 0x158   :  { %v1802_v26 = vsel %vm568_vm10, %v1799_v30, %v1801_v36  ;;  %v1833_v47 = vrot.slane %v1820_v20, 6  ;;  %v1020_v61 = vmul.f32 %v5443_v46, %v7596_v45  ;;  %v5462_v37 = vstv %s5408_s12  ;;  %s6256_s12 = sld [smem:[#allocation8 + $0x47]] }
 0x159   :  { %v1717_v51 = vadd.f32 %v1706_v0, %v1685_v21  ;;  %v5465_v14 = vstv %s5413_s13  ;;  %v5468_v31 = vstv %s5415_s14  ;;  %2512 = vrot.lane.b32.xlu0 %v2504_v23, %s4015_s1  ;;  %v1027_v24 = vmul.f32 %v5462_v37, %v7596_v45  ;;  %v7598_v23 = vld [vmem:[#allocation34_spill] sm:$0xff]  ;;  %s6266_s13 = sld [smem:[#allocation8 + $0x4e]]  ;;  %s6268_s14 = sld [smem:[#allocation8 + $0x55]] }
 0x15a   :  { %v1834_v49 = vsel %vm601_vm11, %v1831_v2, %v1833_v47  ;;  %v5480_v19 = vmul.f32 %v5462_v37, %v7597_v3  ;;  %v1059_v30 = vmul.f32 %v5465_v14, %v7596_v45  ;;  %v5486_v40 = vmul.f32 %v5465_v14, %v7597_v3 }
 0x15b   :  { %v1749_v58 = vadd.f32 %v1738_v60, %v1717_v51  ;;  %v1091_v50 = vmul.f32 %v5468_v31, %v7596_v45  ;;  %v5492_v2 = vmul.f32 %v5468_v31, %v7597_v3  ;;  %v1041_v6 = vrot.slane %v1027_v24, 1 }
 0x15c   :  { %v7467_v28 = vrot.slane %v5480_v19, 1  ;;  %v1073_v12 = vrot.slane %v1059_v30, 2  ;;  %v5498_v56 = vstv %s5435_s15  ;;  %v7466_v17 = vrot.slane %v5486_v40, 2  ;;  %s6296_s15 = sld [smem:[#allocation8 + $0x5c]] }
 0x15d   :  { %v1781_v15 = vadd.f32 %v1770_v35, %v1749_v58  ;;  %v1105_v32 = vrot.slane %v1091_v50, 3  ;;  %v7465_v10 = vrot.slane %v5492_v2, 3  ;;  %v1123_v52 = vmul.f32 %v5498_v56, %v7596_v45  ;;  %v7599_v58 = vld [vmem:[#allocation43_spill] sm:$0xff] }
 0x15e   :  { %v1043_v63 = vsel %vm437_vm7, %v1041_v6, %v7467_v28  ;;  %v5511_v25 = vmul.f32 %v5498_v56, %v7597_v3  ;;  %v5514_v7 = vstv %s5445_s16  ;;  %v1075_v59 = vsel %vm470_vm8, %v1073_v12, %v7466_v17  ;;  %s6404_s16 = sld [smem:[#allocation8 + $0x3d]] }
 0x15f   :  { %v1813_v62 = vadd.f32 %v1802_v26, %v1781_v15  ;;  %v1052_v57 = vadd.f32 %v1043_v63, %v1020_v61  ;;  %v1107_v20 = vsel %vm503_vm9, %v1105_v32, %v7465_v10  ;;  %v1137_v53 = vrot.slane %v1123_v52, 4 }
 0x160   :  { %v7464_v54 = vrot.slane %v5511_v25, 4  ;;  %v1155_v36 = vmul.f32 %v5514_v7, %v7596_v45  ;;  %v5529_v21 = vmul.f32 %v5514_v7, %v7597_v3  ;;  %v5532_v35 = vstv %s5470_s17  ;;  %s6407_s17 = sld [smem:[#allocation8 + $0x44]] }
 0x161   :  { %v1845_v0 = vadd.f32 %v1834_v49, %v1813_v62  ;;  %v1084_v60 = vadd.f32 %v1075_v59, %v1052_v57  ;;  %v5536_v26 = vmul.f32 %v5298_v5, %v7598_v23  ;;  %v1187_v49 = vmul.f32 %v5532_v35, %v7596_v45  ;;  %v5568_v57 = vld [vmem:[#allocation2 + $0x48] sm:$0xff] }
 0x162   :  { %v1139_v47 = vsel %vm47_vm0, %v1137_v53, %v7464_v54  ;;  %v1169_v61 = vrot.slane %v1155_v36, 5  ;;  %v7462_v51 = vrot.slane %v5529_v21, 5  ;;  %v5551_v30 = vmul.f32 %v5532_v35, %v7597_v3 }
 0x163   :  { %1854 = vrot.lane.b32.xlu1 %v1845_v0, %s4016_s22  ;;  %v1116_v24 = vadd.f32 %v1107_v20, %v1084_v60  ;;  %v2553_v50 = vrot.slane %v7599_v58, 1  ;;  %v7461_v6 = vrot.slane %v5536_v26, 1  ;;  %v1201_v15 = vrot.slane %v1187_v49, 6  ;;  %v7600_v20 = vld [vmem:[#allocation42_spill] sm:$0xff]  ;;  %v2081_v58 = vpop.permute.xlu0 %2080 }
 0x164   :  { %v1171_v12 = vsel %vm568_vm10, %v1169_v61, %v7462_v51  ;;  %v5559_v32 = vstv %s5494_s18  ;;  %v5562_v45 = vstv %s5500_s19  ;;  %v7463_v52 = vrot.slane %v5551_v30, 6  ;;  %s6409_s18 = sld [smem:[#allocation8 + $0x4b]]  ;;  %s6428_s19 = sld [smem:[#allocation8 + $0x52]] }
 0x165   :  { %v1148_v63 = vadd.f32 %v1139_v47, %v1116_v24  ;;  %v2555_v62 = vsel %vm437_vm7, %v2553_v50, %v7461_v6  ;;  %v2571_v59 = vmul.f32 %v5568_v57, %v5559_v32  ;;  %v5575_v36 = vmul.f32 %v5298_v5, %v5559_v32 }
 0x166   :  { %v2564_v53 = vadd.f32 %v2555_v62, %v7600_v20  ;;  %v2603_v0 = vmul.f32 %v5568_v57, %v5562_v45  ;;  %v5581_v60 = vmul.f32 %v5298_v5, %v5562_v45  ;;  %v1203_v61 = vsel %vm601_vm11, %v1201_v15, %v7463_v52 }
 0x167   :  { %v1180_v47 = vadd.f32 %v1171_v12, %v1148_v63  ;;  %v2585_v49 = vrot.slane %v2571_v59, 2  ;;  %v5587_v24 = vstv %s5522_s20  ;;  %v7469_v50 = vrot.slane %v5575_v36, 2  ;;  %s6436_s20 = sld [smem:[#allocation8 + $0x59]] }
 0x168   :  { %v2617_v62 = vrot.slane %v2603_v0, 3  ;;  %v7468_v20 = vrot.slane %v5581_v60, 3  ;;  %v2635_v6 = vmul.f32 %v5568_v57, %v5587_v24  ;;  %v5595_v12 = vmul.f32 %v5298_v5, %v5587_v24 }
 0x169   :  { %v1212_v51 = vadd.f32 %v1203_v61, %v1180_v47  ;;  %v5598_v63 = vstv %s5538_s21  ;;  %v5601_v15 = vstv %s5540_s23  ;;  %v2587_v59 = vsel %vm470_vm8, %v2585_v49, %v7469_v50  ;;  %s6454_s21 = sld [smem:[#allocation8 + $0x60]]  ;;  %s6467_s23 = sld [smem:[#allocation8 + $0x1]] }
 0x16a   :  { %v2619_v0 = vsel %vm503_vm9, %v2617_v62, %v7468_v20  ;;  %v2649_v52 = vrot.slane %v2635_v6, 4  ;;  %v2667_v47 = vmul.f32 %v5568_v57, %v5598_v63  ;;  %v2596_v54 = vadd.f32 %v2587_v59, %v2564_v53  ;;  %v5624_v6 = vld [vmem:[#allocation2 + $0x38] sm:$0xff] }
 0x16b   :  { %v5611_v61 = vadd.f32 %v2081_v58, %v1212_v51  ;;  %v7472_v10 = vrot.slane %v5595_v12, 4  ;;  %v5616_v17 = vmul.f32 %v5298_v5, %v5598_v63  ;;  %v2699_v49 = vmul.f32 %v5568_v57, %v5601_v15 }
 0x16c   :  { %v2681_v28 = vrot.slane %v2667_v47, 5  ;;  %v5622_v62 = vmul.f32 %v5298_v5, %v5601_v15  ;;  %v2313_v51 = vmul.f32 %v5624_v6, %v7584_v34  ;;  %v2628_v53 = vadd.f32 %v2619_v0, %v2596_v54  ;;  %v5632_v47 = vld [vmem:[#allocation2 + $0x40] sm:$0x3f] }
 0x16d   :  { %v2651_v58 = vsel %vm47_vm0, %v2649_v52, %v7472_v10  ;;  %v7473_v59 = vrot.slane %v5616_v17, 5  ;;  %v2320_v20 = vmul.f32 %v5632_v47, %v4310_v27  ;;  %v2713_v50 = vrot.slane %v2699_v49, 6 }
 0x16e   :  { %v2714_v42 = vrot.slane %v5622_v62, 6  ;;  %v2352_v48 = vmul.f32 %v5632_v47, %v7585_v33  ;;  %v2384_v34 = vmul.f32 %v5632_v47, %v7586_v29  ;;  %v2660_v54 = vadd.f32 %v2651_v58, %v2628_v53 }
 0x16f   :  { %v2683_v52 = vsel %vm568_vm10, %v2681_v28, %v7473_v59  ;;  %v2333_v0 = vrot.slane %v2320_v20, 1  ;;  %v2416_v10 = vmul.f32 %v5632_v47, %v7587_v1  ;;  %v2448_v29 = vmul.f32 %v5632_v47, %v7565_v8 }
 0x170   :  { %v2715_v27 = vsel %vm601_vm11, %v2713_v50, %v2714_v42  ;;  %v2365_v49 = vrot.slane %v2352_v48, 2  ;;  %v2397_v33 = vrot.slane %v2384_v34, 3  ;;  %v2692_v53 = vadd.f32 %v2683_v52, %v2660_v54 }
 0x171   :  { %v2334_v28 = vsel %vm437_vm7, %v2331_v18, %v2333_v0  ;;  %v2429_v20 = vrot.slane %v2416_v10, 4  ;;  %v2480_v1 = vmul.f32 %v5632_v47, %v7566_v22  ;;  %v2461_v50 = vrot.slane %v2448_v29, 5 }
 0x172   :  { %v2345_v58 = vadd.f32 %v2334_v28, %v2313_v51  ;;  %v2366_v59 = vsel %vm470_vm8, %v2363_v13, %v2365_v49  ;;  %v2398_v48 = vsel %vm503_vm9, %v2395_v38, %v2397_v33  ;;  %v2724_v8 = vadd.f32 %v2715_v27, %v2692_v53  ;;  %v7602_v38 = vld [vmem:[#allocation22_spill] sm:$0xff] }
 0x173   :  { %v2430_v39 = vsel %vm47_vm0, %v2427_v55, %v2429_v20  ;;  %v2493_v18 = vrot.slane %v2480_v1, 6  ;;  %v1021_v22 = vmul.f32 %v5443_v46, %v7597_v3  ;;  %v7601_v13 = vrot.slane %v5397_v9, 5 }
 0x174   :  { %v2377_v44 = vadd.f32 %v2366_v59, %v2345_v58  ;;  %v1029_v10 = vmul.f32 %v5462_v37, %v7602_v38  ;;  %v1061_v43 = vmul.f32 %v5465_v14, %v7602_v38  ;;  %2734 = vrot.lane.b32.xlu0 %v2724_v8, %s4015_s1  ;;  %v7603_v55 = vrot.slane %v5406_v16, 6 }
 0x175   :  { %v2462_v41 = vsel %vm568_vm10, %v7601_v13, %v2461_v50  ;;  %v1093_v9 = vmul.f32 %v5468_v31, %v7602_v38  ;;  %v1125_v51 = vmul.f32 %v5498_v56, %v7602_v38  ;;  %v1157_v59 = vmul.f32 %v5514_v7, %v7602_v38 }
 0x176   :  { %v2494_v3 = vsel %vm601_vm11, %v7603_v55, %v2493_v18  ;;  %v2409_v34 = vadd.f32 %v2398_v48, %v2377_v44  ;;  %v1044_v54 = vrot.slane %v1029_v10, 1  ;;  %v1076_v52 = vrot.slane %v1061_v43, 2 }
 0x177   :  { %v1189_v0 = vmul.f32 %v5532_v35, %v7602_v38  ;;  %v1108_v16 = vrot.slane %v1093_v9, 3  ;;  %v1140_v27 = vrot.slane %v1125_v51, 4  ;;  %v1172_v49 = vrot.slane %v1157_v59, 5 }
 0x178   :  { %v5697_v33 = vstv %s5646_s24  ;;  %v2441_v29 = vadd.f32 %v2430_v39, %v2409_v34  ;;  %v7604_v53 = vrot.slane %v5480_v19, 1  ;;  %v7605_v20 = vrot.slane %v5486_v40, 2  ;;  %s6479_s24 = sld [smem:[#allocation8 + $0x8]] }
 0x179   :  { %v1204_v58 = vrot.slane %v1189_v0, 6  ;;  %v7606_v50 = vrot.slane %v5492_v2, 3  ;;  %v7607_v18 = vrot.slane %v5511_v25, 4  ;;  %v7608_v19 = vrot.slane %v5529_v21, 5 }
 0x17a   :  { %v1045_v28 = vsel %vm437_vm7, %v7604_v53, %v1044_v54  ;;  %v1077_v1 = vsel %vm470_vm8, %v7605_v20, %v1076_v52  ;;  %v2473_v40 = vadd.f32 %v2462_v41, %v2441_v29  ;;  %v3186_v13 = vmul.f32 %v5568_v57, %v5697_v33 }
 0x17b   :  { %v1053_v48 = vadd.f32 %v1045_v28, %v1021_v22  ;;  %v1109_v8 = vsel %vm503_vm9, %v7606_v50, %v1108_v16  ;;  %v1141_v39 = vsel %vm47_vm0, %v7607_v18, %v1140_v27  ;;  %v1173_v44 = vsel %vm568_vm10, %v7608_v19, %v1172_v49 }
 0x17c   :  { %v7609_v22 = vrot.slane %v5551_v30, 6  ;;  %v5724_v25 = vstv %s5664_s25  ;;  %v5733_v43 = vstv %s5671_s26  ;;  %v2505_v41 = vadd.f32 %v2494_v3, %v2473_v40  ;;  %s6485_s25 = sld [smem:[#allocation8 + $0xf]]  ;;  %s6489_s26 = sld [smem:[#allocation8 + $0x16]] }
 0x17d   :  { %v1085_v38 = vadd.f32 %v1077_v1, %v1053_v48  ;;  %v3193_v21 = vmul.f32 %v5568_v57, %v5724_v25  ;;  %v5730_v10 = vmul.f32 %v5298_v5, %v5724_v25  ;;  %v3225_v30 = vmul.f32 %v5568_v57, %v5733_v43 }
 0x17e   :  { %v1205_v2 = vsel %vm601_vm11, %v7609_v22, %v1204_v58  ;;  %v5739_v55 = vmul.f32 %v5298_v5, %v5733_v43  ;;  %v5742_v9 = vstv %s5680_s0  ;;  %2514 = vrot.lane.b32.xlu1 %v2505_v41, %s4015_s1  ;;  %v5754_v16 = vstv %s5694_s28  ;;  %s6519_s0 = sld [smem:[#allocation8 + $0x1d]]  ;;  %s3795_s28 = sld [smem:[#allocation8 + $0x24]] }
 0x17f   :  { %v1117_v51 = vadd.f32 %v1109_v8, %v1085_v38  ;;  %v3207_v59 = vrot.slane %v3193_v21, 1  ;;  %v3208_v34 = vrot.slane %v5730_v10, 1  ;;  %v3257_v54 = vmul.f32 %v5568_v57, %v5742_v9 }
 0x180   :  { %v3239_v3 = vrot.slane %v3225_v30, 2  ;;  %v3240_v52 = vrot.slane %v5739_v55, 2  ;;  %v5751_v0 = vmul.f32 %v5298_v5, %v5742_v9  ;;  %v3289_v53 = vmul.f32 %v5568_v57, %v5754_v16 }
 0x181   :  { %v1149_v27 = vadd.f32 %v1141_v39, %v1117_v51  ;;  %v3209_v49 = vsel %vm437_vm7, %v3207_v59, %v3208_v34  ;;  %v3271_v29 = vrot.slane %v3257_v54, 3  ;;  %v5767_v58 = vmul.f32 %v5298_v5, %v5754_v16  ;;  %v2083_v39 = vpop.permute.xlu1 %2082  ;;  %v7610_v54 = vld [vmem:[#allocation33_spill] sm:$0xff] }
 0x182   :  { %v3218_v28 = vadd.f32 %v3209_v49, %v3186_v13  ;;  %v3241_v20 = vsel %vm470_vm8, %v3239_v3, %v3240_v52  ;;  %v7477_v1 = vrot.slane %v5751_v0, 3  ;;  %v3303_v50 = vrot.slane %v3289_v53, 4 }
 0x183   :  { %v1181_v48 = vadd.f32 %v1173_v44, %v1149_v27  ;;  %v5770_v8 = vstv %s5714_s29  ;;  %v5773_v18 = vstv %s5716_s30  ;;  %v7474_v22 = vrot.slane %v5767_v58, 4  ;;  %s3796_s29 = sld [smem:[#allocation8 + $0x2b]]  ;;  %s6845_s30 = sld [smem:[#allocation8 + $0x9]] }
 0x184   :  { %v3250_v19 = vadd.f32 %v3241_v20, %v3218_v28  ;;  %v3273_v40 = vsel %vm503_vm9, %v3271_v29, %v7477_v1  ;;  %v3321_v13 = vmul.f32 %v5568_v57, %v5770_v8  ;;  %v5783_v44 = vmul.f32 %v5298_v5, %v5770_v8 }
 0x185   :  { %v1213_v38 = vadd.f32 %v1205_v2, %v1181_v48  ;;  %v3353_v21 = vmul.f32 %v5568_v57, %v5773_v18  ;;  %v5789_v41 = vmul.f32 %v5298_v5, %v5773_v18  ;;  %v3305_v51 = vsel %vm47_vm0, %v3303_v50, %v7474_v22 }
 0x186   :  { %v3282_v30 = vadd.f32 %v3273_v40, %v3250_v19  ;;  %v3335_v59 = vrot.slane %v3321_v13, 5  ;;  %v2533_v2 = vmul.f32 %v5298_v5, %v7610_v54  ;;  %v7475_v27 = vrot.slane %v5783_v44, 5 }
 0x187   :  { %v5796_v3 = vadd.f32 %v2083_v39, %v1213_v38  ;;  %v3367_v49 = vrot.slane %v3353_v21, 6  ;;  %v7476_v57 = vrot.slane %v5789_v41, 6  ;;  %v2541_v53 = vmul.f32 %v5303_v4, %v7598_v23 }
 0x188   :  { %v3314_v29 = vadd.f32 %v3305_v51, %v3282_v30  ;;  %v2573_v28 = vmul.f32 %v5303_v4, %v5559_v32  ;;  %v2605_v20 = vmul.f32 %v5303_v4, %v5562_v45  ;;  %v3337_v48 = vsel %vm568_vm10, %v3335_v59, %v7475_v27 }
 0x189   :  { %v3369_v50 = vsel %vm601_vm11, %v3367_v49, %v7476_v57  ;;  %v2637_v39 = vmul.f32 %v5303_v4, %v5587_v24  ;;  %v2669_v19 = vmul.f32 %v5303_v4, %v5598_v63  ;;  %v2556_v13 = vrot.slane %v2541_v53, 1 }
 0x18a   :  { %v3346_v40 = vadd.f32 %v3337_v48, %v3314_v29  ;;  %v2588_v38 = vrot.slane %v2573_v28, 2  ;;  %v2620_v21 = vrot.slane %v2605_v20, 3  ;;  %v2701_v22 = vmul.f32 %v5303_v4, %v5601_v15 }
 0x18b   :  { %v2652_v30 = vrot.slane %v2637_v39, 4  ;;  %v2684_v51 = vrot.slane %v2669_v19, 5  ;;  %v2530_v59 = vmul.f32 %v5341_v11, %v7610_v54  ;;  %v7611_v49 = vrot.slane %v5536_v26, 1 }
 0x18c   :  { %v3378_v27 = vadd.f32 %v3369_v50, %v3346_v40  ;;  %v7612_v1 = vrot.slane %v5575_v36, 2  ;;  %v7613_v53 = vrot.slane %v5581_v60, 3  ;;  %v7614_v48 = vrot.slane %v5595_v12, 4 }
 0x18d   :  { %v2557_v57 = vsel %vm437_vm7, %v7611_v49, %v2556_v13  ;;  %v7615_v19 = vrot.slane %v5616_v17, 5  ;;  %v2716_v26 = vrot.slane %v2701_v22, 6  ;;  %v2536_v36 = vmul.f32 %v5341_v11, %v7598_v23 }
 0x18e   :  { %v2589_v29 = vsel %vm470_vm8, %v7612_v1, %v2588_v38  ;;  %v2621_v28 = vsel %vm503_vm9, %v7613_v53, %v2620_v21  ;;  %v2565_v20 = vadd.f32 %v2557_v57, %v2533_v2  ;;  %v2653_v39 = vsel %vm47_vm0, %v7614_v48, %v2652_v30  ;;  %3388 = vrot.lane.b32.xlu0 %v3378_v27, %s4017_s3 }
 0x18f   :  { %v2685_v50 = vsel %vm568_vm10, %v7615_v19, %v2684_v51  ;;  %v5840_v60 = vmul.f32 %v5624_v6, %v7598_v23  ;;  %v2568_v12 = vmul.f32 %v5341_v11, %v5559_v32  ;;  %v5846_v1 = vmul.f32 %v5624_v6, %v5559_v32 }
 0x190   :  { %v2597_v17 = vadd.f32 %v2589_v29, %v2565_v20  ;;  %v2717_v22 = vsel %vm601_vm11, %v2714_v42, %v2716_v26  ;;  %v2600_v2 = vmul.f32 %v5341_v11, %v5562_v45  ;;  %v5855_v27 = vmul.f32 %v5624_v6, %v5562_v45 }
 0x191   :  { %v2548_v57 = vrot.slane %v2536_v36, 1  ;;  %v2549_v40 = vrot.slane %v5840_v60, 1  ;;  %v2580_v13 = vrot.slane %v2568_v12, 2  ;;  %v2581_v38 = vrot.slane %v5846_v1, 2 }
 0x192   :  { %v2629_v21 = vadd.f32 %v2621_v28, %v2597_v17  ;;  %v2612_v30 = vrot.slane %v2600_v2, 3  ;;  %v2613_v51 = vrot.slane %v5855_v27, 3  ;;  %v2632_v42 = vmul.f32 %v5341_v11, %v5587_v24 }
 0x193   :  { %v2550_v62 = vsel %vm437_vm7, %v2548_v57, %v2549_v40  ;;  %v2582_v49 = vsel %vm470_vm8, %v2580_v13, %v2581_v38  ;;  %v5870_v29 = vmul.f32 %v5624_v6, %v5587_v24  ;;  %v2664_v53 = vmul.f32 %v5341_v11, %v5598_v63 }
 0x194   :  { %v2661_v28 = vadd.f32 %v2653_v39, %v2629_v21  ;;  %v2562_v20 = vadd.f32 %v2550_v62, %v2530_v59  ;;  %v2614_v48 = vsel %vm503_vm9, %v2612_v30, %v2613_v51  ;;  %v2644_v19 = vrot.slane %v2632_v42, 4 }
 0x195   :  { %v7479_v26 = vrot.slane %v5870_v29, 4  ;;  %v5880_v36 = vmul.f32 %v5624_v6, %v5598_v63  ;;  %v2676_v12 = vrot.slane %v2664_v53, 5  ;;  %v2696_v17 = vmul.f32 %v5341_v11, %v5601_v15 }
 0x196   :  { %v2693_v2 = vadd.f32 %v2685_v50, %v2661_v28  ;;  %v2594_v57 = vadd.f32 %v2582_v49, %v2562_v20  ;;  %v5886_v59 = vmul.f32 %v5624_v6, %v5601_v15  ;;  %v3187_v39 = vmul.f32 %v5298_v5, %v5697_v33 }
 0x197   :  { %v2646_v13 = vsel %vm47_vm0, %v2644_v19, %v7479_v26  ;;  %v7478_v21 = vrot.slane %v5880_v36, 5  ;;  %v2708_v30 = vrot.slane %v2696_v17, 6  ;;  %v3195_v42 = vmul.f32 %v5303_v4, %v5724_v25 }
 0x198   :  { %v2725_v62 = vadd.f32 %v2717_v22, %v2693_v2  ;;  %v2626_v50 = vadd.f32 %v2614_v48, %v2594_v57  ;;  %v2709_v49 = vrot.slane %v5886_v59, 6  ;;  %v3227_v53 = vmul.f32 %v5303_v4, %v5733_v43 }
 0x199   :  { %v2678_v5 = vsel %vm568_vm10, %v2676_v12, %v7478_v21  ;;  %v3210_v28 = vrot.slane %v3195_v42, 1  ;;  %v3259_v20 = vmul.f32 %v5303_v4, %v5742_v9  ;;  %v3291_v19 = vmul.f32 %v5303_v4, %v5754_v16 }
 0x19a   :  { %2736 = vrot.lane.b32.xlu1 %v2725_v62, %s4015_s1  ;;  %v2658_v22 = vadd.f32 %v2646_v13, %v2626_v50  ;;  %v2710_v48 = vsel %vm601_vm11, %v2708_v30, %v2709_v49  ;;  %v3242_v17 = vrot.slane %v3227_v53, 2  ;;  %v3323_v2 = vmul.f32 %v5303_v4, %v5770_v8 }
 0x19b   :  { %v3211_v12 = vsel %vm437_vm7, %v3208_v34, %v3210_v28  ;;  %v3274_v57 = vrot.slane %v3259_v20, 3  ;;  %v3306_v42 = vrot.slane %v3291_v19, 4  ;;  %v3355_v21 = vmul.f32 %v5303_v4, %v5773_v18 }
 0x19c   :  { %v2690_v26 = vadd.f32 %v2678_v5, %v2658_v22  ;;  %v3219_v62 = vadd.f32 %v3211_v12, %v3187_v39  ;;  %v3243_v13 = vsel %vm470_vm8, %v3240_v52, %v3242_v17  ;;  %v3338_v30 = vrot.slane %v3323_v2, 5 }
 0x19d   :  { %v7616_v50 = vrot.slane %v5751_v0, 3  ;;  %v7617_v10 = vrot.slane %v5767_v58, 4  ;;  %v3370_v28 = vrot.slane %v3355_v21, 6  ;;  %v3184_v20 = vmul.f32 %v5341_v11, %v5697_v33 }
 0x19e   :  { %v2722_v4 = vadd.f32 %v2710_v48, %v2690_v26  ;;  %v3251_v5 = vadd.f32 %v3243_v13, %v3219_v62  ;;  %v7618_v39 = vrot.slane %v5783_v44, 5  ;;  %v3190_v52 = vmul.f32 %v5341_v11, %v5724_v25 }
 0x19f   :  { %v3275_v53 = vsel %vm503_vm9, %v7616_v50, %v3274_v57  ;;  %v3307_v34 = vsel %vm47_vm0, %v7617_v10, %v3306_v42  ;;  %v7619_v0 = vrot.slane %v5789_v41, 6  ;;  %v5938_v58 = vmul.f32 %v5624_v6, %v5724_v25 }
 0x1a0   :  { %v3339_v55 = vsel %vm568_vm10, %v7618_v39, %v3338_v30  ;;  %v3222_v21 = vmul.f32 %v5341_v11, %v5733_v43  ;;  %v5944_v26 = vmul.f32 %v5624_v6, %v5733_v43  ;;  %2730 = vrot.lane.b32.xlu0 %v2722_v4, %s4015_s1  ;;  %v3283_v44 = vadd.f32 %v3275_v53, %v3251_v5 }
 0x1a1   :  { %v3371_v19 = vsel %vm601_vm11, %v7619_v0, %v3370_v28  ;;  %v3202_v22 = vrot.slane %v3190_v52, 1  ;;  %v3254_v41 = vmul.f32 %v5341_v11, %v5742_v9  ;;  %v5951_v48 = vmul.f32 %v5624_v6, %v5742_v9 }
 0x1a2   :  { %v3203_v17 = vrot.slane %v5938_v58, 1  ;;  %v3234_v2 = vrot.slane %v3222_v21, 2  ;;  %v3235_v12 = vrot.slane %v5944_v26, 2  ;;  %v3286_v57 = vmul.f32 %v5341_v11, %v5754_v16 }
 0x1a3   :  { %v3315_v42 = vadd.f32 %v3307_v34, %v3283_v44  ;;  %v3266_v62 = vrot.slane %v3254_v41, 3  ;;  %v3267_v13 = vrot.slane %v5951_v48, 3  ;;  %v5960_v30 = vmul.f32 %v5624_v6, %v5754_v16 }
 0x1a4   :  { %v3204_v50 = vsel %vm437_vm7, %v3202_v22, %v3203_v17  ;;  %v3236_v53 = vsel %vm470_vm8, %v3234_v2, %v3235_v12  ;;  %v3298_v10 = vrot.slane %v3286_v57, 4  ;;  %v3318_v28 = vmul.f32 %v5341_v11, %v5770_v8 }
 0x1a5   :  { %v3347_v34 = vadd.f32 %v3339_v55, %v3315_v42  ;;  %v3216_v4 = vadd.f32 %v3204_v50, %v3184_v20  ;;  %v3268_v5 = vsel %vm503_vm9, %v3266_v62, %v3267_v13  ;;  %v3299_v39 = vrot.slane %v5960_v30, 4 }
 0x1a6   :  { %v3319_v52 = vmul.f32 %v5624_v6, %v5770_v8  ;;  %v3330_v0 = vrot.slane %v3318_v28, 5  ;;  %v3350_v21 = vmul.f32 %v5341_v11, %v5773_v18  ;;  %v5980_v44 = vmul.f32 %v5624_v6, %v5773_v18 }
 0x1a7   :  { %v3379_v22 = vadd.f32 %v3371_v19, %v3347_v34  ;;  %v3248_v55 = vadd.f32 %v3236_v53, %v3216_v4  ;;  %v3300_v20 = vsel %vm47_vm0, %v3298_v10, %v3299_v39  ;;  %v2531_v41 = vmul.f32 %v5624_v6, %v7610_v54 }
 0x1a8   :  { %v3331_v2 = vrot.slane %v3319_v52, 5  ;;  %v3362_v57 = vrot.slane %v3350_v21, 6  ;;  %v3363_v42 = vrot.slane %v5980_v44, 6  ;;  %v2538_v62 = vmul.f32 %v5632_v47, %v7598_v23 }
 0x1a9   :  { %3390 = vrot.lane.b32.xlu1 %v3379_v22, %s4017_s3  ;;  %v3280_v11 = vadd.f32 %v3268_v5, %v3248_v55  ;;  %v2570_v30 = vmul.f32 %v5632_v47, %v5559_v32  ;;  %v2602_v19 = vmul.f32 %v5632_v47, %v5562_v45  ;;  %v2634_v50 = vmul.f32 %v5632_v47, %v5587_v24 }
 0x1aa   :  { %v3332_v54 = vsel %vm568_vm10, %v3330_v0, %v3331_v2  ;;  %v3364_v53 = vsel %vm601_vm11, %v3362_v57, %v3363_v42  ;;  %v2551_v10 = vrot.slane %v2538_v62, 1  ;;  %v2666_v23 = vmul.f32 %v5632_v47, %v5598_v63  ;;  %v6037_v62 = vld [vmem:[#allocation2] sm:$0xff] }
 0x1ab   :  { %v3312_v28 = vadd.f32 %v3300_v20, %v3280_v11  ;;  %v2583_v34 = vrot.slane %v2570_v30, 2  ;;  %v2615_v4 = vrot.slane %v2602_v19, 3  ;;  %v2647_v5 = vrot.slane %v2634_v50, 4 }
 0x1ac   :  { %v2552_v32 = vsel %vm437_vm7, %v2549_v40, %v2551_v10  ;;  %v2679_v45 = vrot.slane %v2666_v23, 5  ;;  %v2698_v24 = vmul.f32 %v5632_v47, %v5601_v15  ;;  %v3185_v52 = vmul.f32 %v5624_v6, %v5697_v33 }
 0x1ad   :  { %v3344_v0 = vadd.f32 %v3332_v54, %v3312_v28  ;;  %v2563_v21 = vadd.f32 %v2552_v32, %v2531_v41  ;;  %v2584_v63 = vsel %vm470_vm8, %v2581_v38, %v2583_v34  ;;  %v2616_v44 = vsel %vm503_vm9, %v2613_v51, %v2615_v4 }
 0x1ae   :  { %v7620_v60 = vrot.slane %v5870_v29, 4  ;;  %v7621_v22 = vrot.slane %v5880_v36, 5  ;;  %v2711_v55 = vrot.slane %v2698_v24, 6  ;;  %v3192_v6 = vmul.f32 %v5632_v47, %v5724_v25 }
 0x1af   :  { %v3376_v33 = vadd.f32 %v3364_v53, %v3344_v0  ;;  %v2595_v1 = vadd.f32 %v2584_v63, %v2563_v21  ;;  %v3224_v38 = vmul.f32 %v5632_v47, %v5733_v43  ;;  %v3256_v27 = vmul.f32 %v5632_v47, %v5742_v9  ;;  %v6051_v53 = vld [vmem:[#allocation2 + $0x8] sm:$0xff]  ;;  %v2077_v21 = vpop.permute.xlu0 %2076 }
 0x1b0   :  { %v2648_v40 = vsel %vm47_vm0, %v7620_v60, %v2647_v5  ;;  %v2680_v15 = vsel %vm568_vm10, %v7621_v22, %v2679_v45  ;;  %v2712_v51 = vsel %vm601_vm11, %v2709_v49, %v2711_v55  ;;  %v3205_v29 = vrot.slane %v3192_v6, 1 }
 0x1b1   :  { %v3288_v36 = vmul.f32 %v5632_v47, %v5754_v16  ;;  %v3320_v20 = vmul.f32 %v5632_v47, %v5770_v8  ;;  %3384 = vrot.lane.b32.xlu0 %v3376_v33, %s4017_s3  ;;  %v2627_v25 = vadd.f32 %v2616_v44, %v2595_v1  ;;  %v3237_v41 = vrot.slane %v3224_v38, 2  ;;  %v6081_v33 = vpop.permute.xlu1 %2078 }
 0x1b2   :  { %v3269_v57 = vrot.slane %v3256_v27, 3  ;;  %v3352_v43 = vmul.f32 %v5632_v47, %v5773_v18  ;;  %v3206_v9 = vsel %vm437_vm7, %v3203_v17, %v3205_v29  ;;  %v1018_v16 = vmul.f32 %v6037_v62, %v5443_v46 }
 0x1b3   :  { %v3301_v59 = vrot.slane %v3288_v36, 4  ;;  %v3333_v49 = vrot.slane %v3320_v20, 5  ;;  %v2659_v8 = vadd.f32 %v2648_v40, %v2627_v25  ;;  %v3217_v11 = vadd.f32 %v3206_v9, %v3185_v52  ;;  %v6097_v9 = vld [vmem:[#allocation2 + $0x10] sm:$0x3f] }
 0x1b4   :  { %v3238_v30 = vsel %vm470_vm8, %v3235_v12, %v3237_v41  ;;  %v3270_v47 = vsel %vm503_vm9, %v3267_v13, %v3269_v57  ;;  %v3365_v17 = vrot.slane %v3352_v43, 6  ;;  %v1024_v19 = vmul.f32 %v6037_v62, %v5462_v37 }
 0x1b5   :  { %v3302_v18 = vsel %vm47_vm0, %v3299_v39, %v3301_v59  ;;  %v3334_v58 = vsel %vm568_vm10, %v3331_v2, %v3333_v49  ;;  %v2691_v50 = vadd.f32 %v2680_v15, %v2659_v8  ;;  %v3249_v54 = vadd.f32 %v3238_v30, %v3217_v11  ;;  %v2953_v11 = vpop.permute.xlu0 %2952 }
 0x1b6   :  { %v6055_v26 = vmul.f32 %v6051_v53, %v5462_v37  ;;  %v1056_v48 = vmul.f32 %v6037_v62, %v5465_v14  ;;  %v3366_v12 = vsel %vm601_vm11, %v3363_v42, %v3365_v17  ;;  %v1036_v13 = vrot.slane %v1024_v19, 1  ;;  %v2955_v19 = vpop.permute.xlu1 %2954 }
 0x1b7   :  { %v6062_v39 = vmul.f32 %v6051_v53, %v5465_v14  ;;  %v1088_v2 = vmul.f32 %v6037_v62, %v5468_v31  ;;  %v2723_v10 = vadd.f32 %v2712_v51, %v2691_v50  ;;  %v3281_v23 = vadd.f32 %v3270_v47, %v3249_v54 }
 0x1b8   :  { %v1037_v28 = vrot.slane %v6055_v26, 1  ;;  %v1068_v34 = vrot.slane %v1056_v48, 2  ;;  %v1089_v5 = vmul.f32 %v6051_v53, %v5468_v31  ;;  %v1120_v42 = vmul.f32 %v6037_v62, %v5498_v56 }
 0x1b9   :  { %v1069_v4 = vrot.slane %v6062_v39, 2  ;;  %v1100_v32 = vrot.slane %v1088_v2, 3  ;;  %2732 = vrot.lane.b32.xlu1 %v2723_v10, %s4015_s1  ;;  %v3313_v45 = vadd.f32 %v3302_v18, %v3281_v23  ;;  %v1121_v52 = vmul.f32 %v6051_v53, %v5498_v56 }
 0x1ba   :  { %v1038_v24 = vsel %vm437_vm7, %v1036_v13, %v1037_v28  ;;  %v1152_v0 = vmul.f32 %v6037_v62, %v5514_v7  ;;  %v1101_v60 = vrot.slane %v1089_v5, 3  ;;  %v1132_v40 = vrot.slane %v1120_v42, 4  ;;  %v6139_v42 = vld [vmem:[#allocation2 + $0x18] sm:$0xff] }
 0x1bb   :  { %v1050_v63 = vadd.f32 %v1038_v24, %v1018_v16  ;;  %v1070_v44 = vsel %vm470_vm8, %v1068_v34, %v1069_v4  ;;  %v3345_v22 = vadd.f32 %v3334_v58, %v3313_v45  ;;  %v1133_v15 = vrot.slane %v1121_v52, 4  ;;  %v6147_v52 = vld [vmem:[#allocation2 + $0x20] sm:$0xff] }
 0x1bc   :  { %v1153_v55 = vmul.f32 %v6051_v53, %v5514_v7  ;;  %v1164_v6 = vrot.slane %v1152_v0, 5  ;;  %v1102_v38 = vsel %vm503_vm9, %v1100_v32, %v1101_v60  ;;  %v1184_v27 = vmul.f32 %v6037_v62, %v5532_v35 }
 0x1bd   :  { %v1082_v1 = vadd.f32 %v1070_v44, %v1050_v63  ;;  %v1185_v51 = vmul.f32 %v6051_v53, %v5532_v35  ;;  %v3377_v29 = vadd.f32 %v3366_v12, %v3345_v22  ;;  %v1134_v36 = vsel %vm47_vm0, %v1132_v40, %v1133_v15 }
 0x1be   :  { %v1165_v20 = vrot.slane %v1153_v55, 5  ;;  %v1019_v25 = vmul.f32 %v6051_v53, %v5443_v46  ;;  %v1196_v57 = vrot.slane %v1184_v27, 6  ;;  %v1026_v59 = vmul.f32 %v6097_v9, %v5462_v37 }
 0x1bf   :  { %v1114_v41 = vadd.f32 %v1102_v38, %v1082_v1  ;;  %v1197_v43 = vrot.slane %v1185_v51, 6  ;;  %3386 = vrot.lane.b32.xlu1 %v3377_v29, %s4017_s3  ;;  %v1058_v16 = vmul.f32 %v6097_v9, %v5465_v14  ;;  %v1090_v46 = vmul.f32 %v6097_v9, %v5468_v31 }
 0x1c0   :  { %v1166_v49 = vsel %vm568_vm10, %v1164_v6, %v1165_v20  ;;  %v1122_v8 = vmul.f32 %v6097_v9, %v5498_v56  ;;  %v1039_v18 = vrot.slane %v1026_v59, 1  ;;  %v1154_v37 = vmul.f32 %v6097_v9, %v5514_v7 }
 0x1c1   :  { %v1146_v30 = vadd.f32 %v1134_v36, %v1114_v41  ;;  %v1198_v47 = vsel %vm601_vm11, %v1196_v57, %v1197_v43  ;;  %v1071_v58 = vrot.slane %v1058_v16, 2  ;;  %v1103_v14 = vrot.slane %v1090_v46, 3 }
 0x1c2   :  { %v1135_v17 = vrot.slane %v1122_v8, 4  ;;  %v1186_v31 = vmul.f32 %v6097_v9, %v5532_v35  ;;  %v1040_v50 = vsel %vm437_vm7, %v1037_v28, %v1039_v18  ;;  %v1167_v54 = vrot.slane %v1154_v37, 5  ;;  %v2949_v28 = vpop.permute.xlu0 %2948 }
 0x1c3   :  { %v1178_v56 = vadd.f32 %v1166_v49, %v1146_v30  ;;  %v2962_v7 = vadd.f32 %v2953_v11, %v5611_v61  ;;  %v1051_v26 = vadd.f32 %v1040_v50, %v1019_v25  ;;  %v1072_v48 = vsel %vm470_vm8, %v1069_v4, %v1071_v58  ;;  %v2951_v30 = vpop.permute.xlu1 %2950 }
 0x1c4   :  { %v1104_v12 = vsel %vm503_vm9, %v1101_v60, %v1103_v14  ;;  %v1136_v13 = vsel %vm47_vm0, %v1133_v15, %v1135_v17  ;;  %v1168_v39 = vsel %vm568_vm10, %v1165_v20, %v1167_v54  ;;  %v1199_v2 = vrot.slane %v1186_v31, 6 }
 0x1c5   :  { %v1210_v35 = vadd.f32 %v1198_v47, %v1178_v56  ;;  %3428 = vrot.lane.b32.xlu0 %v2962_v7, %s4015_s1  ;;  %v2963_v10 = vadd.f32 %v2955_v19, %v5796_v3  ;;  %v1083_v23 = vadd.f32 %v1072_v48, %v1051_v26  ;;  %v6129_v61 = vstv %s6088_s4  ;;  %v6191_v7 = vld [vmem:[#allocation2 + $0x28] sm:$0x3f]  ;;  %s6852_s4 = sld [smem:[#allocation8 + $0x10]] }
 0x1c6   :  { %v6132_v34 = vstv %s6093_s5  ;;  %v6135_v4 = vstv %s6095_s6  ;;  %v1200_v32 = vsel %vm601_vm11, %v1197_v43, %v1199_v2  ;;  %v1218_v3 = vmul.f32 %v6139_v42, %v6129_v61  ;;  %s6854_s5 = sld [smem:[#allocation8 + $0x17]]  ;;  %s6866_s6 = sld [smem:[#allocation8 + $0x2]] }
 0x1c7   :  { %v2088_v5 = vadd.f32 %v2077_v21, %v1210_v35  ;;  %3430 = vrot.lane.b32.xlu1 %v2963_v10, %s4015_s1  ;;  %v1225_v45 = vmul.f32 %v6139_v42, %v6132_v34  ;;  %v1115_v24 = vadd.f32 %v1104_v12, %v1083_v23  ;;  %v1226_v0 = vmul.f32 %v6147_v52, %v6132_v34 }
 0x1c8   :  { %v1257_v21 = vmul.f32 %v6139_v42, %v6135_v4  ;;  %v1258_v63 = vmul.f32 %v6147_v52, %v6135_v4  ;;  %v6156_v40 = vstv %s6112_s7  ;;  %v6159_v22 = vstv %s6114_s8  ;;  %s6907_s7 = sld [smem:[#allocation8 + $0x25]]  ;;  %s6934_s8 = sld [smem:[#allocation8 + $0x2c]] }
 0x1c9   :  { %v2960_v44 = vadd.f32 %v2949_v28, %v2088_v5  ;;  %v1239_v60 = vrot.slane %v1225_v45, 1  ;;  %v1147_v15 = vadd.f32 %v1136_v13, %v1115_v24  ;;  %v1240_v55 = vrot.slane %v1226_v0, 1 }
 0x1ca   :  { %v1271_v6 = vrot.slane %v1257_v21, 2  ;;  %v1272_v1 = vrot.slane %v1258_v63, 2  ;;  %v1289_v38 = vmul.f32 %v6139_v42, %v6156_v40  ;;  %v1290_v27 = vmul.f32 %v6147_v52, %v6156_v40 }
 0x1cb   :  { %3424 = vrot.lane.b32.xlu0 %v2960_v44, %s4015_s1  ;;  %v1321_v51 = vmul.f32 %v6139_v42, %v6159_v22  ;;  %v1322_v29 = vmul.f32 %v6147_v52, %v6159_v22  ;;  %v1179_v36 = vadd.f32 %v1168_v39, %v1147_v15  ;;  %v1241_v20 = vsel %vm437_vm7, %v1239_v60, %v1240_v55 }
 0x1cc   :  { %v1273_v25 = vsel %vm470_vm8, %v1271_v6, %v1272_v1  ;;  %v6173_v41 = vstv %s6123_s9  ;;  %v1250_v57 = vadd.f32 %v1241_v20, %v1218_v3  ;;  %v1303_v43 = vrot.slane %v1289_v38, 3  ;;  %s4018_s9 = smov 126  }
 0x1cd   :  { %v1304_v59 = vrot.slane %v1290_v27, 3  ;;  %v1335_v49 = vrot.slane %v1321_v51, 4  ;;  %v1211_v16 = vadd.f32 %v1200_v32, %v1179_v36  ;;  %v1336_v46 = vrot.slane %v1322_v29, 4 }
 0x1ce   :  { %v1353_v8 = vmul.f32 %v6139_v42, %v6173_v41  ;;  %v1354_v11 = vmul.f32 %v6147_v52, %v6173_v41  ;;  %v1282_v47 = vadd.f32 %v1273_v25, %v1250_v57  ;;  %v6181_v37 = vstv %s6145_s10  ;;  %s3784_s10 = sld [smem:[#allocation8 + $0x7]] }
 0x1cf   :  { %v1305_v18 = vsel %vm503_vm9, %v1303_v43, %v1304_v59  ;;  %v1219_v58 = vmul.f32 %v6147_v52, %v6129_v61  ;;  %v2089_v14 = vadd.f32 %v6081_v33, %v1211_v16  ;;  %v1337_v17 = vsel %vm47_vm0, %v1335_v49, %v1336_v46 }
 0x1d0   :  { %v1367_v31 = vrot.slane %v1353_v8, 5  ;;  %v1368_v19 = vrot.slane %v1354_v11, 5  ;;  %v1314_v56 = vadd.f32 %v1305_v18, %v1282_v47  ;;  %v1385_v50 = vmul.f32 %v6139_v42, %v6181_v37 }
 0x1d1   :  { %v1386_v54 = vmul.f32 %v6147_v52, %v6181_v37  ;;  %v1227_v26 = vmul.f32 %v6191_v7, %v6132_v34  ;;  %v2961_v48 = vadd.f32 %v2951_v30, %v2089_v14  ;;  %v1259_v33 = vmul.f32 %v6191_v7, %v6135_v4 }
 0x1d2   :  { %v1369_v12 = vsel %vm568_vm10, %v1367_v31, %v1368_v19  ;;  %v1291_v13 = vmul.f32 %v6191_v7, %v6156_v40  ;;  %v1346_v35 = vadd.f32 %v1337_v17, %v1314_v56  ;;  %v1399_v39 = vrot.slane %v1385_v50, 6 }
 0x1d3   :  { %v1400_v2 = vrot.slane %v1386_v54, 6  ;;  %v1242_v10 = vrot.slane %v1227_v26, 1  ;;  %3426 = vrot.lane.b32.xlu1 %v2961_v48, %s4015_s1  ;;  %v1274_v23 = vrot.slane %v1259_v33, 2  ;;  %v1323_v5 = vmul.f32 %v6191_v7, %v6159_v22 }
 0x1d4   :  { %v1306_v28 = vrot.slane %v1291_v13, 3  ;;  %v1355_v32 = vmul.f32 %v6191_v7, %v6173_v41  ;;  %v1378_v3 = vadd.f32 %v1369_v12, %v1346_v35  ;;  %v1387_v0 = vmul.f32 %v6191_v7, %v6181_v37 }
 0x1d5   :  { %v1401_v45 = vsel %vm601_vm11, %v1399_v39, %v1400_v2  ;;  %v1243_v24 = vsel %vm437_vm7, %v1240_v55, %v1242_v10  ;;  %v1275_v63 = vsel %vm470_vm8, %v1272_v1, %v1274_v23  ;;  %v1338_v60 = vrot.slane %v1323_v5, 4 }
 0x1d6   :  { %v1251_v21 = vadd.f32 %v1243_v24, %v1219_v58  ;;  %v1307_v44 = vsel %vm503_vm9, %v1304_v59, %v1306_v28  ;;  %v1410_v15 = vadd.f32 %v1401_v45, %v1378_v3  ;;  %v1370_v6 = vrot.slane %v1355_v32, 5 }
 0x1d7   :  { %v1402_v38 = vrot.slane %v1387_v0, 6  ;;  %v1216_v27 = vmul.f32 %v6037_v62, %v6129_v61  ;;  %v1339_v29 = vsel %vm47_vm0, %v1336_v46, %v1338_v60  ;;  %v1222_v55 = vmul.f32 %v6037_v62, %v6132_v34 }
 0x1d8   :  { %v1283_v51 = vadd.f32 %v1275_v63, %v1251_v21  ;;  %v6218_v36 = vmul.f32 %v6051_v53, %v6132_v34  ;;  %1420 = vrot.lane.b32.xlu0 %v1410_v15, %s4016_s22  ;;  %v1371_v1 = vsel %vm568_vm10, %v1368_v19, %v1370_v6  ;;  %v1254_v25 = vmul.f32 %v6037_v62, %v6135_v4 }
 0x1d9   :  { %v1403_v20 = vsel %vm601_vm11, %v1400_v2, %v1402_v38  ;;  %v1255_v57 = vmul.f32 %v6051_v53, %v6135_v4  ;;  %v1234_v59 = vrot.slane %v1222_v55, 1  ;;  %v1286_v16 = vmul.f32 %v6037_v62, %v6156_v40 }
 0x1da   :  { %v1315_v43 = vadd.f32 %v1307_v44, %v1283_v51  ;;  %v1235_v49 = vrot.slane %v6218_v36, 1  ;;  %v1266_v46 = vrot.slane %v1254_v25, 2  ;;  %v1287_v11 = vmul.f32 %v6051_v53, %v6156_v40 }
 0x1db   :  { %v1267_v8 = vrot.slane %v1255_v57, 2  ;;  %v1318_v30 = vmul.f32 %v6037_v62, %v6159_v22  ;;  %v1298_v58 = vrot.slane %v1286_v16, 3  ;;  %v1319_v14 = vmul.f32 %v6051_v53, %v6159_v22 }
 0x1dc   :  { %v1347_v47 = vadd.f32 %v1339_v29, %v1315_v43  ;;  %v1236_v18 = vsel %vm437_vm7, %v1234_v59, %v1235_v49  ;;  %v1299_v19 = vrot.slane %v1287_v11, 3  ;;  %v1350_v26 = vmul.f32 %v6037_v62, %v6173_v41 }
 0x1dd   :  { %v1248_v17 = vadd.f32 %v1236_v18, %v1216_v27  ;;  %v1268_v31 = vsel %vm470_vm8, %v1266_v46, %v1267_v8  ;;  %v1330_v56 = vrot.slane %v1318_v30, 4  ;;  %v1331_v54 = vrot.slane %v1319_v14, 4 }
 0x1de   :  { %v1379_v50 = vadd.f32 %v1371_v1, %v1347_v47  ;;  %v1351_v48 = vmul.f32 %v6051_v53, %v6173_v41  ;;  %v1300_v33 = vsel %vm503_vm9, %v1298_v58, %v1299_v19  ;;  %v1382_v13 = vmul.f32 %v6037_v62, %v6181_v37  ;;  %v6286_v1 = vld [vmem:[#allocation2 + $0x48] sm:$0xff] }
 0x1df   :  { %v1280_v12 = vadd.f32 %v1268_v31, %v1248_v17  ;;  %v1383_v35 = vmul.f32 %v6051_v53, %v6181_v37  ;;  %v1332_v2 = vsel %vm47_vm0, %v1330_v56, %v1331_v54  ;;  %v1362_v10 = vrot.slane %v1350_v26, 5 }
 0x1e0   :  { %v1411_v39 = vadd.f32 %v1403_v20, %v1379_v50  ;;  %v1363_v23 = vrot.slane %v1351_v48, 5  ;;  %v1394_v5 = vrot.slane %v1382_v13, 6  ;;  %v1217_v3 = vmul.f32 %v6051_v53, %v6129_v61 }
 0x1e1   :  { %v1312_v28 = vadd.f32 %v1300_v33, %v1280_v12  ;;  %v1395_v32 = vrot.slane %v1383_v35, 6  ;;  %v1224_v45 = vmul.f32 %v6097_v9, %v6132_v34  ;;  %v1256_v24 = vmul.f32 %v6097_v9, %v6135_v4 }
 0x1e2   :  { %1422 = vrot.lane.b32.xlu1 %v1411_v39, %s4016_s22  ;;  %v1364_v62 = vsel %vm568_vm10, %v1362_v10, %v1363_v23  ;;  %v1288_v0 = vmul.f32 %v6097_v9, %v6156_v40  ;;  %v1320_v21 = vmul.f32 %v6097_v9, %v6159_v22  ;;  %v1352_v34 = vmul.f32 %v6097_v9, %v6173_v41 }
 0x1e3   :  { %v1344_v53 = vadd.f32 %v1332_v2, %v1312_v28  ;;  %v1396_v61 = vsel %vm601_vm11, %v1394_v5, %v1395_v32  ;;  %v1237_v63 = vrot.slane %v1224_v45, 1  ;;  %v1269_v44 = vrot.slane %v1256_v24, 2 }
 0x1e4   :  { %v1301_v60 = vrot.slane %v1288_v0, 3  ;;  %v1384_v4 = vmul.f32 %v6097_v9, %v6181_v37  ;;  %v1333_v15 = vrot.slane %v1320_v21, 4  ;;  %v1365_v6 = vrot.slane %v1352_v34, 5 }
 0x1e5   :  { %v1376_v40 = vadd.f32 %v1364_v62, %v1344_v53  ;;  %v6278_v38 = vstv %s6238_s11  ;;  %v1238_v27 = vsel %vm437_vm7, %v1235_v49, %v1237_v63  ;;  %v1270_v22 = vsel %vm470_vm8, %v1267_v8, %v1269_v44  ;;  %v6301_v49 = vld [vmem:[#allocation2 + $0x50] sm:$0xff]  ;;  %v6343_v63 = vld [vmem:[#allocation2 + $0x58] sm:$0x3f]  ;;  %s3786_s11 = sld [smem:[#allocation8 + $0x15]] }
 0x1e6   :  { %v1302_v51 = vsel %vm503_vm9, %v1299_v19, %v1301_v60  ;;  %v1397_v41 = vrot.slane %v1384_v4, 6  ;;  %v1249_v55 = vadd.f32 %v1238_v27, %v1217_v3  ;;  %v1334_v36 = vsel %vm47_vm0, %v1331_v54, %v1333_v15 }
 0x1e7   :  { %v1408_v29 = vadd.f32 %v1396_v61, %v1376_v40  ;;  %v1366_v9 = vsel %vm568_vm10, %v1363_v23, %v1365_v6  ;;  %v2096_v20 = vmul.f32 %v6286_v1, %v6278_v38  ;;  %v6291_v25 = vstv %s6250_s2  ;;  %s3787_s2 = sld [smem:[#allocation8 + $0x1c]] }
 0x1e8   :  { %v1398_v37 = vsel %vm601_vm11, %v1395_v32, %v1397_v41  ;;  %v6294_v57 = vstv %s6252_s27  ;;  %v1281_v43 = vadd.f32 %v1270_v22, %v1249_v55  ;;  %v2103_v59 = vmul.f32 %v6286_v1, %v6291_v25  ;;  %s417_s27 = sld [smem:[#allocation8]] }
 0x1e9   :  { %1416 = vrot.lane.b32.xlu0 %v1408_v29, %s4016_s22  ;;  %v2104_v16 = vmul.f32 %v6301_v49, %v6291_v25  ;;  %v2135_v46 = vmul.f32 %v6286_v1, %v6294_v57  ;;  %v2136_v8 = vmul.f32 %v6301_v49, %v6294_v57  ;;  %v6310_v11 = vstv %s6256_s12  ;;  %s3788_s12 = sld [smem:[#allocation8 + $0x23]] }
 0x1ea   :  { %v6313_v30 = vstv %s6266_s13  ;;  %v6316_v47 = vstv %s6268_s14  ;;  %v1313_v18 = vadd.f32 %v1302_v51, %v1281_v43  ;;  %v2117_v58 = vrot.slane %v2103_v59, 1  ;;  %s7141_s13 = sld [smem:[#allocation8 + $0x2a]] }
 0x1eb   :  { %v2118_v14 = vrot.slane %v2104_v16, 1  ;;  %v2149_v17 = vrot.slane %v2135_v46, 2  ;;  %v2150_v31 = vrot.slane %v2136_v8, 2  ;;  %v2167_v19 = vmul.f32 %v6286_v1, %v6310_v11  ;;  %s3881_s14 = sld [smem:[#allocation8 + $0x62]] }
 0x1ec   :  { %v2168_v56 = vmul.f32 %v6301_v49, %v6310_v11  ;;  %v2199_v50 = vmul.f32 %v6286_v1, %v6313_v30  ;;  %v1345_v54 = vadd.f32 %v1334_v36, %v1313_v18  ;;  %v2200_v48 = vmul.f32 %v6301_v49, %v6313_v30 }
 0x1ed   :  { %v2119_v26 = vsel %vm437_vm7, %v2117_v58, %v2118_v14  ;;  %v2231_v12 = vmul.f32 %v6286_v1, %v6316_v47  ;;  %v2151_v13 = vsel %vm470_vm8, %v2149_v17, %v2150_v31  ;;  %v2181_v35 = vrot.slane %v2167_v19, 3 }
 0x1ee   :  { %v2128_v33 = vadd.f32 %v2119_v26, %v2096_v20  ;;  %v2182_v39 = vrot.slane %v2168_v56, 3  ;;  %v1377_v2 = vadd.f32 %v1366_v9, %v1345_v54  ;;  %v2213_v10 = vrot.slane %v2199_v50, 4  ;;  %v6364_v56 = vld [vmem:[#allocation2 + $0x30] sm:$0xff]  ;;  %v6370_v54 = vld [vmem:[#allocation2 + $0x38] sm:$0xff] }
 0x1ef   :  { %v2214_v23 = vrot.slane %v2200_v48, 4  ;;  %v2232_v28 = vmul.f32 %v6301_v49, %v6316_v47  ;;  %v2245_v3 = vrot.slane %v2231_v12, 5  ;;  %v6334_v62 = vstv %s6296_s15  ;;  %s4020_s15 = smov 16  }
 0x1f0   :  { %v2160_v5 = vadd.f32 %v2151_v13, %v2128_v33  ;;  %v2183_v32 = vsel %vm503_vm9, %v2181_v35, %v2182_v39  ;;  %v1409_v45 = vadd.f32 %v1398_v37, %v1377_v2  ;;  %v2263_v53 = vmul.f32 %v6286_v1, %v6334_v62 }
 0x1f1   :  { %v2215_v24 = vsel %vm47_vm0, %v2213_v10, %v2214_v23  ;;  %v2246_v0 = vrot.slane %v2232_v28, 5  ;;  %v2264_v21 = vmul.f32 %v6301_v49, %v6334_v62  ;;  %v2097_v34 = vmul.f32 %v6301_v49, %v6278_v38 }
 0x1f2   :  { %v2192_v61 = vadd.f32 %v2183_v32, %v2160_v5  ;;  %v2105_v44 = vmul.f32 %v6343_v63, %v6291_v25  ;;  %1418 = vrot.lane.b32.xlu1 %v1409_v45, %s4016_s22  ;;  %v2277_v4 = vrot.slane %v2263_v53, 6  ;;  %v2137_v40 = vmul.f32 %v6343_v63, %v6294_v57  ;;  %s6395_s22 = sld [smem:[#allocation8 + $0x36]] }
 0x1f3   :  { %v2247_v60 = vsel %vm568_vm10, %v2245_v3, %v2246_v0  ;;  %v2169_v15 = vmul.f32 %v6343_v63, %v6310_v11  ;;  %v2278_v27 = vrot.slane %v2264_v21, 6  ;;  %v2201_v51 = vmul.f32 %v6343_v63, %v6313_v30 }
 0x1f4   :  { %v2224_v6 = vadd.f32 %v2215_v24, %v2192_v61  ;;  %v2120_v22 = vrot.slane %v2105_v44, 1  ;;  %v2152_v41 = vrot.slane %v2137_v40, 2  ;;  %v2233_v55 = vmul.f32 %v6343_v63, %v6316_v47 }
 0x1f5   :  { %v2184_v29 = vrot.slane %v2169_v15, 3  ;;  %v2265_v36 = vmul.f32 %v6343_v63, %v6334_v62  ;;  %v2216_v20 = vrot.slane %v2201_v51, 4  ;;  %v2279_v43 = vsel %vm601_vm11, %v2277_v4, %v2278_v27 }
 0x1f6   :  { %v2256_v9 = vadd.f32 %v2247_v60, %v2224_v6  ;;  %v2121_v37 = vsel %vm437_vm7, %v2118_v14, %v2120_v22  ;;  %v2153_v16 = vsel %vm470_vm8, %v2150_v31, %v2152_v41  ;;  %v2248_v46 = vrot.slane %v2233_v55, 5 }
 0x1f7   :  { %v2129_v59 = vadd.f32 %v2121_v37, %v2097_v34  ;;  %v2185_v18 = vsel %vm503_vm9, %v2182_v39, %v2184_v29  ;;  %v2217_v58 = vsel %vm47_vm0, %v2214_v23, %v2216_v20  ;;  %v2280_v17 = vrot.slane %v2265_v36, 6  ;;  %v6414_v37 = vld [vmem:[#allocation2 + $0x40] sm:$0x3f] }
 0x1f8   :  { %v2288_v8 = vadd.f32 %v2279_v43, %v2256_v9  ;;  %v2094_v50 = vmul.f32 %v6364_v56, %v6278_v38  ;;  %v2100_v14 = vmul.f32 %v6364_v56, %v6291_v25  ;;  %v2101_v31 = vmul.f32 %v6370_v54, %v6291_v25 }
 0x1f9   :  { %v2161_v19 = vadd.f32 %v2153_v16, %v2129_v59  ;;  %v2249_v26 = vsel %vm568_vm10, %v2246_v0, %v2248_v46  ;;  %v2132_v48 = vmul.f32 %v6364_v56, %v6294_v57  ;;  %v2133_v12 = vmul.f32 %v6370_v54, %v6294_v57 }
 0x1fa   :  { %2298 = vrot.lane.b32.xlu0 %v2288_v8, %s4015_s1  ;;  %v2164_v33 = vmul.f32 %v6364_v56, %v6310_v11  ;;  %v2112_v35 = vrot.slane %v2100_v14, 1  ;;  %v2113_v39 = vrot.slane %v2101_v31, 1  ;;  %v2165_v2 = vmul.f32 %v6370_v54, %v6310_v11 }
 0x1fb   :  { %v2193_v13 = vadd.f32 %v2185_v18, %v2161_v19  ;;  %v2281_v10 = vsel %vm601_vm11, %v2278_v27, %v2280_v17  ;;  %v2144_v23 = vrot.slane %v2132_v48, 2  ;;  %v2145_v28 = vrot.slane %v2133_v12, 2 }
 0x1fc   :  { %v2196_v5 = vmul.f32 %v6364_v56, %v6313_v30  ;;  %v2114_v3 = vsel %vm437_vm7, %v2112_v35, %v2113_v39  ;;  %v2177_v45 = vrot.slane %v2165_v2, 3  ;;  %v2197_v24 = vmul.f32 %v6370_v54, %v6313_v30 }
 0x1fd   :  { %v2225_v32 = vadd.f32 %v2217_v58, %v2193_v13  ;;  %v2126_v0 = vadd.f32 %v2114_v3, %v2094_v50  ;;  %v2146_v53 = vsel %vm470_vm8, %v2144_v23, %v2145_v28  ;;  %v2176_v61 = vrot.slane %v2164_v33, 3 }
 0x1fe   :  { %v2228_v21 = vmul.f32 %v6364_v56, %v6316_v47  ;;  %v2208_v44 = vrot.slane %v2196_v5, 4  ;;  %v2209_v60 = vrot.slane %v2197_v24, 4  ;;  %v2229_v4 = vmul.f32 %v6370_v54, %v6316_v47 }
 0x1ff   :  { %v2257_v34 = vadd.f32 %v2249_v26, %v2225_v32  ;;  %v2158_v40 = vadd.f32 %v2146_v53, %v2126_v0  ;;  %v2178_v15 = vsel %vm503_vm9, %v2176_v61, %v2177_v45  ;;  %v2260_v6 = vmul.f32 %v6364_v56, %v6334_v62 }
 0x200   :  { %v6402_v27 = vmul.f32 %v6370_v54, %v6334_v62  ;;  %v2210_v51 = vsel %vm47_vm0, %v2208_v44, %v2209_v60  ;;  %v2240_v41 = vrot.slane %v2228_v21, 5  ;;  %v2241_v29 = vrot.slane %v2229_v4, 5 }
 0x201   :  { %v2289_v22 = vadd.f32 %v2281_v10, %v2257_v34  ;;  %v2190_v55 = vadd.f32 %v2178_v15, %v2158_v40  ;;  %v2095_v9 = vmul.f32 %v6370_v54, %v6278_v38  ;;  %v2102_v20 = vmul.f32 %v6414_v37, %v6291_v25 }
 0x202   :  { %v2273_v36 = vrot.slane %v6402_v27, 6  ;;  %v2272_v43 = vrot.slane %v2260_v6, 6  ;;  %v2134_v59 = vmul.f32 %v6414_v37, %v6294_v57  ;;  %v2166_v16 = vmul.f32 %v6414_v37, %v6310_v11 }
 0x203   :  { %2300 = vrot.lane.b32.xlu1 %v2289_v22, %s4015_s1  ;;  %v2198_v46 = vmul.f32 %v6414_v37, %v6313_v30  ;;  %v2222_v8 = vadd.f32 %v2210_v51, %v2190_v55  ;;  %v2242_v38 = vsel %vm568_vm10, %v2240_v41, %v2241_v29  ;;  %v2115_v18 = vrot.slane %v2102_v20, 1 }
 0x204   :  { %v2230_v25 = vmul.f32 %v6414_v37, %v6316_v47  ;;  %v2147_v58 = vrot.slane %v2134_v59, 2  ;;  %v2179_v17 = vrot.slane %v2166_v16, 3  ;;  %v2262_v57 = vmul.f32 %v6414_v37, %v6334_v62 }
 0x205   :  { %v2211_v19 = vrot.slane %v2198_v46, 4  ;;  %v2254_v11 = vadd.f32 %v2242_v38, %v2222_v8  ;;  %v2274_v30 = vsel %vm601_vm11, %v2272_v43, %v2273_v36  ;;  %v2116_v50 = vsel %vm437_vm7, %v2113_v39, %v2115_v18 }
 0x206   :  { %v2243_v14 = vrot.slane %v2230_v25, 5  ;;  %v2127_v47 = vadd.f32 %v2116_v50, %v2095_v9  ;;  %v2148_v31 = vsel %vm470_vm8, %v2145_v28, %v2147_v58  ;;  %v2180_v26 = vsel %vm503_vm9, %v2177_v45, %v2179_v17 }
 0x207   :  { %v6441_v48 = vstv %s6395_s22  ;;  %v2286_v62 = vadd.f32 %v2274_v30, %v2254_v11  ;;  %v2212_v12 = vsel %vm47_vm0, %v2209_v60, %v2211_v19  ;;  %v2275_v13 = vrot.slane %v2262_v57, 6  ;;  %s4021_s22 = smov 32  }
 0x208   :  { %v2244_v33 = vsel %vm568_vm10, %v2241_v29, %v2243_v14  ;;  %v2159_v35 = vadd.f32 %v2148_v31, %v2127_v47  ;;  %v6446_v2 = vstv %s6404_s16  ;;  %v6449_v39 = vstv %s6407_s17  ;;  %s4022_s16 = smov 48   ;;  %s4023_s17 = smov 64  }
 0x209   :  { %v6452_v10 = vstv %s6409_s18  ;;  %2294 = vrot.lane.b32.xlu0 %v2286_v62, %s4015_s1  ;;  %v2968_v23 = vmul.f32 %v6286_v1, %v6441_v48  ;;  %v2975_v28 = vmul.f32 %v6286_v1, %v6446_v2  ;;  %v6463_v5 = vmul.f32 %v6301_v49, %v6446_v2  ;;  %s4024_s18 = smov 80  }
 0x20a   :  { %v3007_v32 = vmul.f32 %v6286_v1, %v6449_v39  ;;  %v2191_v3 = vadd.f32 %v2180_v26, %v2159_v35  ;;  %v6471_v45 = vmul.f32 %v6301_v49, %v6449_v39  ;;  %v3039_v24 = vmul.f32 %v6286_v1, %v6452_v10 }
 0x20b   :  { %v6477_v0 = vmul.f32 %v6301_v49, %v6452_v10  ;;  %v2989_v53 = vrot.slane %v2975_v28, 1  ;;  %v2990_v61 = vrot.slane %v6463_v5, 1  ;;  %v6483_v34 = vstv %s6428_s19  ;;  %s4025_s19 = smov 96  }
 0x20c   :  { %v3021_v21 = vrot.slane %v3007_v32, 2  ;;  %v2223_v44 = vadd.f32 %v2212_v12, %v2191_v3  ;;  %v3022_v60 = vrot.slane %v6471_v45, 2  ;;  %v3053_v4 = vrot.slane %v3039_v24, 3 }
 0x20d   :  { %v3054_v40 = vrot.slane %v6477_v0, 3  ;;  %v2991_v15 = vsel %vm437_vm7, %v2989_v53, %v2990_v61  ;;  %v3071_v6 = vmul.f32 %v6286_v1, %v6483_v34  ;;  %v6498_v22 = vmul.f32 %v6301_v49, %v6483_v34 }
 0x20e   :  { %v6501_v51 = vstv %s6436_s20  ;;  %v2255_v41 = vadd.f32 %v2244_v33, %v2223_v44  ;;  %v2276_v29 = vsel %vm601_vm11, %v2273_v36, %v2275_v13  ;;  %v3000_v55 = vadd.f32 %v2991_v15, %v2968_v23  ;;  %s4026_s20 = smov 112  }
 0x20f   :  { %v3023_v9 = vsel %vm470_vm8, %v3021_v21, %v3022_v60  ;;  %v3055_v20 = vsel %vm503_vm9, %v3053_v4, %v3054_v40  ;;  %v3086_v43 = vrot.slane %v6498_v22, 4  ;;  %v3103_v59 = vmul.f32 %v6286_v1, %v6501_v51 }
 0x210   :  { %v6517_v27 = vmul.f32 %v6301_v49, %v6501_v51  ;;  %v2287_v36 = vadd.f32 %v2276_v29, %v2255_v41  ;;  %v3032_v16 = vadd.f32 %v3023_v9, %v3000_v55  ;;  %v3085_v46 = vrot.slane %v3071_v6, 4 }
 0x211   :  { %v6522_v8 = vstv %s6454_s21  ;;  %v3117_v38 = vrot.slane %v3103_v59, 5  ;;  %v6528_v58 = vstv %s6467_s23  ;;  %v6539_v11 = vstv %s6479_s24  ;;  %s4028_s21 = smov [#allocation9]  }
 0x212   :  { %v3118_v18 = vrot.slane %v6517_v27, 5  ;;  %v3135_v25 = vmul.f32 %v6286_v1, %v6522_v8  ;;  %2296 = vrot.lane.b32.xlu1 %v2287_v36, %s4015_s1  ;;  %v3064_v17 = vadd.f32 %v3055_v20, %v3032_v16  ;;  %v3087_v19 = vsel %vm47_vm0, %v3085_v46, %v3086_v43  ;;  %s3771_s23 = sshll.u32 %s4028_s21, 4  ;;  %s3772_s23 = int_to_ptr.vmem [resolvable:$true] %s3771_s23 }
 0x213   :  { %v6536_v57 = vmul.f32 %v6301_v49, %v6522_v8  ;;  %v631_v50 = vmul.f32 %v6139_v42, %v6539_v11  ;;  %v6548_v14 = vmul.f32 %v6147_v52, %v6539_v11  ;;  %v6552_v26 = vstv %s6485_s25  ;;  %s3974_s24 = scalar_lea.vmem %s3772_s23, 256  ;;  %p3979_p0 = scmp.lt.s32.totalorder %s3772_s23, %s3772_s23 }
 0x214   :  { %v3119_v1 = vsel %vm568_vm10, %v3117_v38, %v3118_v18  ;;  %v3149_v30 = vrot.slane %v3135_v25, 6  ;;  %v3096_v47 = vadd.f32 %v3087_v19, %v3064_v17  ;;  %v6555_v62 = vstv %s6489_s26  ;;  %p3975_p13 = scmp.ne.s32.totalorder %s3772_s23, %s3974_s24  ;;  %p3980_p1 = scmp.lt.s32.totalorder %s3974_s24, %s3974_s24 }
 0x215   :  { %v3150_v31 = vrot.slane %v6536_v57, 6  ;;  %v645_v12 = vrot.slane %v631_v50, 1  ;;  %v646_v33 = vrot.slane %v6548_v14, 1  ;;  %v663_v13 = vmul.f32 %v6139_v42, %v6552_v26 }
 0x216   :  { %v6562_v35 = vmul.f32 %v6147_v52, %v6552_v26  ;;  %v3128_v23 = vadd.f32 %v3119_v1, %v3096_v47  ;;  %v624_v32 = vmul.f32 %v6139_v42, %v6528_v58  ;;  %v6571_v3 = vmul.f32 %v6147_v52, %v6555_v62  ;;  %p3981_p2 = por %p3980_p1, %p3979_p0 }
 0x217   :  { %v3151_v28 = vsel %vm601_vm11, %v3149_v30, %v3150_v31  ;;  %v647_v24 = vsel %vm437_vm7, %v645_v12, %v646_v33  ;;  %v695_v21 = vmul.f32 %v6139_v42, %v6555_v62  ;;  %v6580_v44 = vstv %s6519_s0 }
 0x218   :  { %v678_v53 = vrot.slane %v6562_v35, 2  ;;  %v3160_v4 = vadd.f32 %v3151_v28, %v3128_v23  ;;  %v656_v15 = vadd.f32 %v647_v24, %v624_v32  ;;  %v677_v6 = vrot.slane %v663_v13, 2  ;;  %p3982_p3 = pnand %p3981_p2, %p3975_p13 }
 0x219   :  { %v710_v41 = vrot.slane %v6571_v3, 3  ;;  %v727_v29 = vmul.f32 %v6139_v42, %v6580_v44  ;;  %v6588_v55 = vmul.f32 %v6147_v52, %v6580_v44  ;;  %v6590_v9 = vstv %s3795_s28 }
 0x21a   :  { %3170 = vrot.lane.b32.xlu0 %v3160_v4, %s4017_s3  ;;  %v679_v20 = vsel %vm470_vm8, %v677_v6, %v678_v53  ;;  %v709_v59 = vrot.slane %v695_v21, 3  ;;  %v6600_v46 = vmul.f32 %v6139_v42, %v6590_v9  ;;  %v2977_v38 = vmul.f32 %v6343_v63, %v6446_v2 }
 0x21b   :  { %v688_v36 = vadd.f32 %v679_v20, %v656_v15  ;;  %v3009_v25 = vmul.f32 %v6343_v63, %v6449_v39  ;;  %v741_v17 = vrot.slane %v727_v29, 4  ;;  %v742_v19 = vrot.slane %v6588_v55, 4 }
 0x21c   :  { %v711_v16 = vsel %vm503_vm9, %v709_v59, %v710_v41  ;;  %v6609_v1 = vmul.f32 %v6147_v52, %v6590_v9  ;;  %v3041_v30 = vmul.f32 %v6343_v63, %v6452_v10  ;;  %v6613_v50 = vstv %s3796_s29 }
 0x21d   :  { %v2992_v47 = vrot.slane %v2977_v38, 1  ;;  %v3024_v12 = vrot.slane %v3009_v25, 2  ;;  %v3073_v13 = vmul.f32 %v6343_v63, %v6483_v34  ;;  %v2969_v23 = vmul.f32 %v6301_v49, %v6441_v48 }
 0x21e   :  { %v3056_v28 = vrot.slane %v3041_v30, 3  ;;  %v3105_v32 = vmul.f32 %v6343_v63, %v6501_v51  ;;  %v3137_v24 = vmul.f32 %v6343_v63, %v6522_v8  ;;  %v720_v21 = vadd.f32 %v711_v16, %v688_v36 }
 0x21f   :  { %v773_v4 = vrot.slane %v6600_v46, 5  ;;  %v2993_v15 = vsel %vm437_vm7, %v2990_v61, %v2992_v47  ;;  %v3088_v6 = vrot.slane %v3073_v13, 4  ;;  %v743_v29 = vsel %vm47_vm0, %v741_v17, %v742_v19 }
 0x220   :  { %v774_v49 = vrot.slane %v6609_v1, 5  ;;  %v6633_v20 = vmul.f32 %v6139_v42, %v6613_v50  ;;  %v3001_v59 = vadd.f32 %v2993_v15, %v2969_v23  ;;  %v3025_v63 = vsel %vm470_vm8, %v3022_v60, %v3024_v12 }
 0x221   :  { %v3057_v5 = vsel %vm503_vm9, %v3054_v40, %v3056_v28  ;;  %v3120_v61 = vrot.slane %v3105_v32, 5  ;;  %v2972_v36 = vmul.f32 %v6364_v56, %v6446_v2  ;;  %v3089_v46 = vsel %vm47_vm0, %v3086_v43, %v3088_v6 }
 0x222   :  { %v3033_v16 = vadd.f32 %v3025_v63, %v3001_v59  ;;  %v3152_v42 = vrot.slane %v3137_v24, 6  ;;  %v6648_v38 = vmul.f32 %v6370_v54, %v6446_v2  ;;  %v2966_v45 = vmul.f32 %v6364_v56, %v6441_v48 }
 0x223   :  { %v2984_v0 = vrot.slane %v2972_v36, 1  ;;  %v3004_v60 = vmul.f32 %v6364_v56, %v6449_v39  ;;  %v6656_v40 = vmul.f32 %v6370_v54, %v6449_v39  ;;  %v3036_v43 = vmul.f32 %v6364_v56, %v6452_v10 }
 0x224   :  { %v3065_v25 = vadd.f32 %v3057_v5, %v3033_v16  ;;  %v2985_v22 = vrot.slane %v6648_v38, 1  ;;  %v6663_v17 = vmul.f32 %v6370_v54, %v6452_v10  ;;  %v3068_v12 = vmul.f32 %v6364_v56, %v6483_v34  ;;  %v6783_v38 = vld [vmem:[#allocation2] sm:$0xff] }
 0x225   :  { %v3016_v30 = vrot.slane %v3004_v60, 2  ;;  %v3017_v47 = vrot.slane %v6656_v40, 2  ;;  %v6670_v13 = vmul.f32 %v6370_v54, %v6483_v34  ;;  %v6674_v23 = vmul.f32 %v6147_v52, %v6613_v50 }
 0x226   :  { %v3097_v28 = vadd.f32 %v3089_v46, %v3065_v25  ;;  %v2986_v32 = vsel %vm437_vm7, %v2984_v0, %v2985_v22  ;;  %v3049_v24 = vrot.slane %v6663_v17, 3  ;;  %v3121_v15 = vsel %vm568_vm10, %v3118_v18, %v3120_v61 }
 0x227   :  { %v2998_v6 = vadd.f32 %v2986_v32, %v2966_v45  ;;  %v3018_v59 = vsel %vm470_vm8, %v3016_v30, %v3017_v47  ;;  %v3048_v63 = vrot.slane %v3036_v43, 3  ;;  %v3081_v36 = vrot.slane %v6670_v13, 4 }
 0x228   :  { %v3129_v5 = vadd.f32 %v3121_v15, %v3097_v28  ;;  %v3100_v16 = vmul.f32 %v6364_v56, %v6501_v51  ;;  %v6691_v46 = vmul.f32 %v6370_v54, %v6501_v51  ;;  %v3153_v27 = vsel %vm601_vm11, %v3150_v31, %v3152_v42 }
 0x229   :  { %v3030_v18 = vadd.f32 %v3018_v59, %v2998_v6  ;;  %v3080_v61 = vrot.slane %v3068_v12, 4  ;;  %v6698_v45 = vmul.f32 %v6370_v54, %v6522_v8  ;;  %v3050_v60 = vsel %vm503_vm9, %v3048_v63, %v3049_v24 }
 0x22a   :  { %v3161_v0 = vadd.f32 %v3153_v27, %v3129_v5  ;;  %v3113_v25 = vrot.slane %v6691_v46, 5  ;;  %v3132_v43 = vmul.f32 %v6364_v56, %v6522_v8  ;;  %v752_v30 = vadd.f32 %v743_v29, %v720_v21 }
 0x22b   :  { %v775_v57 = vsel %vm568_vm10, %v773_v4, %v774_v49  ;;  %v3062_v31 = vadd.f32 %v3050_v60, %v3030_v18  ;;  %v633_v42 = vmul.f32 %v6191_v7, %v6539_v11  ;;  %v3082_v12 = vsel %vm47_vm0, %v3080_v61, %v3081_v36 }
 0x22c   :  { %3172 = vrot.lane.b32.xlu1 %v3161_v0, %s4017_s3  ;;  %v3112_v28 = vrot.slane %v3100_v16, 5  ;;  %v3145_v32 = vrot.slane %v6698_v45, 6  ;;  %v665_v56 = vmul.f32 %v6191_v7, %v6552_v26  ;;  %v625_v4 = vmul.f32 %v6147_v52, %v6528_v58 }
 0x22d   :  { %v3094_v21 = vadd.f32 %v3082_v12, %v3062_v31  ;;  %v648_v29 = vrot.slane %v633_v42, 1  ;;  %v697_v15 = vmul.f32 %v6191_v7, %v6555_v62  ;;  %v3144_v59 = vrot.slane %v3132_v43, 6 }
 0x22e   :  { %v3114_v6 = vsel %vm568_vm10, %v3112_v28, %v3113_v25  ;;  %v680_v63 = vrot.slane %v665_v56, 2  ;;  %v729_v5 = vmul.f32 %v6191_v7, %v6580_v44  ;;  %v805_v16 = vrot.slane %v6633_v20, 6 }
 0x22f   :  { %v806_v27 = vrot.slane %v6674_v23, 6  ;;  %v3126_v18 = vadd.f32 %v3114_v6, %v3094_v21  ;;  %v649_v52 = vsel %vm437_vm7, %v646_v33, %v648_v29  ;;  %v784_v61 = vadd.f32 %v775_v57, %v752_v30  ;;  %v6758_v21 = vpop.permute.xlu0 %1638 }
 0x230   :  { %v3146_v0 = vsel %vm601_vm11, %v3144_v59, %v3145_v32  ;;  %v657_v60 = vadd.f32 %v649_v52, %v625_v4  ;;  %v681_v43 = vsel %vm470_vm8, %v678_v53, %v680_v63  ;;  %v712_v42 = vrot.slane %v697_v15, 3  ;;  %v6787_v63 = vld [vmem:[#allocation2 + $0x8] sm:$0xff] }
 0x231   :  { %v3158_v31 = vadd.f32 %v3146_v0, %v3126_v18  ;;  %v6740_v20 = vmul.f32 %v6191_v7, %v6590_v9  ;;  %v2974_v14 = vmul.f32 %v6414_v37, %v6446_v2  ;;  %v744_v30 = vrot.slane %v729_v5, 4 }
 0x232   :  { %v689_v33 = vadd.f32 %v681_v43, %v657_v60  ;;  %v3006_v57 = vmul.f32 %v6414_v37, %v6449_v39  ;;  %v3038_v12 = vmul.f32 %v6414_v37, %v6452_v10  ;;  %v807_v35 = vsel %vm601_vm11, %v805_v16, %v806_v27 }
 0x233   :  { %3166 = vrot.lane.b32.xlu0 %v3158_v31, %s4017_s3  ;;  %v2987_v53 = vrot.slane %v2974_v14, 1  ;;  %v3070_v28 = vmul.f32 %v6414_v37, %v6483_v34  ;;  %v3102_v2 = vmul.f32 %v6414_v37, %v6501_v51  ;;  %v6756_v56 = vadd.f32 %v807_v35, %v784_v61  ;;  %v6795_v5 = vpop.permute.xlu0 %1634 }
 0x234   :  { %v2967_v39 = vmul.f32 %v6370_v54, %v6441_v48  ;;  %v3019_v10 = vrot.slane %v3006_v57, 2  ;;  %v3134_v4 = vmul.f32 %v6414_v37, %v6522_v8  ;;  %v713_v29 = vsel %vm503_vm9, %v710_v41, %v712_v42  ;;  %v6778_v48 = vpop.permute.xlu1 %1640 }
 0x235   :  { %v6769_v34 = vmul.f32 %v6191_v7, %v6613_v50  ;;  %v2988_v51 = vsel %vm437_vm7, %v2985_v22, %v2987_v53  ;;  %v3051_v15 = vrot.slane %v3038_v12, 3  ;;  %v721_v6 = vadd.f32 %v713_v29, %v689_v33 }
 0x236   :  { %v745_v54 = vsel %vm47_vm0, %v742_v19, %v744_v30  ;;  %v776_v37 = vrot.slane %v6740_v20, 5  ;;  %v2999_v8 = vadd.f32 %v2988_v51, %v2967_v39  ;;  %v3020_v7 = vsel %vm470_vm8, %v3017_v47, %v3019_v10 }
 0x237   :  { %v3083_v3 = vrot.slane %v3070_v28, 4  ;;  %v3115_v41 = vrot.slane %v3102_v2, 5  ;;  %v628_v22 = vmul.f32 %v6783_v38, %v6539_v11  ;;  %v3147_v55 = vrot.slane %v3134_v4, 6  ;;  %v6836_v10 = vpop.permute.xlu0 %1856 }
 0x238   :  { %v3031_v59 = vadd.f32 %v3020_v7, %v2999_v8  ;;  %v6791_v19 = vmul.f32 %v6787_v63, %v6539_v11  ;;  %v660_v40 = vmul.f32 %v6783_v38, %v6552_v26  ;;  %v3052_v47 = vsel %vm503_vm9, %v3049_v24, %v3051_v15  ;;  %v6813_v43 = vpop.permute.xlu1 %1636 }
 0x239   :  { %v6802_v16 = vmul.f32 %v6787_v63, %v6552_v26  ;;  %v692_v18 = vmul.f32 %v6783_v38, %v6555_v62  ;;  %v6808_v52 = vmul.f32 %v6787_v63, %v6555_v62  ;;  %v622_v0 = vmul.f32 %v6783_v38, %v6528_v58 }
 0x23a   :  { %v3063_v61 = vadd.f32 %v3052_v47, %v3031_v59  ;;  %v640_v60 = vrot.slane %v628_v22, 1  ;;  %v641_v17 = vrot.slane %v6791_v19, 1  ;;  %v3084_v24 = vsel %vm47_vm0, %v3081_v36, %v3083_v3 }
 0x23b   :  { %v672_v31 = vrot.slane %v660_v40, 2  ;;  %v673_v42 = vrot.slane %v6802_v16, 2  ;;  %v705_v20 = vrot.slane %v6808_v52, 3  ;;  %v724_v30 = vmul.f32 %v6783_v38, %v6580_v44  ;;  %v6890_v47 = vpop.permute.xlu0 %2516 }
 0x23c   :  { %v3095_v14 = vadd.f32 %v3084_v24, %v3063_v61  ;;  %v642_v33 = vsel %vm437_vm7, %v640_v60, %v641_v17  ;;  %v6825_v57 = vmul.f32 %v6787_v63, %v6580_v44  ;;  %v753_v12 = vadd.f32 %v745_v54, %v721_v6  ;;  %v6862_v54 = vld [vmem:[#allocation2 + $0x10] sm:$0x3f] }
 0x23d   :  { %v3116_v13 = vsel %vm568_vm10, %v3113_v25, %v3115_v41  ;;  %v654_v36 = vadd.f32 %v642_v33, %v622_v0  ;;  %v704_v35 = vrot.slane %v692_v18, 3  ;;  %v674_v28 = vsel %vm470_vm8, %v672_v31, %v673_v42 }
 0x23e   :  { %v3127_v53 = vadd.f32 %v3116_v13, %v3095_v14  ;;  %v737_v2 = vrot.slane %v6825_v57, 4  ;;  %v6834_v39 = vmul.f32 %v6787_v63, %v6590_v9  ;;  %v777_v4 = vsel %vm568_vm10, %v774_v49, %v776_v37  ;;  %v6856_v49 = vpop.permute.xlu1 %1858  ;;  %v6924_v13 = vld [vmem:[#allocation2 + $0x18] sm:$0xff] }
 0x23f   :  { %v808_v46 = vrot.slane %v6769_v34, 6  ;;  %v3148_v25 = vsel %vm601_vm11, %v3145_v32, %v3147_v55  ;;  %v686_v29 = vadd.f32 %v674_v28, %v654_v36  ;;  %v706_v15 = vsel %vm503_vm9, %v704_v35, %v705_v20  ;;  %v6928_v36 = vld [vmem:[#allocation2 + $0x20] sm:$0xff] }
 0x240   :  { %v3159_v51 = vadd.f32 %v3148_v25, %v3127_v53  ;;  %v736_v6 = vrot.slane %v724_v30, 4  ;;  %v756_v1 = vmul.f32 %v6783_v38, %v6590_v9  ;;  %v785_v45 = vadd.f32 %v777_v4, %v753_v12  ;;  %v6942_v4 = vpop.permute.xlu0 %1852 }
 0x241   :  { %v718_v32 = vadd.f32 %v706_v15, %v686_v29  ;;  %v6860_v34 = vmul.f32 %v6783_v38, %v6613_v50  ;;  %v630_v37 = vmul.f32 %v6862_v54, %v6539_v11  ;;  %v769_v7 = vrot.slane %v6834_v39, 5 }
 0x242   :  { %3168 = vrot.lane.b32.xlu1 %v3159_v51, %s4017_s3  ;;  %v738_v8 = vsel %vm47_vm0, %v736_v6, %v737_v2  ;;  %v662_v3 = vmul.f32 %v6862_v54, %v6552_v26  ;;  %v694_v41 = vmul.f32 %v6862_v54, %v6555_v62  ;;  %v6879_v11 = vmul.f32 %v6787_v63, %v6613_v50  ;;  %s6883_s3 = sld [smem:[#allocation8 + $0x1e]]  ;;  %v6902_v60 = vpop.permute.xlu1 %2518 }
 0x243   :  { %v750_v22 = vadd.f32 %v738_v8, %v718_v32  ;;  %v643_v59 = vrot.slane %v630_v37, 1  ;;  %v726_v55 = vmul.f32 %v6862_v54, %v6580_v44  ;;  %v809_v19 = vsel %vm601_vm11, %v806_v27, %v808_v46 }
 0x244   :  { %v768_v40 = vrot.slane %v756_v1, 5  ;;  %v623_v26 = vmul.f32 %v6787_v63, %v6528_v58  ;;  %v675_v62 = vrot.slane %v662_v3, 2  ;;  %v6894_v16 = vadd.f32 %v6758_v21, %v6756_v56 }
 0x245   :  { %v817_v44 = vadd.f32 %v809_v19, %v785_v45  ;;  %v644_v18 = vsel %vm437_vm7, %v641_v17, %v643_v59  ;;  %v707_v23 = vrot.slane %v694_v41, 3  ;;  %v800_v58 = vrot.slane %v6860_v34, 6 }
 0x246   :  { %v770_v27 = vsel %vm568_vm10, %v768_v40, %v769_v7  ;;  %v655_v61 = vadd.f32 %v644_v18, %v623_v26  ;;  %v676_v0 = vsel %vm470_vm8, %v673_v42, %v675_v62  ;;  %v801_v21 = vrot.slane %v6879_v11, 6  ;;  %v6957_v32 = vpop.permute.xlu1 %1854 }
 0x247   :  { %v782_v56 = vadd.f32 %v770_v27, %v750_v22  ;;  %v739_v24 = vrot.slane %v726_v55, 4  ;;  %v758_v17 = vmul.f32 %v6862_v54, %v6590_v9  ;;  %v6910_v14 = vstv %s6845_s30 }
 0x248   :  { %v687_v31 = vadd.f32 %v676_v0, %v655_v61  ;;  %v6913_v33 = vstv %s6852_s4  ;;  %v6916_v30 = vstv %s6854_s5  ;;  %v708_v42 = vsel %vm503_vm9, %v705_v20, %v707_v23 }
 0x249   :  { %v6922_v12 = vstv %s6866_s6  ;;  %v829_v9 = vmul.f32 %v6924_v13, %v6910_v14  ;;  %v6932_v35 = vmul.f32 %v6928_v36, %v6910_v14  ;;  %v861_v52 = vmul.f32 %v6924_v13, %v6913_v33 }
 0x24a   :  { %v719_v53 = vadd.f32 %v708_v42, %v687_v31  ;;  %v862_v20 = vmul.f32 %v6928_v36, %v6913_v33  ;;  %v893_v28 = vmul.f32 %v6924_v13, %v6916_v30  ;;  %v6947_v29 = vmul.f32 %v6928_v36, %v6916_v30  ;;  %v6995_v31 = vpop.permute.xlu1 %2514 }
 0x24b   :  { %v843_v46 = vrot.slane %v829_v9, 1  ;;  %v844_v25 = vrot.slane %v6932_v35, 1  ;;  %v6950_v51 = vstv %s6883_s3  ;;  %v740_v15 = vsel %vm47_vm0, %v737_v2, %v739_v24 }
 0x24c   :  { %v822_v6 = vmul.f32 %v6924_v13, %v6922_v12  ;;  %v875_v1 = vrot.slane %v861_v52, 2  ;;  %v876_v45 = vrot.slane %v862_v20, 2  ;;  %v908_v37 = vrot.slane %v6947_v29, 3 }
 0x24d   :  { %v845_v34 = vsel %vm437_vm7, %v843_v46, %v844_v25  ;;  %v925_v8 = vmul.f32 %v6924_v13, %v6950_v51  ;;  %v6965_v57 = vmul.f32 %v6928_v36, %v6950_v51  ;;  %v751_v2 = vadd.f32 %v740_v15, %v719_v53 }
 0x24e   :  { %v771_v3 = vrot.slane %v758_v17, 5  ;;  %v790_v41 = vmul.f32 %v6862_v54, %v6613_v50  ;;  %v854_v22 = vadd.f32 %v845_v34, %v822_v6  ;;  %v877_v59 = vsel %vm470_vm8, %v875_v1, %v876_v45  ;;  %v6984_v50 = vpop.permute.xlu0 %2512 }
 0x24f   :  { %v907_v55 = vrot.slane %v893_v28, 3  ;;  %v940_v19 = vrot.slane %v6965_v57, 4  ;;  %v6972_v40 = vstv %s6907_s7  ;;  %v6975_v26 = vadd.f32 %v6778_v48, %v817_v44 }
 0x250   :  { %v802_v62 = vsel %vm601_vm11, %v800_v58, %v801_v21  ;;  %v886_v18 = vadd.f32 %v877_v59, %v854_v22  ;;  %v6982_v23 = vmul.f32 %v6928_v36, %v6972_v40  ;;  %v939_v0 = vrot.slane %v925_v8, 4 }
 0x251   :  { %v814_v27 = vadd.f32 %v802_v62, %v782_v56  ;;  %v909_v61 = vsel %vm503_vm9, %v907_v55, %v908_v37  ;;  %v6988_v24 = vstv %s6934_s8  ;;  %v772_v48 = vsel %vm568_vm10, %v769_v7, %v771_v3  ;;  %v6998_v56 = vld [vmem:[#allocation2 + $0x28] sm:$0x3f] }
 0x252   :  { %v803_v44 = vrot.slane %v790_v41, 6  ;;  %v918_v17 = vadd.f32 %v909_v61, %v886_v18  ;;  %v957_v58 = vmul.f32 %v6924_v13, %v6972_v40  ;;  %v783_v42 = vadd.f32 %v772_v48, %v751_v2  ;;  %v7022_v57 = vpop.permute.xlu0 %2734  ;;  %v7030_v18 = vpop.permute.xlu1 %2736 }
 0x253   :  { %v941_v9 = vsel %vm47_vm0, %v939_v0, %v940_v19  ;;  %v831_v35 = vmul.f32 %v6998_v56, %v6910_v14  ;;  %v863_v39 = vmul.f32 %v6998_v56, %v6913_v33  ;;  %v972_v7 = vrot.slane %v6982_v23, 5 }
 0x254   :  { %v989_v53 = vmul.f32 %v6924_v13, %v6988_v24  ;;  %v7009_v52 = vmul.f32 %v6928_v36, %v6988_v24  ;;  %v895_v20 = vmul.f32 %v6998_v56, %v6916_v30  ;;  %v950_v28 = vadd.f32 %v941_v9, %v918_v17 }
 0x255   :  { %v846_v46 = vrot.slane %v831_v35, 1  ;;  %v878_v29 = vrot.slane %v863_v39, 2  ;;  %v927_v15 = vmul.f32 %v6998_v56, %v6950_v51  ;;  %v7016_v6 = vadd.f32 %v6795_v5, %v814_v27 }
 0x256   :  { %v971_v1 = vrot.slane %v957_v58, 5  ;;  %v823_v34 = vmul.f32 %v6928_v36, %v6922_v12  ;;  %v959_v8 = vmul.f32 %v6998_v56, %v6972_v40  ;;  %v804_v2 = vsel %vm601_vm11, %v801_v21, %v803_v44 }
 0x257   :  { %v847_v3 = vsel %vm437_vm7, %v844_v25, %v846_v46  ;;  %v879_v41 = vsel %vm470_vm8, %v876_v45, %v878_v29  ;;  %v910_v22 = vrot.slane %v895_v20, 3  ;;  %v815_v5 = vadd.f32 %v804_v2, %v783_v42 }
 0x258   :  { %v973_v59 = vsel %vm568_vm10, %v971_v1, %v972_v7  ;;  %v1003_v55 = vrot.slane %v989_v53, 6  ;;  %v855_v62 = vadd.f32 %v847_v3, %v823_v34  ;;  %v1004_v27 = vrot.slane %v7009_v52, 6  ;;  %v7048_v53 = vpop.permute.xlu0 %3388  ;;  %v3391_v34 = vpop.permute.xlu1 %3390 }
 0x259   :  { %v982_v23 = vadd.f32 %v973_v59, %v950_v28  ;;  %v942_v61 = vrot.slane %v927_v15, 4  ;;  %v991_v11 = vmul.f32 %v6998_v56, %v6988_v24  ;;  %v974_v0 = vrot.slane %v959_v8, 5 }
 0x25a   :  { %v887_v21 = vadd.f32 %v879_v41, %v855_v62  ;;  %v826_v25 = vmul.f32 %v6783_v38, %v6910_v14  ;;  %v827_v45 = vmul.f32 %v6787_v63, %v6910_v14  ;;  %v911_v48 = vsel %vm503_vm9, %v908_v37, %v910_v22 }
 0x25b   :  { %v858_v44 = vmul.f32 %v6783_v38, %v6913_v33  ;;  %v859_v17 = vmul.f32 %v6787_v63, %v6913_v33  ;;  %v890_v58 = vmul.f32 %v6783_v38, %v6916_v30  ;;  %v891_v39 = vmul.f32 %v6787_v63, %v6916_v30 }
 0x25c   :  { %v919_v42 = vadd.f32 %v911_v48, %v887_v21  ;;  %v838_v9 = vrot.slane %v826_v25, 1  ;;  %v839_v35 = vrot.slane %v827_v45, 1  ;;  %v943_v52 = vsel %vm47_vm0, %v940_v19, %v942_v61  ;;  %v7072_v48 = vpop.permute.xlu0 %2730 }
 0x25d   :  { %v820_v37 = vmul.f32 %v6783_v38, %v6922_v12  ;;  %v870_v20 = vrot.slane %v858_v44, 2  ;;  %v871_v28 = vrot.slane %v859_v17, 2  ;;  %v903_v29 = vrot.slane %v891_v39, 3  ;;  %v7086_v17 = vpop.permute.xlu1 %2732 }
 0x25e   :  { %v840_v46 = vsel %vm437_vm7, %v838_v9, %v839_v35  ;;  %v922_v15 = vmul.f32 %v6783_v38, %v6950_v51  ;;  %v7058_v1 = vmul.f32 %v6787_v63, %v6950_v51  ;;  %v1647_v8 = vadd.f32 %v6813_v43, %v815_v5 }
 0x25f   :  { %v1005_v19 = vsel %vm601_vm11, %v1003_v55, %v1004_v27  ;;  %v951_v2 = vadd.f32 %v943_v52, %v919_v42  ;;  %v852_v3 = vadd.f32 %v840_v46, %v820_v37  ;;  %v2526_v22 = vadd.f32 %v6890_v47, %v6894_v16 }
 0x260   :  { %v1014_v41 = vadd.f32 %v1005_v19, %v982_v23  ;;  %v872_v59 = vsel %vm470_vm8, %v870_v20, %v871_v28  ;;  %v902_v62 = vrot.slane %v890_v58, 3  ;;  %v975_v61 = vsel %vm568_vm10, %v972_v7, %v974_v0 }
 0x261   :  { %v884_v21 = vadd.f32 %v872_v59, %v852_v3  ;;  %v935_v25 = vrot.slane %v7058_v1, 4  ;;  %v955_v45 = vmul.f32 %v6787_v63, %v6972_v40  ;;  %v1006_v43 = vrot.slane %v991_v11, 6 }
 0x262   :  { %v2527_v5 = vadd.f32 %v6902_v60, %v6975_v26  ;;  %v904_v55 = vsel %vm503_vm9, %v902_v62, %v903_v29  ;;  %v934_v23 = vrot.slane %v922_v15, 4  ;;  %v983_v47 = vadd.f32 %v975_v61, %v951_v2 }
 0x263   :  { %v916_v16 = vadd.f32 %v904_v55, %v884_v21  ;;  %v954_v7 = vmul.f32 %v6783_v38, %v6972_v40  ;;  %v828_v0 = vmul.f32 %v6862_v54, %v6910_v14  ;;  %v986_v44 = vmul.f32 %v6783_v38, %v6988_v24 }
 0x264   :  { %v987_v11 = vmul.f32 %v6787_v63, %v6988_v24  ;;  %v860_v60 = vmul.f32 %v6862_v54, %v6913_v33  ;;  %v892_v26 = vmul.f32 %v6862_v54, %v6916_v30  ;;  %v936_v58 = vsel %vm47_vm0, %v934_v23, %v935_v25 }
 0x265   :  { %v967_v42 = vrot.slane %v955_v45, 5  ;;  %v841_v9 = vrot.slane %v828_v0, 1  ;;  %v924_v14 = vmul.f32 %v6862_v54, %v6950_v51  ;;  %v948_v39 = vadd.f32 %v936_v58, %v916_v16  ;;  %v3385_v51 = vpop.permute.xlu0 %3384  ;;  %v3387_v45 = vpop.permute.xlu1 %3386 }
 0x266   :  { %v821_v52 = vmul.f32 %v6787_v63, %v6922_v12  ;;  %v873_v37 = vrot.slane %v860_v60, 2  ;;  %v905_v20 = vrot.slane %v892_v26, 3  ;;  %v1007_v33 = vsel %vm601_vm11, %v1004_v27, %v1006_v43 }
 0x267   :  { %v966_v46 = vrot.slane %v954_v7, 5  ;;  %v842_v30 = vsel %vm437_vm7, %v839_v35, %v841_v9  ;;  %v956_v15 = vmul.f32 %v6862_v54, %v6972_v40  ;;  %v1015_v1 = vadd.f32 %v1007_v33, %v983_v47 }
 0x268   :  { %v999_v19 = vrot.slane %v987_v11, 6  ;;  %v853_v2 = vadd.f32 %v842_v30, %v821_v52  ;;  %v874_v3 = vsel %vm470_vm8, %v871_v28, %v873_v37  ;;  %v998_v62 = vrot.slane %v986_v44, 6 }
 0x269   :  { %v968_v59 = vsel %vm568_vm10, %v966_v46, %v967_v42  ;;  %v937_v12 = vrot.slane %v924_v14, 4  ;;  %v988_v61 = vmul.f32 %v6862_v54, %v6988_v24  ;;  %v906_v35 = vsel %vm503_vm9, %v903_v29, %v905_v20  ;;  %v3429_v0 = vpop.permute.xlu0 %3428 }
 0x26a   :  { %v980_v27 = vadd.f32 %v968_v59, %v948_v39  ;;  %v885_v21 = vadd.f32 %v874_v3, %v853_v2  ;;  %v2524_v40 = vadd.f32 %v6984_v50, %v7016_v6  ;;  %v969_v43 = vrot.slane %v956_v15, 5 }
 0x26b   :  { %v2525_v55 = vadd.f32 %v6995_v31, %v1647_v8  ;;  %v3398_v28 = vadd.f32 %v7048_v53, %v2526_v22  ;;  %v3399_v23 = vadd.f32 %v3391_v34, %v2527_v5  ;;  %v1866_v47 = vadd.f32 %v6836_v10, %v1014_v41  ;;  %v3431_v34 = vpop.permute.xlu1 %3430 }
 0x26c   :  { %v1867_v16 = vadd.f32 %v6856_v49, %v1015_v1  ;;  %v1000_v24 = vsel %vm601_vm11, %v998_v62, %v999_v19  ;;  %v917_v7 = vadd.f32 %v906_v35, %v885_v21  ;;  %v938_v29 = vsel %vm47_vm0, %v935_v25, %v937_v12 }
 0x26d   :  { %v1001_v44 = vrot.slane %v988_v61, 6  ;;  %3408 = vrot.lane.b32.xlu0 %v3398_v28, %s4015_s1  ;;  %3410 = vrot.lane.b32.xlu1 %v3399_v23, %s4015_s1  ;;  %v3396_v50 = vadd.f32 %v3385_v51, %v2524_v40  ;;  %v3397_v31 = vadd.f32 %v3387_v45, %v2525_v55  ;;  %v1012_v6 = vadd.f32 %v1000_v24, %v980_v27  ;;  %v3425_v26 = vpop.permute.xlu0 %3424 }
 0x26e   :  { %v949_v53 = vadd.f32 %v938_v29, %v917_v7  ;;  %v970_v10 = vsel %vm568_vm10, %v967_v42, %v969_v43  ;;  %v2744_v49 = vadd.f32 %v7022_v57, %v1866_v47  ;;  %v2745_v8 = vadd.f32 %v7030_v18, %v1867_v16 }
 0x26f   :  { %v1864_v41 = vadd.f32 %v6942_v4, %v1012_v6  ;;  %v1002_v25 = vsel %vm601_vm11, %v999_v19, %v1001_v44  ;;  %v3427_v4 = vpop.permute.xlu1 %3426  ;;  %v424_v14 = vstv %s3784_s10  ;;  %v7128_v20 = vstv %s3786_s11 }
 0x270   :  { %v981_v22 = vadd.f32 %v970_v10, %v949_v53  ;;  %v3438_v5 = vadd.f32 %v3429_v0, %v2744_v49  ;;  %v3439_v11 = vadd.f32 %v3431_v34, %v2745_v8  ;;  %v430_v33 = vmul.f32 %v6998_v56, %v424_v14 }
 0x271   :  { %3404 = vrot.lane.b32.xlu0 %v3396_v50, %s4015_s1  ;;  %3406 = vrot.lane.b32.xlu1 %v3397_v31, %s4015_s1  ;;  %v2742_v58 = vadd.f32 %v7072_v48, %v1864_v41  ;;  %s3785_s1 = sld [smem:[#allocation8 + $0xe]]  ;;  %v429_v48 = vmul.f32 %v6928_v36, %v424_v14  ;;  %v7124_v52 = vpop.permute.xlu0 %1420  ;;  %v7131_v46 = vstv %s3787_s2  ;;  %v418_v30 = vstv %s417_s27 }
 0x272   :  { %v1013_v60 = vadd.f32 %v1002_v25, %v981_v22  ;;  %v494_v2 = vmul.f32 %v6924_v13, %v7128_v20  ;;  %v7139_v3 = vmul.f32 %v6928_v36, %v7128_v20  ;;  %v7146_v59 = vmul.f32 %v6924_v13, %v7131_v46 }
 0x273   :  { %v3436_v57 = vadd.f32 %v3425_v26, %v2742_v58  ;;  %v7126_v37 = vpop.permute.xlu1 %1422  ;;  %v446_v62 = vrot.slane %v430_v33, 1  ;;  %v421_v61 = vmul.f32 %v6924_v13, %v418_v30  ;;  %v7150_v27 = vstv %s3788_s12 }
 0x274   :  { %v1865_v42 = vadd.f32 %v6957_v32, %v1013_v60  ;;  %v428_v32 = vmul.f32 %v6924_v13, %v424_v14  ;;  %v426_v43 = vmul.f32 %v6787_v63, %v424_v14  ;;  %v427_v55 = vmul.f32 %v6862_v54, %v424_v14 }
 0x275   :  { %3448 = vrot.lane.b32.xlu0 %v3438_v5, %s4018_s9  ;;  %3450 = vrot.lane.b32.xlu1 %v3439_v11, %s4018_s9  ;;  %v7152_v21 = vpop.permute.xlu0 %1416  ;;  %v509_v23 = vrot.slane %v494_v2, 3  ;;  %v510_v47 = vrot.slane %v7139_v3, 3  ;;  %v7161_v16 = vmul.f32 %v6928_v36, %v7131_v46  ;;  %v541_v24 = vrot.slane %v7146_v59, 4 }
 0x276   :  { %v2743_v18 = vadd.f32 %v7086_v17, %v1865_v42  ;;  %v444_v17 = vrot.slane %v429_v48, 1  ;;  %v443_v15 = vrot.slane %v428_v32, 1  ;;  %v425_v29 = vmul.f32 %v6783_v38, %v424_v14 }
 0x277   :  { %v457_v39 = vstv %s3785_s1  ;;  %v7154_v35 = vpop.permute.xlu1 %1418  ;;  %v559_v44 = vmul.f32 %v6924_v13, %v7150_v27  ;;  %v7170_v50 = vmul.f32 %v6928_v36, %v7150_v27  ;;  %v422_v31 = vmul.f32 %v6928_v36, %v418_v30 }
 0x278   :  { %v3437_v9 = vadd.f32 %v3427_v4, %v2743_v18  ;;  %v461_v1 = vmul.f32 %v6924_v13, %v457_v39  ;;  %v462_v19 = vmul.f32 %v6928_v36, %v457_v39  ;;  %v445_v51 = vsel %vm437_vm7, %v443_v15, %v444_v17 }
 0x279   :  { %3444 = vrot.lane.b32.xlu0 %v3436_v57, %s4018_s9  ;;  %v463_v12 = vmul.f32 %v6998_v56, %v457_v39  ;;  %v454_v28 = vadd.f32 %v445_v51, %v421_v61  ;;  %v447_v7 = vsel %vm437_vm7, %v444_v17, %v446_v62  ;;  %v496_v6 = vmul.f32 %v6998_v56, %v7128_v20  ;;  %v7181_v5 = vpop.permute.xlu0 %2298 }
 0x27a   :  { %3446 = vrot.lane.b32.xlu1 %v3437_v9, %s4018_s9  ;;  %v476_v40 = vrot.slane %v461_v1, 2  ;;  %v477_v45 = vrot.slane %v462_v19, 2  ;;  %v439_v34 = vrot.slane %v426_v43, 1  ;;  %v441_v10 = vrot.slane %v427_v55, 1 }
 0x27b   :  { %v479_v0 = vrot.slane %v463_v12, 2  ;;  %v460_v49 = vmul.f32 %v6862_v54, %v457_v39  ;;  %v511_v41 = vsel %vm503_vm9, %v509_v23, %v510_v47  ;;  %v7179_v22 = vstv %s7141_s13  ;;  %v7183_v11 = vpop.permute.xlu1 %2300 }
 0x27c   :  { %v478_v53 = vsel %vm470_vm8, %v476_v40, %v477_v45  ;;  %v455_v25 = vadd.f32 %v447_v7, %v422_v31  ;;  %v542_v60 = vrot.slane %v7161_v16, 4  ;;  %v438_v58 = vrot.slane %v425_v29, 1 }
 0x27d   :  { %v487_v8 = vadd.f32 %v478_v53, %v454_v28  ;;  %v480_v26 = vsel %vm470_vm8, %v477_v45, %v479_v0  ;;  %v459_v42 = vmul.f32 %v6787_v63, %v457_v39  ;;  %v574_v57 = vrot.slane %v559_v44, 5  ;;  %v7208_v40 = vpop.permute.xlu0 %2294 }
 0x27e   :  { %v575_v4 = vrot.slane %v7170_v50, 5  ;;  %v512_v18 = vrot.slane %v496_v6, 3  ;;  %v529_v9 = vmul.f32 %v6998_v56, %v7131_v46  ;;  %v440_v14 = vsel %vm437_vm7, %v438_v58, %v439_v34 }
 0x27f   :  { %v458_v48 = vmul.f32 %v6783_v38, %v457_v39  ;;  %v442_v32 = vsel %vm437_vm7, %v439_v34, %v441_v10  ;;  %v474_v17 = vrot.slane %v460_v49, 2  ;;  %v488_v33 = vadd.f32 %v480_v26, %v455_v25 }
 0x280   :  { %v419_v15 = vmul.f32 %v6783_v38, %v418_v30  ;;  %v492_v1 = vmul.f32 %v6787_v63, %v7128_v20  ;;  %v420_v19 = vmul.f32 %v6787_v63, %v418_v30  ;;  %v592_v2 = vmul.f32 %v6924_v13, %v7179_v22 }
 0x281   :  { %v593_v3 = vmul.f32 %v6928_v36, %v7179_v22  ;;  %v472_v51 = vrot.slane %v459_v42, 2  ;;  %v493_v39 = vmul.f32 %v6862_v54, %v7128_v20  ;;  %v561_v59 = vmul.f32 %v6998_v56, %v7150_v27 }
 0x282   :  { %v452_v62 = vadd.f32 %v440_v14, %v419_v15  ;;  %v491_v12 = vmul.f32 %v6783_v38, %v7128_v20  ;;  %v453_v61 = vadd.f32 %v442_v32, %v420_v19  ;;  %v513_v13 = vsel %vm503_vm9, %v510_v47, %v512_v18 }
 0x283   :  { %v544_v45 = vrot.slane %v529_v9, 4  ;;  %v471_v36 = vrot.slane %v458_v48, 2  ;;  %v475_v43 = vsel %vm470_vm8, %v472_v51, %v474_v17  ;;  %v520_v55 = vadd.f32 %v511_v41, %v487_v8 }
 0x284   :  { %v7210_v30 = vpop.permute.xlu1 %2296  ;;  %v521_v28 = vadd.f32 %v513_v13, %v488_v33  ;;  %v505_v23 = vrot.slane %v492_v1, 3  ;;  %v525_v16 = vmul.f32 %v6787_v63, %v7131_v46  ;;  %v543_v7 = vsel %vm47_vm0, %v541_v24, %v542_v60 }
 0x285   :  { %v473_v20 = vsel %vm470_vm8, %v471_v36, %v472_v51  ;;  %v507_v0 = vrot.slane %v493_v39, 3  ;;  %v526_v29 = vmul.f32 %v6862_v54, %v7131_v46  ;;  %v504_v47 = vrot.slane %v491_v12, 3 }
 0x286   :  { %v485_v44 = vadd.f32 %v473_v20, %v452_v62  ;;  %v524_v50 = vmul.f32 %v6783_v38, %v7131_v46  ;;  %v486_v31 = vadd.f32 %v475_v43, %v453_v61  ;;  %v576_v6 = vsel %vm568_vm10, %v574_v57, %v575_v4 }
 0x287   :  { %v545_v53 = vsel %vm47_vm0, %v542_v60, %v544_v45  ;;  %v577_v34 = vrot.slane %v561_v59, 5  ;;  %v594_v24 = vmul.f32 %v6998_v56, %v7179_v22  ;;  %v552_v10 = vadd.f32 %v543_v7, %v520_v55 }
 0x288   :  { %v553_v49 = vadd.f32 %v545_v53, %v521_v28  ;;  %v506_v8 = vsel %vm503_vm9, %v504_v47, %v505_v23  ;;  %v537_v41 = vrot.slane %v525_v16, 4  ;;  %v557_v58 = vmul.f32 %v6787_v63, %v7150_v27 }
 0x289   :  { %v508_v46 = vsel %vm503_vm9, %v505_v23, %v507_v0  ;;  %v539_v42 = vrot.slane %v526_v29, 4  ;;  %v558_v60 = vmul.f32 %v6862_v54, %v7150_v27  ;;  %v607_v57 = vrot.slane %v592_v2, 6 }
 0x28a   :  { %v518_v18 = vadd.f32 %v506_v8, %v485_v44  ;;  %v536_v9 = vrot.slane %v524_v50, 4  ;;  %v519_v56 = vadd.f32 %v508_v46, %v486_v31  ;;  %v608_v14 = vrot.slane %v593_v3, 6 }
 0x28b   :  { %v578_v48 = vsel %vm568_vm10, %v575_v4, %v577_v34  ;;  %v610_v32 = vrot.slane %v594_v24, 6  ;;  %v556_v17 = vmul.f32 %v6783_v38, %v7150_v27  ;;  %v585_v33 = vadd.f32 %v576_v6, %v552_v10 }
 0x28c   :  { %v3171_v25 = vpop.permute.xlu0 %3170  ;;  %v586_v15 = vadd.f32 %v578_v48, %v553_v49  ;;  %v538_v1 = vsel %vm47_vm0, %v536_v9, %v537_v41  ;;  %v590_v19 = vmul.f32 %v6787_v63, %v7179_v22  ;;  %v570_v51 = vrot.slane %v557_v58, 5 }
 0x28d   :  { %v540_v2 = vsel %vm47_vm0, %v537_v41, %v539_v42  ;;  %v572_v39 = vrot.slane %v558_v60, 5  ;;  %v591_v3 = vmul.f32 %v6862_v54, %v7179_v22  ;;  %v550_v59 = vadd.f32 %v538_v1, %v518_v18 }
 0x28e   :  { %v551_v4 = vadd.f32 %v540_v2, %v519_v56  ;;  %v609_v27 = vsel %vm601_vm11, %v607_v57, %v608_v14  ;;  %v611_v61 = vsel %vm601_vm11, %v608_v14, %v610_v32  ;;  %v569_v13 = vrot.slane %v556_v17, 5 }
 0x28f   :  { %v589_v45 = vmul.f32 %v6783_v38, %v7179_v22  ;;  %v618_v63 = vadd.f32 %v609_v27, %v585_v33  ;;  %v619_v36 = vadd.f32 %v611_v61, %v586_v15  ;;  %v603_v43 = vrot.slane %v590_v19, 6 }
 0x290   :  { %v571_v55 = vsel %vm568_vm10, %v569_v13, %v570_v51  ;;  %v573_v28 = vsel %vm568_vm10, %v570_v51, %v572_v39  ;;  %v605_v54 = vrot.slane %v591_v3, 6  ;;  %v4019_v47 = vmov 1983009808  }
 0x291   :  { %v583_v23 = vadd.f32 %v571_v55, %v550_v59  ;;  %v584_v16 = vadd.f32 %v573_v28, %v551_v4  ;;  %v1430_v0 = vadd.f32 %v7124_v52, %v618_v63  ;;  %v1431_v29 = vadd.f32 %v7126_v37, %v619_v36 }
 0x292   :  { %v602_v44 = vrot.slane %v589_v45, 6  ;;  %v3469_v38 = vunpack.c.l.s4 %v4019_v47  ;;  %v3471_v22 = vlaneseq  ;;  %v606_v31 = vsel %vm601_vm11, %v603_v43, %v605_v54 }
 0x293   :  { %v2308_v6 = vadd.f32 %v7181_v5, %v1430_v0  ;;  %v2309_v53 = vadd.f32 %v7183_v11, %v1431_v29  ;;  %v617_v24 = vadd.f32 %v606_v31, %v584_v16  ;;  %v3461_v11 = vstv %s3881_s14 }
 0x294   :  { %v604_v50 = vsel %vm601_vm11, %v602_v44, %v603_v43  ;;  %v3470_v58 = vunpack.c.0.s8 %v3469_v38  ;;  %v7255_v46 = vshrl.u32 %v3471_v22, 7  ;;  %vm3496_vm0 = vcmask 123904  }
 0x295   :  { %v616_v34 = vadd.f32 %v604_v50, %v583_v23  ;;  %v3180_v8 = vadd.f32 %v3171_v25, %v2308_v6  ;;  %v1429_v41 = vadd.f32 %v7154_v35, %v617_v24  ;;  %vm3588_vm6 = vcmask 911104  }
 0x296   :  { %vm3600_vm7 = vcmask 1042304  }
 0x297   :  { %v1428_v37 = vadd.f32 %v7152_v21, %v616_v34  ;;  %v2307_v5 = vadd.f32 %v7210_v30, %v1429_v41  ;;  %v3473_v21 = vsub.s32 %v3470_v58, %v7255_v46 }
 0x299   :  { %v2306_v57 = vadd.f32 %v7208_v40, %v1428_v37 }
 0x29e   :  { %v3173_v26 = vpop.permute.xlu1 %3172 }
 0x29f   :  { %v3181_v52 = vadd.f32 %v3173_v26, %v2309_v53 }
 0x2a5   :  { %v3167_v62 = vpop.permute.xlu0 %3166 }
 0x2a6   :  { %v3178_v25 = vadd.f32 %v3167_v62, %v2306_v57 }
 0x2b4   :  { %v3169_v12 = vpop.permute.xlu1 %3168 }
 0x2b5   :  { %v3179_v26 = vadd.f32 %v3169_v12, %v2307_v5 }
 0x2df   :  { %v3409_v7 = vpop.permute.xlu0 %3408  ;;  %v3411_v20 = vpop.permute.xlu1 %3410 }
 0x2e0   :  { %v3418_v42 = vadd.f32 %v3409_v7, %v3180_v8  ;;  %v3419_v60 = vadd.f32 %v3411_v20, %v3181_v52 }
 0x2e3   :  { %v3405_v10 = vpop.permute.xlu0 %3404  ;;  %v3407_v49 = vpop.permute.xlu1 %3406 }
 0x2e4   :  { %v3416_v32 = vadd.f32 %v3405_v10, %v3178_v25  ;;  %v3417_v17 = vadd.f32 %v3407_v49, %v3179_v26 }
 0x2e7   :  { %v3449_v18 = vpop.permute.xlu0 %3448  ;;  %v3451_v9 = vpop.permute.xlu1 %3450 }
 0x2e8   :  { %v3458_v56 = vadd.f32 %v3449_v18, %v3418_v42  ;;  %v3459_v14 = vadd.f32 %v3451_v9, %v3419_v60 }
 0x2ea   :  { %v3464_v48 = vadd.f32 %v3461_v11, %v3458_v56  ;;  %v3465_v35 = vadd.f32 %v3461_v11, %v3459_v14 }
 0x2eb   :  { %v3445_v33 = vpop.permute.xlu0 %3444 }
 0x2ec   :  { %v3447_v15 = vpop.permute.xlu1 %3446  ;;  %v3481_v1 = vrot.slane %v3464_v48, %v3473_v21  ;;  %v3456_v19 = vadd.f32 %v3445_v33, %v3416_v32  ;;  %v3544_v51 = vcombine.high %v3464_v48, %v3464_v48  ;;  %v7260_v30 = vrot.slane %v3465_v35, %v3473_v21 }
 0x2ed   :  { %v3457_v40 = vadd.f32 %v3447_v15, %v3417_v17  ;;  %v3670_v59 = vcombine.high %v3465_v35, %v3465_v35 }
 0x2ee   :  { %v3462_v2 = vadd.f32 %v3461_v11, %v3456_v19  ;;  %v7262_v3 = vcombine.high %v3481_v1, %v3481_v1  ;;  %v7268_v12 = vrot.slane %v3544_v51, %v3473_v21  ;;  %v7272_v27 = vcombine.high %v7260_v30, %v7260_v30 }
 0x2ef   :  { %v3463_v39 = vadd.f32 %v3461_v11, %v3457_v40  ;;  %v7280_v55 = vrot.slane %v3670_v59, %v3473_v21  ;;  %v3486_v14 = vrot.slane %v3481_v1, 7  ;;  %v3620_v17 = vrot.slane %v7260_v30, 7 }
 0x2f0   :  { %v7264_v4 = vrot.slane %v3462_v2, %v3473_v21  ;;  %v3536_v61 = vcombine.high %v3462_v2, %v3462_v2  ;;  %v3514_v23 = vrot.slane %v7262_v3, 7  ;;  %v3642_v20 = vrot.slane %v7272_v27, 7 }
 0x2f1   :  { %v7266_v62 = vrot.slane %v3463_v39, %v3473_v21  ;;  %v3662_v43 = vcombine.high %v3463_v39, %v3463_v39  ;;  %v3554_v0 = vrot.slane %v7268_v12, 7  ;;  %v3680_v37 = vrot.slane %v7280_v55, 7 }
 0x2f2   :  { %v3498_v13 = vrot.slane %v7264_v4, 1  ;;  %v3510_v45 = vcombine.high %v7264_v4, %v7264_v4  ;;  %v3543_v16 = vrot.slane %v3536_v61, %v3473_v21  ;;  %v7319_v56 = vcombine.high %v7268_v12, %v7268_v12 }
 0x2f3   :  { %v3627_v63 = vrot.slane %v7266_v62, 1  ;;  %v3638_v36 = vcombine.high %v7266_v62, %v7266_v62  ;;  %v3669_v22 = vrot.slane %v3662_v43, %v3473_v21  ;;  %v3701_v32 = vcombine.high %v7280_v55, %v7280_v55 }
 0x2f4   :  { %v3524_v28 = vrot.slane %v3510_v45, 1  ;;  %v3501_v54 = vsel %vm3487_vm12, %v3481_v1, %v3498_v13  ;;  %v3515_v38 = vsel %vm3487_vm12, %v3514_v23, %v3510_v45  ;;  %v3564_v41 = vrot.slane %v3543_v16, 1 }
 0x2f5   :  { %v3502_v7 = vsel %vm3489_vm13, %v3481_v1, %v3501_v54  ;;  %v3651_v29 = vrot.slane %v3638_v36, 1  ;;  %v3630_v47 = vsel %vm3487_vm12, %v7260_v30, %v3627_v63  ;;  %v3516_v6 = vsel %vm3489_vm13, %v3514_v23, %v3515_v38 }
 0x2f6   :  { %v3503_v44 = vsel %vm3491_vm14, %v3481_v1, %v3502_v7  ;;  %v3631_v31 = vsel %vm3489_vm13, %v7260_v30, %v3630_v47  ;;  %v3517_v34 = vsel %vm3491_vm14, %v3514_v23, %v3516_v6  ;;  %v3643_v24 = vsel %vm3487_vm12, %v3642_v20, %v3638_v36 }
 0x2f7   :  { %v3504_v50 = vsel %vm3493_vm15, %v3481_v1, %v3503_v44  ;;  %v3632_v53 = vsel %vm3491_vm14, %v7260_v30, %v3631_v31  ;;  %v3527_v10 = vsel %vm3487_vm12, %v7262_v3, %v3524_v28  ;;  %v3644_v8 = vsel %vm3489_vm13, %v3642_v20, %v3643_v24 }
 0x2f8   :  { %3505 = vrot.lane.b32.xlu0 %v3504_v50, %s4020_s15  ;;  %v3633_v49 = vsel %vm3493_vm15, %v7260_v30, %v3632_v53  ;;  %v3528_v52 = vsel %vm3489_vm13, %v7262_v3, %v3527_v10  ;;  %v3645_v58 = vsel %vm3491_vm14, %v3642_v20, %v3644_v8  ;;  %v3654_v42 = vsel %vm3487_vm12, %v7272_v27, %v3651_v29 }
 0x2f9   :  { %3634 = vrot.lane.b32.xlu1 %v3633_v49, %s4020_s15  ;;  %v3555_v60 = vsel %vm3487_vm12, %v3554_v0, %v3543_v16  ;;  %v3518_v57 = vsel %vm3493_vm15, %v3514_v23, %v3517_v34  ;;  %v3655_v5 = vsel %vm3489_vm13, %v7272_v27, %v3654_v42  ;;  %v3689_v11 = vrot.slane %v3669_v22, 1 }
 0x2fa   :  { %v3529_v18 = vsel %vm3491_vm14, %v7262_v3, %v3528_v52  ;;  %v3681_v9 = vsel %vm3487_vm12, %v3680_v37, %v3669_v22  ;;  %v3646_v25 = vsel %vm3493_vm15, %v3642_v20, %v3645_v58  ;;  %v3556_v26 = vsel %vm3489_vm13, %v3554_v0, %v3555_v60 }
 0x2fb   :  { %v3576_v21 = vcombine.high %v3543_v16, %v3543_v16  ;;  %v3656_v48 = vsel %vm3491_vm14, %v7272_v27, %v3655_v5  ;;  %v3567_v35 = vsel %vm3487_vm12, %v7268_v12, %v3564_v41  ;;  %v3700_v33 = vcombine.high %v3669_v22, %v3669_v22 }
 0x2fc   :  { %3519 = vrot.lane.b32.xlu0 %v3518_v57, %s4021_s22  ;;  %v3530_v15 = vsel %vm3493_vm15, %v7262_v3, %v3529_v18  ;;  %v3682_v1 = vsel %vm3489_vm13, %v3680_v37, %v3681_v9  ;;  %v3557_v19 = vsel %vm3491_vm14, %v3554_v0, %v3556_v26  ;;  %v3692_v40 = vsel %vm3487_vm12, %v7280_v55, %v3689_v11 }
 0x2fd   :  { %3647 = vrot.lane.b32.xlu1 %v3646_v25, %s4021_s22  ;;  %v3580_v51 = vrot.slane %v7319_v56, 7  ;;  %v3488_v2 = vsel %vm3487_vm12, %v3486_v14, %v7264_v4  ;;  %v3621_v30 = vsel %vm3487_vm12, %v3620_v17, %v7266_v62  ;;  %v3657_v39 = vsel %vm3493_vm15, %v7272_v27, %v3656_v48 }
 0x2fe   :  { %v3568_v3 = vsel %vm3489_vm13, %v7268_v12, %v3567_v35  ;;  %v3590_v59 = vrot.slane %v3576_v21, 1  ;;  %v3683_v61 = vsel %vm3491_vm14, %v3680_v37, %v3682_v1  ;;  %v3704_v45 = vrot.slane %v3701_v32, 7 }
 0x2ff   :  { %v3581_v13 = vsel %vm3487_vm12, %v3580_v51, %v3576_v21  ;;  %v3713_v63 = vrot.slane %v3700_v33, 1  ;;  %v3558_v36 = vsel %vm3493_vm15, %v3554_v0, %v3557_v19  ;;  %v3693_v4 = vsel %vm3489_vm13, %v7280_v55, %v3692_v40 }
 0x300   :  { %3531 = vrot.lane.b32.xlu0 %v3530_v15, %s4022_s16  ;;  %v3569_v62 = vsel %vm3491_vm14, %v7268_v12, %v3568_v3  ;;  %v3705_v27 = vsel %vm3487_vm12, %v3704_v45, %v3700_v33  ;;  %v3490_v43 = vsel %vm3489_vm13, %v3486_v14, %v3488_v2  ;;  %v3622_v28 = vsel %vm3489_vm13, %v3620_v17, %v3621_v30  ;;  %v3740_v3 = vld [vmem:[#allocation4] sm:$0xff] }
 0x301   :  { %3658 = vrot.lane.b32.xlu1 %v3657_v39, %s4022_s16  ;;  %v3684_v54 = vsel %vm3493_vm15, %v3680_v37, %v3683_v61  ;;  %v3582_v23 = vsel %vm3489_vm13, %v3580_v51, %v3581_v13  ;;  %v3492_v16 = vsel %vm3491_vm14, %v3486_v14, %v3490_v43  ;;  %v3623_v7 = vsel %vm3491_vm14, %v3620_v17, %v3622_v28 }
 0x302   :  { %v3694_v20 = vsel %vm3491_vm14, %v7280_v55, %v3693_v4  ;;  %v3593_v0 = vsel %vm3487_vm12, %v7319_v56, %v3590_v59  ;;  %v3494_v29 = vsel %vm3493_vm15, %v3486_v14, %v3492_v16  ;;  %v3624_v44 = vsel %vm3493_vm15, %v3620_v17, %v3623_v7 }
 0x303   :  { %v3570_v47 = vsel %vm3493_vm15, %v7268_v12, %v3569_v62  ;;  %v3706_v38 = vsel %vm3489_vm13, %v3704_v45, %v3705_v27  ;;  %3497 = vst.msk [vmem:[#allocation3] sm:$0x3] %vm3496_vm0, %v3494_v29  ;;  %3626 = vst.msk [vmem:[#allocation3 + $0x2] sm:$0x3] %vm3496_vm0, %v3624_v44  ;;  %v3583_v22 = vsel %vm3491_vm14, %v3580_v51, %v3582_v23  ;;  %v3744_v1 = vsub.s32 0, %v7255_v46 }
 0x304   :  { %3559 = vrot.lane.b32.xlu0 %v3558_v36, %s4023_s17  ;;  %v3716_v50 = vsel %vm3487_vm12, %v3701_v32, %v3713_v63  ;;  %v3695_v31 = vsel %vm3493_vm15, %v7280_v55, %v3694_v20  ;;  %v3594_v6 = vsel %vm3489_vm13, %v7319_v56, %v3593_v0  ;;  %v3707_v12 = vsel %vm3491_vm14, %v3704_v45, %v3706_v38 }
 0x305   :  { %3685 = vrot.lane.b32.xlu1 %v3684_v54, %s4023_s17  ;;  %v3584_v53 = vsel %vm3493_vm15, %v3580_v51, %v3583_v22  ;;  %v3717_v34 = vsel %vm3489_vm13, %v3701_v32, %v3716_v50  ;;  %v3595_v24 = vsel %vm3491_vm14, %v7319_v56, %v3594_v6  ;;  %v3708_v10 = vsel %vm3493_vm15, %v3704_v45, %v3707_v12  ;;  %v3741_v45 = vld [vmem:[#allocation4 + $0x8] sm:$0xff] }
 0x306   :  { %v3718_v55 = vsel %vm3491_vm14, %v3701_v32, %v3717_v34  ;;  %v3596_v49 = vsel %vm3493_vm15, %v7319_v56, %v3595_v24  ;;  %v3748_v19 = vsub.s32 1, %v7255_v46 }
 0x307   :  { %v3719_v8 = vsel %vm3493_vm15, %v3701_v32, %v3718_v55  ;;  %v4027_v32 = vmov 1966171168  }
 0x308   :  { %3571 = vrot.lane.b32.xlu0 %v3570_v47, %s4024_s18  ;;  %v3733_v17 = vunpack.c.l.s4 %v4027_v32 }
 0x309   :  { %3696 = vrot.lane.b32.xlu1 %v3695_v31, %s4024_s18 }
 0x30a   :  { %v3734_v33 = vunpack.c.0.s8 %v3733_v17 }
 0x30c   :  { %3585 = vrot.lane.b32.xlu0 %v3584_v53, %s4025_s19  ;;  %v3737_v15 = vsub.s32 %v3734_v33, %v7255_v46 }
 0x30d   :  { %3709 = vrot.lane.b32.xlu1 %v3708_v10, %s4025_s19 }
 0x310   :  { %3597 = vrot.lane.b32.xlu0 %v3596_v49, %s4026_s20 }
 0x311   :  { %3720 = vrot.lane.b32.xlu1 %v3719_v8, %s4026_s20 }
 0x36a   :  { %v3506_v52 = vpop.permute.xlu0 %3505 }
 0x36b   :  { %3509 = vst.msk [vmem:[#allocation3] sm:$0x3] %vm3508_vm1, %v3506_v52  ;;  %v3635_v37 = vpop.permute.xlu1 %3634 }
 0x36c   :  { %3637 = vst.msk [vmem:[#allocation3 + $0x2] sm:$0x3] %vm3508_vm1, %v3635_v37 }
 0x36e   :  { %v3520_v41 = vpop.permute.xlu0 %3519 }
 0x36f   :  { %3523 = vst.msk [vmem:[#allocation3] sm:$0x3] %vm3522_vm2, %v3520_v41  ;;  %v3648_v58 = vpop.permute.xlu1 %3647 }
 0x370   :  { %3650 = vst.msk [vmem:[#allocation3 + $0x2] sm:$0x3] %vm3522_vm2, %v3648_v58 }
 0x372   :  { %v3532_v42 = vpop.permute.xlu0 %3531 }
 0x373   :  { %3535 = vst.msk [vmem:[#allocation3] sm:$0x3] %vm3534_vm3, %v3532_v42  ;;  %v3659_v60 = vpop.permute.xlu1 %3658 }
 0x374   :  { %3661 = vst.msk [vmem:[#allocation3 + $0x2] sm:$0x3] %vm3534_vm3, %v3659_v60 }
 0x376   :  { %v3560_v57 = vpop.permute.xlu0 %3559 }
 0x377   :  { %3563 = vst.msk [vmem:[#allocation3] sm:$0x3] %vm3562_vm4, %v3560_v57  ;;  %v3686_v5 = vpop.permute.xlu1 %3685 }
 0x378   :  { %3688 = vst.msk [vmem:[#allocation3 + $0x2] sm:$0x3] %vm3562_vm4, %v3686_v5 }
 0x37a   :  { %v3572_v11 = vpop.permute.xlu0 %3571 }
 0x37b   :  { %3575 = vst.msk [vmem:[#allocation3] sm:$0x3] %vm3574_vm5, %v3572_v11  ;;  %v3697_v18 = vpop.permute.xlu1 %3696 }
 0x37c   :  { %3699 = vst.msk [vmem:[#allocation3 + $0x2] sm:$0x3] %vm3574_vm5, %v3697_v18 }
 0x37e   :  { %v3586_v9 = vpop.permute.xlu0 %3585 }
 0x37f   :  { %3589 = vst.msk [vmem:[#allocation3] sm:$0x3] %vm3588_vm6, %v3586_v9  ;;  %v3710_v56 = vpop.permute.xlu1 %3709 }
 0x380   :  { %3712 = vst.msk [vmem:[#allocation3 + $0x2] sm:$0x3] %vm3588_vm6, %v3710_v56 }
 0x382   :  { %v3598_v14 = vpop.permute.xlu0 %3597 }
 0x383   :  { %3601 = vst.msk [vmem:[#allocation3] sm:$0x3] %vm3600_vm7, %v3598_v14  ;;  %v3721_v25 = vpop.permute.xlu1 %3720 }
 0x384   :  { %3723 = vst.msk [vmem:[#allocation3 + $0x2] sm:$0x3] %vm3600_vm7, %v3721_v25 }
 0x38b   :  { %v3724_v26 = vld [vmem:[#allocation3] sm:$0xf] }
 0x38c   :  { %v3882_v21 = vmul.f32 -1.442695, %v3724_v26 }
 0x38e   :  { %3912 = vpow2.f32 %v3882_v21 }
 0x398   :  { %v3913_v48 = vpop.eup %3912 }
 0x399   :  { %v3728_v35 = vadd.f32 1.0, %v3913_v48 }
 0x39b   :  { %3914 = vrcp.f32 %v3728_v35 }
 0x3a5   :  { %v3915_v40 = vpop.eup %3914 }
 0x3a6   :  { %v3738_v51 = vrot.slane %v3915_v40, %v3737_v15 }
 0x3a8   :  { %v3739_v2 = vcombine.high %v3738_v51, %v3738_v51  ;;  %v3745_v30 = vrot.slane %v3738_v51, %v3744_v1  ;;  %v3749_v39 = vrot.slane %v3738_v51, %v3748_v19 }
 0x3aa   :  { %v3753_v59 = vrot.slane %v3739_v2, %v3744_v1  ;;  %v3757_v61 = vrot.slane %v3739_v2, %v3748_v19  ;;  %v3758_v13 = vcombine.low %v3745_v30, %v3749_v39 }
 0x3ac   :  { %v3759_v63 = vcombine.low %v3753_v59, %v3757_v61  ;;  %v3762_v36 = vmul.f32 %v3758_v13, %v3740_v3 }
 0x3ae   :  { %v3763_v4 = vmul.f32 %v3759_v63, %v3741_v45  ;;  %3764 = vst [vmem:[#allocation9] sm:$0xff] %v3762_v36 }
 0x3b0   :  { %3765 = vst [vmem:[#allocation9 + $0x8] sm:$0xff] %v3763_v4 }
 0x3b1   :  { %3985 = shalt.err (!%p3982_p3)
}
 0x3b2   :  { %s7622_s0 = sld [smem:[#allocation47_spill]] }
 0x3b8   :  { %s3986_s28 = scalar_lea.hbm %s7622_s0, 256 }
 0x3b9   :  { %p3987_p4 = scmp.ne.s32.totalorder %s7622_s0, %s3986_s28  ;;  %p3990_p5 = scmp.lt.u32.totalorder %s3986_s28, %s7622_s0 }
 0x3bb   :  { %p3992_p6 = pnand %p3990_p5, %p3987_p4 }
 0x3bd   :  { %3995 = shalt.err (!%p3992_p6)
}
 0x3be   :  { %s7623_s6 = smov 8   ;;  %s7624_s3 = smov 128  }
 0x3bf   :  { %3777 = dma.vmem_to_hbm [thread:$0]  %s3772_s23, 256, %s7622_s0, [#allocation6], %s7624_s3, %s7624_s3, %s7623_s6  }
 0x3c0   :  { %4000 = dma.done.wait [#allocation6], 256  }
 0x3c1   :  { %4001 = vsyncadd [#allocation6], 4294967040 }
 0x3c2   :  { %3781 = vsyncpa [#allocation5], 1 }
 0x3c3   :  { %3782 = vsyncpa [#allocation6], 1 }
 0x3c4   :  { %3783 = vsyncpa [#allocation7], 1 }

</bundles_post_ra>
